<compile_context>
chip_gen: v5e
topology: v5e:2x2
jax: 0.10.0
libtpu: 0.0.40
codegen_flags: <defaults>
</compile_context>

<pallas_src>
import functools

import jax
import jax.numpy as jnp
import numpy as np
from jax.experimental import pallas as pl
from jax.experimental.pallas import tpu as pltpu


def _point_head_kernel(x_ref, w1_ref, b1_ref, w2_ref, b2_ref, w3_ref, b3_ref,
                       o_ref, f1_ref, *, H, W):
    """One batch element of the PointHead forward pass.

    x_ref : ((H+4)*W, Cin)  input, channels-last, 2 zero rows of padding top
                            and bottom, flattened over (H, W).
    w1_ref: (9, Cin, F)     3x3 conv1 weights, tap-major (ky*3+kx).
    w2_ref: (9, F, F)       3x3 conv2 weights.
    w3_ref: (F, P2)         1x1 conv weights, P2 = point_count*2.
    b*_ref: (1, Cout)       biases.
    o_ref : (H*W, P2)       output (lane-dense slab; (N, 2) reshape is outside).
    f1_ref: ((H+4)*W, F)    VMEM scratch holding padded conv1 activations.
    """
    S = H * W
    PAD = 2 * W
    F = w1_ref.shape[-1]

    # Column index of every flattened spatial position, computed once per grid
    # step over a tiny (S, 1) iota; the only integer div/mod in the kernel.
    col = jax.lax.broadcasted_iota(jnp.int32, (S, 1), 0) % W
    not_left = (col != 0).astype(jnp.float32)         # kx == 0 taps read w-1
    not_right = (col != (W - 1)).astype(jnp.float32)  # kx == 2 taps read w+1

    def conv3x3(src_ref, w_ref, b_ref):
        cout = w_ref.shape[-1]
        # Start the accumulator at the bias (saves a separate (S, Cout) add).
        acc = jnp.broadcast_to(b_ref[...].astype(jnp.float32), (S, cout))
        for ky in range(3):
            for kx in range(3):
                # Flat offset of tap (ky, kx): output position n = h*W + w
                # reads padded-flat row n + (ky+1)*W + (kx-1).  `off` is a
                # Python int -> plain static slice, no dynamic addressing.
                off = (ky + 1) * W + (kx - 1)
                patch = src_ref[pl.ds(off, S), :].astype(jnp.float32)
                # Mask the horizontal wrap-around at the row seams (cheaper on
                # the input side since Cin <= Cout for every conv here).
                if kx == 0:
                    patch = patch * not_left
                elif kx == 2:
                    patch = patch * not_right
                acc = acc + jnp.dot(patch, w_ref[ky * 3 + kx],
                                    preferred_element_type=jnp.float32)
        return acc

    # conv1 + ReLU, staged into the zero-padded flat scratch for conv2.
    h1 = jnp.maximum(conv3x3(x_ref, w1_ref, b1_ref), 0.0)
    # Padding rows must be (re)zeroed every step: with a "parallel" batch axis
    # each core owns an unknown subset of grid ids, so gating on program_id==0
    # would leave one core's scratch uninitialized.  This is a tiny store.
    f1_ref[pl.ds(0, PAD), :] = jnp.zeros((PAD, F), jnp.float32)
    f1_ref[pl.ds(PAD + S, PAD), :] = jnp.zeros((PAD, F), jnp.float32)
    f1_ref[pl.ds(PAD, S), :] = h1

    # conv2 + ReLU.
    h2 = jnp.maximum(conv3x3(f1_ref, w2_ref, b2_ref), 0.0)

    # conv3: 1x1 conv is a plain matmul (bias folded via broadcast init).
    out = jnp.dot(h2, w3_ref[...], preferred_element_type=jnp.float32) + b3_ref[...]
    o_ref[...] = out.astype(o_ref.dtype)


@functools.partial(jax.jit, static_argnums=(7,))
def point_head_forward(x, w1, b1, w2, b2, w3, b3, point_count):
    """x: (B, Cin, H, W) float32 -> (B, H*W*point_count, 2) float32."""
    B, Cin, H, W = x.shape
    F = w1.shape[-1]
    P2 = point_count * 2
    S = H * W
    S_pad = (H + 4) * W

    # NCHW -> NHWC, pad H by 2 rows top/bottom, flatten spatial (XLA side).
    x_nhwc = jnp.transpose(x, (0, 2, 3, 1))
    xp = jnp.pad(x_nhwc, ((0, 0), (2, 2), (0, 0), (0, 0)))
    xp_flat = xp.reshape(B, S_pad, Cin)

    w1r = w1.reshape(9, Cin, F)
    w2r = w2.reshape(9, F, F)
    b1r = b1.reshape(1, F)
    b2r = b2.reshape(1, F)
    b3r = b3.reshape(1, P2)

    # Advisory cost hint for XLA's scheduler around the custom call.
    flops = 2 * B * S * (9 * Cin * F + 9 * F * F + F * P2)
    bytes_accessed = 4 * (B * S_pad * Cin + B * S * P2
                          + 9 * Cin * F + 9 * F * F + F * P2 + 2 * F + P2)
    cost = pl.CostEstimate(flops=flops, transcendentals=0,
                           bytes_accessed=bytes_accessed)

    kernel = functools.partial(_point_head_kernel, H=H, W=W)
    out = pl.pallas_call(
        kernel,
        out_shape=jax.ShapeDtypeStruct((B, S, P2), jnp.float32),
        grid=(B,),
        in_specs=[
            pl.BlockSpec((None, S_pad, Cin), lambda b: (b, 0, 0)),
            pl.BlockSpec((9, Cin, F), lambda b: (0, 0, 0)),
            pl.BlockSpec((1, F), lambda b: (0, 0)),
            pl.BlockSpec((9, F, F), lambda b: (0, 0, 0)),
            pl.BlockSpec((1, F), lambda b: (0, 0)),
            pl.BlockSpec((F, P2), lambda b: (0, 0)),
            pl.BlockSpec((1, P2), lambda b: (0, 0)),
        ],
        out_specs=pl.BlockSpec((None, S, P2), lambda b: (b, 0, 0)),
        scratch_shapes=[pltpu.VMEM((S_pad, F), jnp.float32)],
        compiler_params=pltpu.CompilerParams(
            dimension_semantics=("parallel",)),
        cost_estimate=cost,
    )(xp_flat, w1r, b1r, w2r, b2r, w3, b3r)

    # Narrow (N, 2) view is done here (free XLA reshape), not in the kernel.
    return out.reshape(B, S * point_count, 2)


class PointHeadPallas:
    """JAX/Pallas equivalent of the PyTorch PointHead module."""

    def __init__(self, in_channels, point_count=4, feature_size=512, key=None):
        if key is None:
            key = jax.random.PRNGKey(0)
        k1, k2, k3, k4, k5, k6 = jax.random.split(key, 6)
        F, P2 = feature_size, point_count * 2
        s1 = 1.0 / np.sqrt(9 * in_channels)
        s2 = 1.0 / np.sqrt(9 * feature_size)
        s3 = 1.0 / np.sqrt(feature_size)
        # HWIO conv weights (same math as PyTorch's OIHW, just transposed).
        self.w1 = jax.random.uniform(k1, (3, 3, in_channels, F), jnp.float32, -s1, s1)
        self.b1 = jax.random.uniform(k2, (F,), jnp.float32, -s1, s1)
        self.w2 = jax.random.uniform(k3, (3, 3, F, F), jnp.float32, -s2, s2)
        self.b2 = jax.random.uniform(k4, (F,), jnp.float32, -s2, s2)
        self.w3 = jax.random.uniform(k5, (F, P2), jnp.float32, -s3, s3)
        self.b3 = jax.random.uniform(k6, (P2,), jnp.float32, -s3, s3)
        self.point_count = point_count

    def __call__(self, x):
        return point_head_forward(x, self.w1, self.b1, self.w2, self.b2,
                                  self.w3, self.b3, self.point_count)


# ---------------------------------------------------------------------------
# Pure-JAX reference (mirrors the PyTorch module) for verification.
# ---------------------------------------------------------------------------
def _point_head_ref(x, w1, b1, w2, b2, w3, b3, point_count):
    x_nhwc = jnp.transpose(x, (0, 2, 3, 1))

    def conv(inp, w, b):
        y = jax.lax.conv_general_dilated(
            inp, w, window_strides=(1, 1), padding="SAME",
            dimension_numbers=("NHWC", "HWIO", "NHWC"))
        return y + b.reshape(1, 1, 1, -1)

    h = jax.nn.relu(conv(x_nhwc, w1, b1))
    h = jax.nn.relu(conv(h, w2, b2))
    y = conv(h, w3.reshape(1, 1, *w3.shape), b3)       # 1x1 conv
    return y.reshape(x.shape[0], -1, 2)                # permute+view equivalent


if __name__ == "__main__":
    B, Cin, H, W = 2, 4, 16, 16
    point_count, feature_size = 4, 32

    key = jax.random.PRNGKey(0)
    kx, kp = jax.random.split(key)
    x = jax.random.normal(kx, (B, Cin, H, W), dtype=jnp.float32)

    head = PointHeadPallas(Cin, point_count=point_count,
                           feature_size=feature_size, key=kp)
    out = head(x)
    out = jax.block_until_ready(out)

    ref = _point_head_ref(x, head.w1, head.b1, head.w2, head.b2,
                          head.w3, head.b3, point_count)
    ref = jax.block_until_ready(ref)

    assert out.shape == (B, H * W * point_count, 2), out.shape
    assert out.dtype == jnp.float32
    np.testing.assert_allclose(np.asarray(out), np.asarray(ref),
                               rtol=2e-2, atol=2e-2)
    print("KERNEL_OK")
</pallas_src>

<mosaic_0001>
module attributes {stable_mosaic.version = 11 : i64} {
  func.func @_point_head_kernel(%arg0: i32, %arg1: memref<1x320x4xf32, #tpu.memory_space<vmem>>, %arg2: memref<9x4x32xf32, #tpu.memory_space<vmem>>, %arg3: memref<1x32xf32, #tpu.memory_space<vmem>>, %arg4: memref<9x32x32xf32, #tpu.memory_space<vmem>>, %arg5: memref<1x32xf32, #tpu.memory_space<vmem>>, %arg6: memref<32x8xf32, #tpu.memory_space<vmem>>, %arg7: memref<1x8xf32, #tpu.memory_space<vmem>>, %arg8: memref<1x256x8xf32, #tpu.memory_space<vmem>>, %arg9: memref<320x32xf32, #tpu.memory_space<vmem>>) attributes {dimension_semantics = [#tpu.dimension_semantics<parallel>], iteration_bounds = array<i64: 2>, scalar_prefetch = 0 : i64, scratch_operands = 1 : i64, tpu.core_type = #tpu.core_type<tc>, window_params = [{transform_indices = @transform_0, window_bounds = array<i64: 1, 320, 4>}, {pipeline_mode = #tpu.pipeline_mode<synchronous>, transform_indices = @transform_1, window_bounds = array<i64: 9, 4, 32>}, {pipeline_mode = #tpu.pipeline_mode<synchronous>, transform_indices = @transform_2, window_bounds = array<i64: 1, 32>}, {pipeline_mode = #tpu.pipeline_mode<synchronous>, transform_indices = @transform_3, window_bounds = array<i64: 9, 32, 32>}, {pipeline_mode = #tpu.pipeline_mode<synchronous>, transform_indices = @transform_4, window_bounds = array<i64: 1, 32>}, {pipeline_mode = #tpu.pipeline_mode<synchronous>, transform_indices = @transform_5, window_bounds = array<i64: 32, 8>}, {pipeline_mode = #tpu.pipeline_mode<synchronous>, transform_indices = @transform_6, window_bounds = array<i64: 1, 8>}, {transform_indices = @transform_7, window_bounds = array<i64: 1, 256, 8>}]} {
    %0 = tpu.iota {dimensions = array<i32: 0>} : vector<256x1xi32>
    %c16_i32 = arith.constant 16 : i32
    %c0_i32 = arith.constant 0 : i32
    %1 = arith.cmpi eq, %c16_i32, %c0_i32 : i32
    %c1_i32 = arith.constant 1 : i32
    %2 = arith.select %1, %c1_i32, %c16_i32 : i32
    %3 = vector.broadcast %2 : i32 to vector<256x1xi32>
    %4 = arith.remsi %0, %3 : vector<256x1xi32>
    %c0_i32_0 = arith.constant 0 : i32
    %5 = vector.broadcast %c0_i32_0 : i32 to vector<256x1xi32>
    %6 = arith.cmpi ne, %4, %5 : vector<256x1xi32>
    %c0_i32_1 = arith.constant 0 : i32
    %7 = vector.broadcast %c0_i32_1 : i32 to vector<256x1xi32>
    %8 = arith.cmpi slt, %4, %7 : vector<256x1xi32>
    %c0_i32_2 = arith.constant 0 : i32
    %9 = arith.cmpi slt, %2, %c0_i32_2 : i32
    %10 = vector.broadcast %9 : i1 to vector<256x1xi1>
    %11 = vector.broadcast %10 : vector<256x1xi1> to vector<256x1xi1>
    %12 = arith.xori %8, %11 : vector<256x1xi1>
    %13 = arith.andi %12, %6 : vector<256x1xi1>
    %14 = vector.broadcast %2 : i32 to vector<256x1xi32>
    %15 = arith.addi %4, %14 : vector<256x1xi32>
    %16 = arith.select %13, %15, %4 : vector<256x1xi1>, vector<256x1xi32>
    %c0_i32_3 = arith.constant 0 : i32
    %17 = vector.broadcast %c0_i32_3 : i32 to vector<256x1xi32>
    %18 = arith.cmpi ne, %16, %17 : vector<256x1xi32>
    %19 = arith.extui %18 : vector<256x1xi1> to vector<256x1xi32>
    %20 = arith.sitofp %19 : vector<256x1xi32> to vector<256x1xf32>
    %c15_i32 = arith.constant 15 : i32
    %21 = vector.broadcast %c15_i32 : i32 to vector<256x1xi32>
    %22 = arith.cmpi ne, %16, %21 : vector<256x1xi32>
    %23 = arith.extui %22 : vector<256x1xi1> to vector<256x1xi32>
    %24 = arith.sitofp %23 : vector<256x1xi32> to vector<256x1xf32>
    %c0 = arith.constant 0 : index
    %c0_4 = arith.constant 0 : index
    %25 = vector.load %arg3[%c0, %c0_4] : memref<1x32xf32, #tpu.memory_space<vmem>>, vector<1x32xf32>
    %26 = vector.shape_cast %25 : vector<1x32xf32> to vector<1x32xf32>
    %27 = vector.broadcast %26 : vector<1x32xf32> to vector<256x32xf32>
    %c0_5 = arith.constant 0 : index
    %c15 = arith.constant 15 : index
    %c0_6 = arith.constant 0 : index
    %28 = vector.load %arg1[%c0_5, %c15, %c0_6] : memref<1x320x4xf32, #tpu.memory_space<vmem>>, vector<1x256x4xf32>
    %29 = vector.shape_cast %28 : vector<1x256x4xf32> to vector<256x4xf32>
    %30 = vector.broadcast %20 : vector<256x1xf32> to vector<256x4xf32>
    %31 = arith.mulf %29, %30 : vector<256x4xf32>
    %c0_7 = arith.constant 0 : index
    %c0_8 = arith.constant 0 : index
    %c0_9 = arith.constant 0 : index
    %32 = vector.load %arg2[%c0_7, %c0_8, %c0_9] : memref<9x4x32xf32, #tpu.memory_space<vmem>>, vector<1x4x32xf32>
    %33 = vector.shape_cast %32 : vector<1x4x32xf32> to vector<4x32xf32>
    %cst = arith.constant dense<0.000000e+00> : vector<256x32xf32>
    %34 = tpu.matmul %31, %33, %cst {dimension_numbers = #tpu.dot_dimension_numbers<[1], [0], [0], [1], [0, 0, 1, 1], [], []>} : vector<256x4xf32>, vector<4x32xf32>, vector<256x32xf32> -> vector<256x32xf32>
    %35 = arith.addf %27, %34 : vector<256x32xf32>
    %c0_10 = arith.constant 0 : index
    %c16 = arith.constant 16 : index
    %c0_11 = arith.constant 0 : index
    %36 = vector.load %arg1[%c0_10, %c16, %c0_11] : memref<1x320x4xf32, #tpu.memory_space<vmem>>, vector<1x256x4xf32>
    %37 = vector.shape_cast %36 : vector<1x256x4xf32> to vector<256x4xf32>
    %c1 = arith.constant 1 : index
    %c0_12 = arith.constant 0 : index
    %c0_13 = arith.constant 0 : index
    %38 = vector.load %arg2[%c1, %c0_12, %c0_13] : memref<9x4x32xf32, #tpu.memory_space<vmem>>, vector<1x4x32xf32>
    %39 = vector.shape_cast %38 : vector<1x4x32xf32> to vector<4x32xf32>
    %cst_14 = arith.constant dense<0.000000e+00> : vector<256x32xf32>
    %40 = tpu.matmul %37, %39, %cst_14 {dimension_numbers = #tpu.dot_dimension_numbers<[1], [0], [0], [1], [0, 0, 1, 1], [], []>} : vector<256x4xf32>, vector<4x32xf32>, vector<256x32xf32> -> vector<256x32xf32>
    %41 = arith.addf %35, %40 : vector<256x32xf32>
    %c0_15 = arith.constant 0 : index
    %c17 = arith.constant 17 : index
    %c0_16 = arith.constant 0 : index
    %42 = vector.load %arg1[%c0_15, %c17, %c0_16] : memref<1x320x4xf32, #tpu.memory_space<vmem>>, vector<1x256x4xf32>
    %43 = vector.shape_cast %42 : vector<1x256x4xf32> to vector<256x4xf32>
    %44 = vector.broadcast %24 : vector<256x1xf32> to vector<256x4xf32>
    %45 = arith.mulf %43, %44 : vector<256x4xf32>
    %c2 = arith.constant 2 : index
    %c0_17 = arith.constant 0 : index
    %c0_18 = arith.constant 0 : index
    %46 = vector.load %arg2[%c2, %c0_17, %c0_18] : memref<9x4x32xf32, #tpu.memory_space<vmem>>, vector<1x4x32xf32>
    %47 = vector.shape_cast %46 : vector<1x4x32xf32> to vector<4x32xf32>
    %cst_19 = arith.constant dense<0.000000e+00> : vector<256x32xf32>
    %48 = tpu.matmul %45, %47, %cst_19 {dimension_numbers = #tpu.dot_dimension_numbers<[1], [0], [0], [1], [0, 0, 1, 1], [], []>} : vector<256x4xf32>, vector<4x32xf32>, vector<256x32xf32> -> vector<256x32xf32>
    %49 = arith.addf %41, %48 : vector<256x32xf32>
    %c0_20 = arith.constant 0 : index
    %c31 = arith.constant 31 : index
    %c0_21 = arith.constant 0 : index
    %50 = vector.load %arg1[%c0_20, %c31, %c0_21] : memref<1x320x4xf32, #tpu.memory_space<vmem>>, vector<1x256x4xf32>
    %51 = vector.shape_cast %50 : vector<1x256x4xf32> to vector<256x4xf32>
    %52 = vector.broadcast %20 : vector<256x1xf32> to vector<256x4xf32>
    %53 = arith.mulf %51, %52 : vector<256x4xf32>
    %c3 = arith.constant 3 : index
    %c0_22 = arith.constant 0 : index
    %c0_23 = arith.constant 0 : index
    %54 = vector.load %arg2[%c3, %c0_22, %c0_23] : memref<9x4x32xf32, #tpu.memory_space<vmem>>, vector<1x4x32xf32>
    %55 = vector.shape_cast %54 : vector<1x4x32xf32> to vector<4x32xf32>
    %cst_24 = arith.constant dense<0.000000e+00> : vector<256x32xf32>
    %56 = tpu.matmul %53, %55, %cst_24 {dimension_numbers = #tpu.dot_dimension_numbers<[1], [0], [0], [1], [0, 0, 1, 1], [], []>} : vector<256x4xf32>, vector<4x32xf32>, vector<256x32xf32> -> vector<256x32xf32>
    %57 = arith.addf %49, %56 : vector<256x32xf32>
    %c0_25 = arith.constant 0 : index
    %c32 = arith.constant 32 : index
    %c0_26 = arith.constant 0 : index
    %58 = vector.load %arg1[%c0_25, %c32, %c0_26] : memref<1x320x4xf32, #tpu.memory_space<vmem>>, vector<1x256x4xf32>
    %59 = vector.shape_cast %58 : vector<1x256x4xf32> to vector<256x4xf32>
    %c4 = arith.constant 4 : index
    %c0_27 = arith.constant 0 : index
    %c0_28 = arith.constant 0 : index
    %60 = vector.load %arg2[%c4, %c0_27, %c0_28] : memref<9x4x32xf32, #tpu.memory_space<vmem>>, vector<1x4x32xf32>
    %61 = vector.shape_cast %60 : vector<1x4x32xf32> to vector<4x32xf32>
    %cst_29 = arith.constant dense<0.000000e+00> : vector<256x32xf32>
    %62 = tpu.matmul %59, %61, %cst_29 {dimension_numbers = #tpu.dot_dimension_numbers<[1], [0], [0], [1], [0, 0, 1, 1], [], []>} : vector<256x4xf32>, vector<4x32xf32>, vector<256x32xf32> -> vector<256x32xf32>
    %63 = arith.addf %57, %62 : vector<256x32xf32>
    %c0_30 = arith.constant 0 : index
    %c33 = arith.constant 33 : index
    %c0_31 = arith.constant 0 : index
    %64 = vector.load %arg1[%c0_30, %c33, %c0_31] : memref<1x320x4xf32, #tpu.memory_space<vmem>>, vector<1x256x4xf32>
    %65 = vector.shape_cast %64 : vector<1x256x4xf32> to vector<256x4xf32>
    %66 = vector.broadcast %24 : vector<256x1xf32> to vector<256x4xf32>
    %67 = arith.mulf %65, %66 : vector<256x4xf32>
    %c5 = arith.constant 5 : index
    %c0_32 = arith.constant 0 : index
    %c0_33 = arith.constant 0 : index
    %68 = vector.load %arg2[%c5, %c0_32, %c0_33] : memref<9x4x32xf32, #tpu.memory_space<vmem>>, vector<1x4x32xf32>
    %69 = vector.shape_cast %68 : vector<1x4x32xf32> to vector<4x32xf32>
    %cst_34 = arith.constant dense<0.000000e+00> : vector<256x32xf32>
    %70 = tpu.matmul %67, %69, %cst_34 {dimension_numbers = #tpu.dot_dimension_numbers<[1], [0], [0], [1], [0, 0, 1, 1], [], []>} : vector<256x4xf32>, vector<4x32xf32>, vector<256x32xf32> -> vector<256x32xf32>
    %71 = arith.addf %63, %70 : vector<256x32xf32>
    %c0_35 = arith.constant 0 : index
    %c47 = arith.constant 47 : index
    %c0_36 = arith.constant 0 : index
    %72 = vector.load %arg1[%c0_35, %c47, %c0_36] : memref<1x320x4xf32, #tpu.memory_space<vmem>>, vector<1x256x4xf32>
    %73 = vector.shape_cast %72 : vector<1x256x4xf32> to vector<256x4xf32>
    %74 = vector.broadcast %20 : vector<256x1xf32> to vector<256x4xf32>
    %75 = arith.mulf %73, %74 : vector<256x4xf32>
    %c6 = arith.constant 6 : index
    %c0_37 = arith.constant 0 : index
    %c0_38 = arith.constant 0 : index
    %76 = vector.load %arg2[%c6, %c0_37, %c0_38] : memref<9x4x32xf32, #tpu.memory_space<vmem>>, vector<1x4x32xf32>
    %77 = vector.shape_cast %76 : vector<1x4x32xf32> to vector<4x32xf32>
    %cst_39 = arith.constant dense<0.000000e+00> : vector<256x32xf32>
    %78 = tpu.matmul %75, %77, %cst_39 {dimension_numbers = #tpu.dot_dimension_numbers<[1], [0], [0], [1], [0, 0, 1, 1], [], []>} : vector<256x4xf32>, vector<4x32xf32>, vector<256x32xf32> -> vector<256x32xf32>
    %79 = arith.addf %71, %78 : vector<256x32xf32>
    %c0_40 = arith.constant 0 : index
    %c48 = arith.constant 48 : index
    %c0_41 = arith.constant 0 : index
    %80 = vector.load %arg1[%c0_40, %c48, %c0_41] : memref<1x320x4xf32, #tpu.memory_space<vmem>>, vector<1x256x4xf32>
    %81 = vector.shape_cast %80 : vector<1x256x4xf32> to vector<256x4xf32>
    %c7 = arith.constant 7 : index
    %c0_42 = arith.constant 0 : index
    %c0_43 = arith.constant 0 : index
    %82 = vector.load %arg2[%c7, %c0_42, %c0_43] : memref<9x4x32xf32, #tpu.memory_space<vmem>>, vector<1x4x32xf32>
    %83 = vector.shape_cast %82 : vector<1x4x32xf32> to vector<4x32xf32>
    %cst_44 = arith.constant dense<0.000000e+00> : vector<256x32xf32>
    %84 = tpu.matmul %81, %83, %cst_44 {dimension_numbers = #tpu.dot_dimension_numbers<[1], [0], [0], [1], [0, 0, 1, 1], [], []>} : vector<256x4xf32>, vector<4x32xf32>, vector<256x32xf32> -> vector<256x32xf32>
    %85 = arith.addf %79, %84 : vector<256x32xf32>
    %c0_45 = arith.constant 0 : index
    %c49 = arith.constant 49 : index
    %c0_46 = arith.constant 0 : index
    %86 = vector.load %arg1[%c0_45, %c49, %c0_46] : memref<1x320x4xf32, #tpu.memory_space<vmem>>, vector<1x256x4xf32>
    %87 = vector.shape_cast %86 : vector<1x256x4xf32> to vector<256x4xf32>
    %88 = vector.broadcast %24 : vector<256x1xf32> to vector<256x4xf32>
    %89 = arith.mulf %87, %88 : vector<256x4xf32>
    %c8 = arith.constant 8 : index
    %c0_47 = arith.constant 0 : index
    %c0_48 = arith.constant 0 : index
    %90 = vector.load %arg2[%c8, %c0_47, %c0_48] : memref<9x4x32xf32, #tpu.memory_space<vmem>>, vector<1x4x32xf32>
    %91 = vector.shape_cast %90 : vector<1x4x32xf32> to vector<4x32xf32>
    %cst_49 = arith.constant dense<0.000000e+00> : vector<256x32xf32>
    %92 = tpu.matmul %89, %91, %cst_49 {dimension_numbers = #tpu.dot_dimension_numbers<[1], [0], [0], [1], [0, 0, 1, 1], [], []>} : vector<256x4xf32>, vector<4x32xf32>, vector<256x32xf32> -> vector<256x32xf32>
    %93 = arith.addf %85, %92 : vector<256x32xf32>
    %cst_50 = arith.constant 0.000000e+00 : f32
    %94 = vector.broadcast %cst_50 : f32 to vector<256x32xf32>
    %95 = arith.maximumf %93, %94 : vector<256x32xf32>
    %cst_51 = arith.constant 0.000000e+00 : f32
    %96 = vector.broadcast %cst_51 : f32 to vector<32x32xf32>
    %c0_52 = arith.constant 0 : index
    %c0_53 = arith.constant 0 : index
    %97 = vector.load %arg9[%c0_52, %c0_53] : memref<320x32xf32, #tpu.memory_space<vmem>>, vector<32x32xf32>
    tpu.vector_store %arg9[%c0_52, %c0_53], %96 {strides = array<i32>} : memref<320x32xf32, #tpu.memory_space<vmem>>, vector<32x32xf32>,
    %cst_54 = arith.constant 0.000000e+00 : f32
    %98 = vector.broadcast %cst_54 : f32 to vector<32x32xf32>
    %c288 = arith.constant 288 : index
    %c0_55 = arith.constant 0 : index
    %99 = vector.load %arg9[%c288, %c0_55] : memref<320x32xf32, #tpu.memory_space<vmem>>, vector<32x32xf32>
    tpu.vector_store %arg9[%c288, %c0_55], %98 {strides = array<i32>} : memref<320x32xf32, #tpu.memory_space<vmem>>, vector<32x32xf32>,
    %c32_56 = arith.constant 32 : index
    %c0_57 = arith.constant 0 : index
    %100 = vector.load %arg9[%c32_56, %c0_57] : memref<320x32xf32, #tpu.memory_space<vmem>>, vector<256x32xf32>
    tpu.vector_store %arg9[%c32_56, %c0_57], %95 {strides = array<i32>} : memref<320x32xf32, #tpu.memory_space<vmem>>, vector<256x32xf32>,
    %c0_58 = arith.constant 0 : index
    %c0_59 = arith.constant 0 : index
    %101 = vector.load %arg5[%c0_58, %c0_59] : memref<1x32xf32, #tpu.memory_space<vmem>>, vector<1x32xf32>
    %102 = vector.shape_cast %101 : vector<1x32xf32> to vector<1x32xf32>
    %103 = vector.broadcast %102 : vector<1x32xf32> to vector<256x32xf32>
    %c15_60 = arith.constant 15 : index
    %c0_61 = arith.constant 0 : index
    %104 = vector.load %arg9[%c15_60, %c0_61] : memref<320x32xf32, #tpu.memory_space<vmem>>, vector<256x32xf32>
    %105 = vector.broadcast %20 : vector<256x1xf32> to vector<256x32xf32>
    %106 = arith.mulf %104, %105 : vector<256x32xf32>
    %c0_62 = arith.constant 0 : index
    %c0_63 = arith.constant 0 : index
    %c0_64 = arith.constant 0 : index
    %107 = vector.load %arg4[%c0_62, %c0_63, %c0_64] : memref<9x32x32xf32, #tpu.memory_space<vmem>>, vector<1x32x32xf32>
    %108 = vector.shape_cast %107 : vector<1x32x32xf32> to vector<32x32xf32>
    %cst_65 = arith.constant dense<0.000000e+00> : vector<256x32xf32>
    %109 = tpu.matmul %106, %108, %cst_65 {dimension_numbers = #tpu.dot_dimension_numbers<[1], [0], [0], [1], [0, 0, 1, 1], [], []>} : vector<256x32xf32>, vector<32x32xf32>, vector<256x32xf32> -> vector<256x32xf32>
    %110 = arith.addf %103, %109 : vector<256x32xf32>
    %c16_66 = arith.constant 16 : index
    %c0_67 = arith.constant 0 : index
    %111 = vector.load %arg9[%c16_66, %c0_67] : memref<320x32xf32, #tpu.memory_space<vmem>>, vector<256x32xf32>
    %c1_68 = arith.constant 1 : index
    %c0_69 = arith.constant 0 : index
    %c0_70 = arith.constant 0 : index
    %112 = vector.load %arg4[%c1_68, %c0_69, %c0_70] : memref<9x32x32xf32, #tpu.memory_space<vmem>>, vector<1x32x32xf32>
    %113 = vector.shape_cast %112 : vector<1x32x32xf32> to vector<32x32xf32>
    %cst_71 = arith.constant dense<0.000000e+00> : vector<256x32xf32>
    %114 = tpu.matmul %111, %113, %cst_71 {dimension_numbers = #tpu.dot_dimension_numbers<[1], [0], [0], [1], [0, 0, 1, 1], [], []>} : vector<256x32xf32>, vector<32x32xf32>, vector<256x32xf32> -> vector<256x32xf32>
    %115 = arith.addf %110, %114 : vector<256x32xf32>
    %c17_72 = arith.constant 17 : index
    %c0_73 = arith.constant 0 : index
    %116 = vector.load %arg9[%c17_72, %c0_73] : memref<320x32xf32, #tpu.memory_space<vmem>>, vector<256x32xf32>
    %117 = vector.broadcast %24 : vector<256x1xf32> to vector<256x32xf32>
    %118 = arith.mulf %116, %117 : vector<256x32xf32>
    %c2_74 = arith.constant 2 : index
    %c0_75 = arith.constant 0 : index
    %c0_76 = arith.constant 0 : index
    %119 = vector.load %arg4[%c2_74, %c0_75, %c0_76] : memref<9x32x32xf32, #tpu.memory_space<vmem>>, vector<1x32x32xf32>
    %120 = vector.shape_cast %119 : vector<1x32x32xf32> to vector<32x32xf32>
    %cst_77 = arith.constant dense<0.000000e+00> : vector<256x32xf32>
    %121 = tpu.matmul %118, %120, %cst_77 {dimension_numbers = #tpu.dot_dimension_numbers<[1], [0], [0], [1], [0, 0, 1, 1], [], []>} : vector<256x32xf32>, vector<32x32xf32>, vector<256x32xf32> -> vector<256x32xf32>
    %122 = arith.addf %115, %121 : vector<256x32xf32>
    %c31_78 = arith.constant 31 : index
    %c0_79 = arith.constant 0 : index
    %123 = vector.load %arg9[%c31_78, %c0_79] : memref<320x32xf32, #tpu.memory_space<vmem>>, vector<256x32xf32>
    %124 = vector.broadcast %20 : vector<256x1xf32> to vector<256x32xf32>
    %125 = arith.mulf %123, %124 : vector<256x32xf32>
    %c3_80 = arith.constant 3 : index
    %c0_81 = arith.constant 0 : index
    %c0_82 = arith.constant 0 : index
    %126 = vector.load %arg4[%c3_80, %c0_81, %c0_82] : memref<9x32x32xf32, #tpu.memory_space<vmem>>, vector<1x32x32xf32>
    %127 = vector.shape_cast %126 : vector<1x32x32xf32> to vector<32x32xf32>
    %cst_83 = arith.constant dense<0.000000e+00> : vector<256x32xf32>
    %128 = tpu.matmul %125, %127, %cst_83 {dimension_numbers = #tpu.dot_dimension_numbers<[1], [0], [0], [1], [0, 0, 1, 1], [], []>} : vector<256x32xf32>, vector<32x32xf32>, vector<256x32xf32> -> vector<256x32xf32>
    %129 = arith.addf %122, %128 : vector<256x32xf32>
    %c32_84 = arith.constant 32 : index
    %c0_85 = arith.constant 0 : index
    %130 = vector.load %arg9[%c32_84, %c0_85] : memref<320x32xf32, #tpu.memory_space<vmem>>, vector<256x32xf32>
    %c4_86 = arith.constant 4 : index
    %c0_87 = arith.constant 0 : index
    %c0_88 = arith.constant 0 : index
    %131 = vector.load %arg4[%c4_86, %c0_87, %c0_88] : memref<9x32x32xf32, #tpu.memory_space<vmem>>, vector<1x32x32xf32>
    %132 = vector.shape_cast %131 : vector<1x32x32xf32> to vector<32x32xf32>
    %cst_89 = arith.constant dense<0.000000e+00> : vector<256x32xf32>
    %133 = tpu.matmul %130, %132, %cst_89 {dimension_numbers = #tpu.dot_dimension_numbers<[1], [0], [0], [1], [0, 0, 1, 1], [], []>} : vector<256x32xf32>, vector<32x32xf32>, vector<256x32xf32> -> vector<256x32xf32>
    %134 = arith.addf %129, %133 : vector<256x32xf32>
    %c33_90 = arith.constant 33 : index
    %c0_91 = arith.constant 0 : index
    %135 = vector.load %arg9[%c33_90, %c0_91] : memref<320x32xf32, #tpu.memory_space<vmem>>, vector<256x32xf32>
    %136 = vector.broadcast %24 : vector<256x1xf32> to vector<256x32xf32>
    %137 = arith.mulf %135, %136 : vector<256x32xf32>
    %c5_92 = arith.constant 5 : index
    %c0_93 = arith.constant 0 : index
    %c0_94 = arith.constant 0 : index
    %138 = vector.load %arg4[%c5_92, %c0_93, %c0_94] : memref<9x32x32xf32, #tpu.memory_space<vmem>>, vector<1x32x32xf32>
    %139 = vector.shape_cast %138 : vector<1x32x32xf32> to vector<32x32xf32>
    %cst_95 = arith.constant dense<0.000000e+00> : vector<256x32xf32>
    %140 = tpu.matmul %137, %139, %cst_95 {dimension_numbers = #tpu.dot_dimension_numbers<[1], [0], [0], [1], [0, 0, 1, 1], [], []>} : vector<256x32xf32>, vector<32x32xf32>, vector<256x32xf32> -> vector<256x32xf32>
    %141 = arith.addf %134, %140 : vector<256x32xf32>
    %c47_96 = arith.constant 47 : index
    %c0_97 = arith.constant 0 : index
    %142 = vector.load %arg9[%c47_96, %c0_97] : memref<320x32xf32, #tpu.memory_space<vmem>>, vector<256x32xf32>
    %143 = vector.broadcast %20 : vector<256x1xf32> to vector<256x32xf32>
    %144 = arith.mulf %142, %143 : vector<256x32xf32>
    %c6_98 = arith.constant 6 : index
    %c0_99 = arith.constant 0 : index
    %c0_100 = arith.constant 0 : index
    %145 = vector.load %arg4[%c6_98, %c0_99, %c0_100] : memref<9x32x32xf32, #tpu.memory_space<vmem>>, vector<1x32x32xf32>
    %146 = vector.shape_cast %145 : vector<1x32x32xf32> to vector<32x32xf32>
    %cst_101 = arith.constant dense<0.000000e+00> : vector<256x32xf32>
    %147 = tpu.matmul %144, %146, %cst_101 {dimension_numbers = #tpu.dot_dimension_numbers<[1], [0], [0], [1], [0, 0, 1, 1], [], []>} : vector<256x32xf32>, vector<32x32xf32>, vector<256x32xf32> -> vector<256x32xf32>
    %148 = arith.addf %141, %147 : vector<256x32xf32>
    %c48_102 = arith.constant 48 : index
    %c0_103 = arith.constant 0 : index
    %149 = vector.load %arg9[%c48_102, %c0_103] : memref<320x32xf32, #tpu.memory_space<vmem>>, vector<256x32xf32>
    %c7_104 = arith.constant 7 : index
    %c0_105 = arith.constant 0 : index
    %c0_106 = arith.constant 0 : index
    %150 = vector.load %arg4[%c7_104, %c0_105, %c0_106] : memref<9x32x32xf32, #tpu.memory_space<vmem>>, vector<1x32x32xf32>
    %151 = vector.shape_cast %150 : vector<1x32x32xf32> to vector<32x32xf32>
    %cst_107 = arith.constant dense<0.000000e+00> : vector<256x32xf32>
    %152 = tpu.matmul %149, %151, %cst_107 {dimension_numbers = #tpu.dot_dimension_numbers<[1], [0], [0], [1], [0, 0, 1, 1], [], []>} : vector<256x32xf32>, vector<32x32xf32>, vector<256x32xf32> -> vector<256x32xf32>
    %153 = arith.addf %148, %152 : vector<256x32xf32>
    %c49_108 = arith.constant 49 : index
    %c0_109 = arith.constant 0 : index
    %154 = vector.load %arg9[%c49_108, %c0_109] : memref<320x32xf32, #tpu.memory_space<vmem>>, vector<256x32xf32>
    %155 = vector.broadcast %24 : vector<256x1xf32> to vector<256x32xf32>
    %156 = arith.mulf %154, %155 : vector<256x32xf32>
    %c8_110 = arith.constant 8 : index
    %c0_111 = arith.constant 0 : index
    %c0_112 = arith.constant 0 : index
    %157 = vector.load %arg4[%c8_110, %c0_111, %c0_112] : memref<9x32x32xf32, #tpu.memory_space<vmem>>, vector<1x32x32xf32>
    %158 = vector.shape_cast %157 : vector<1x32x32xf32> to vector<32x32xf32>
    %cst_113 = arith.constant dense<0.000000e+00> : vector<256x32xf32>
    %159 = tpu.matmul %156, %158, %cst_113 {dimension_numbers = #tpu.dot_dimension_numbers<[1], [0], [0], [1], [0, 0, 1, 1], [], []>} : vector<256x32xf32>, vector<32x32xf32>, vector<256x32xf32> -> vector<256x32xf32>
    %160 = arith.addf %153, %159 : vector<256x32xf32>
    %cst_114 = arith.constant 0.000000e+00 : f32
    %161 = vector.broadcast %cst_114 : f32 to vector<256x32xf32>
    %162 = arith.maximumf %160, %161 : vector<256x32xf32>
    %c0_115 = arith.constant 0 : index
    %c0_116 = arith.constant 0 : index
    %163 = vector.load %arg6[%c0_115, %c0_116] : memref<32x8xf32, #tpu.memory_space<vmem>>, vector<32x8xf32>
    %cst_117 = arith.constant dense<0.000000e+00> : vector<256x8xf32>
    %164 = tpu.matmul %162, %163, %cst_117 {dimension_numbers = #tpu.dot_dimension_numbers<[1], [0], [0], [1], [0, 0, 1, 1], [], []>} : vector<256x32xf32>, vector<32x8xf32>, vector<256x8xf32> -> vector<256x8xf32>
    %c0_118 = arith.constant 0 : index
    %c0_119 = arith.constant 0 : index
    %165 = vector.load %arg7[%c0_118, %c0_119] : memref<1x8xf32, #tpu.memory_space<vmem>>, vector<1x8xf32>
    %166 = vector.broadcast %165 : vector<1x8xf32> to vector<256x8xf32>
    %167 = arith.addf %164, %166 : vector<256x8xf32>
    %c0_120 = arith.constant 0 : index
    %c0_121 = arith.constant 0 : index
    %c0_122 = arith.constant 0 : index
    %168 = vector.load %arg8[%c0_120, %c0_121, %c0_122] : memref<1x256x8xf32, #tpu.memory_space<vmem>>, vector<1x256x8xf32>
    %169 = vector.shape_cast %168 : vector<1x256x8xf32> to vector<256x8xf32>
    %170 = vector.shape_cast %167 : vector<256x8xf32> to vector<1x256x8xf32>
    tpu.vector_store %arg8[%c0_120, %c0_121, %c0_122], %170 {strides = array<i32>} : memref<1x256x8xf32, #tpu.memory_space<vmem>>, vector<1x256x8xf32>,
    return
  }
  func.func @transform_0(%arg0: i32) -> (i32, i32, i32) {
    %c0_i32 = arith.constant 0 : i32
    %c0_i32_0 = arith.constant 0 : i32
    %c0_i32_1 = arith.constant 0 : i32
    return %arg0, %c0_i32, %c0_i32_0 : i32, i32, i32
  }
  func.func @transform_1(%arg0: i32) -> (i32, i32, i32) {
    %c0_i32 = arith.constant 0 : i32
    %c0_i32_0 = arith.constant 0 : i32
    %c0_i32_1 = arith.constant 0 : i32
    %c0_i32_2 = arith.constant 0 : i32
    return %c0_i32, %c0_i32_0, %c0_i32_1 : i32, i32, i32
  }
  func.func @transform_2(%arg0: i32) -> (i32, i32) {
    %c0_i32 = arith.constant 0 : i32
    %c0_i32_0 = arith.constant 0 : i32
    %c0_i32_1 = arith.constant 0 : i32
    return %c0_i32, %c0_i32_0 : i32, i32
  }
  func.func @transform_3(%arg0: i32) -> (i32, i32, i32) {
    %c0_i32 = arith.constant 0 : i32
    %c0_i32_0 = arith.constant 0 : i32
    %c0_i32_1 = arith.constant 0 : i32
    %c0_i32_2 = arith.constant 0 : i32
    return %c0_i32, %c0_i32_0, %c0_i32_1 : i32, i32, i32
  }
  func.func @transform_4(%arg0: i32) -> (i32, i32) {
    %c0_i32 = arith.constant 0 : i32
    %c0_i32_0 = arith.constant 0 : i32
    %c0_i32_1 = arith.constant 0 : i32
    return %c0_i32, %c0_i32_0 : i32, i32
  }
  func.func @transform_5(%arg0: i32) -> (i32, i32) {
    %c0_i32 = arith.constant 0 : i32
    %c0_i32_0 = arith.constant 0 : i32
    %c0_i32_1 = arith.constant 0 : i32
    return %c0_i32, %c0_i32_0 : i32, i32
  }
  func.func @transform_6(%arg0: i32) -> (i32, i32) {
    %c0_i32 = arith.constant 0 : i32
    %c0_i32_0 = arith.constant 0 : i32
    %c0_i32_1 = arith.constant 0 : i32
    return %c0_i32, %c0_i32_0 : i32, i32
  }
  func.func @transform_7(%arg0: i32) -> (i32, i32, i32) {
    %c0_i32 = arith.constant 0 : i32
    %c0_i32_0 = arith.constant 0 : i32
    %c0_i32_1 = arith.constant 0 : i32
    return %arg0, %c0_i32, %c0_i32_0 : i32, i32, i32
  }
}

</mosaic_0001>

<bundles_post_ra>
// kernel: point_head_forward.1
= control target key start
LH: loop header
LB: loop body
LE: loop exit
PB: predicated region body
PF: predicated region fallthrough
CT: control target
= control target key end

     0   :  { %s7460_s24 = smov 0   ;;  %s10583_s0 = inlined_call_operand.vmem [shape: f32[2,320,4], index: 0, kind: input, shape index: {}]   ;;  %s10584_s1 = inlined_call_operand.vmem [shape: f32[9,4,32], index: 1, kind: input, shape index: {}]   ;;  %s10585_s2 = inlined_call_operand.vmem [shape: f32[1,32], index: 2, kind: input, shape index: {}]   ;;  %s10586_s3 = inlined_call_operand.vmem [shape: f32[9,32,32], index: 3, kind: input, shape index: {}]   ;;  %s10587_s4 = inlined_call_operand.vmem [shape: f32[1,32], index: 4, kind: input, shape index: {}]   ;;  %s10588_s5 = inlined_call_operand.vmem [shape: f32[32,8], index: 5, kind: input, shape index: {}]   ;;  %s10589_s6 = inlined_call_operand.vmem [shape: f32[1,8], index: 6, kind: input, shape index: {}]   ;;  %s10590_s7 = inlined_call_operand.vmem [shape: f32[2,256,8], index: 7, kind: output, shape index: {}]  }
   0x1 LB: > { %s6694_s25 = sadd.s32 4294967295, %s7417_s24   ;;  %p6698_p0 = scmp.ge.s32.totalorder %s7417_s24, 1  ;;  %s7417_s24 = sphi %s7460_s24, %s17_s24  }
   0x2   : > { %p237_p1 = scmp.lt.s32.totalorder %s7417_s24, 3 }
   0x4   : > { %p238_p2 = pnand %p6698_p0, %p237_p1 }
   0x6   : > { %241 = sbr.rel (%p238_p2) target bundleno = 1630 (0x65e), region = 48 }
   0xb   : > { %v956_v0 = vld [vmem:[%s10584_s1] sm:$0xf]  ;;  %vm1054_vm0 = vcmask 1043456   ;;  %p269_p3 = scmp.lt.s32.totalorder %s6694_s25, 1  ;;  %v279_v1 = vlaneseq  ;;  %v6767_v2 = vld [vmem:[%s10584_s1 + $0x4] sm:$0xf] }
   0xc   : > { %6734 = vmatpush.msk.msra.mxu0 %vm1054_vm0, %v956_v0  ;;  %7394 = vmatpush.msk.msra.mxu3 %vm1054_vm0, %v956_v0  ;;  %v6801_v3 = vld [vmem:[%s10584_s1 + $0x8] sm:$0xf]  ;;  %v6869_v4 = vld [vmem:[%s10584_s1 + $0x10] sm:$0xf]  ;;  %v10593_v11 = vmov 0.0   ;;  %vm957_vm2 = vcmask 31744  }
   0xd   : > { %s11154_s25 = smov (!%p269_p3, %s6694_s25), 1  ;;  %v7484_v5 = vshrl.u32 %v279_v1, 7  ;;  %6802 = vmatpush.msk.msra.mxu2 %vm1054_vm0, %v6801_v3  ;;  %6768 = vmatpush.msk.msra.mxu1 %vm1054_vm0, %v6767_v2 }
   0xe   : > { %7395 = vmatpush.msk.msrb.mxu3 %vm1054_vm0, %v6767_v2  ;;  %6870 = vmatpush.msk.msrb.mxu0 %vm1054_vm0, %v6869_v4  ;;  %s7397_s11 = smul.u32 320, %s11154_s25  ;;  %s7393_s30 = sshll.u32 %s11154_s25, 8 }
   0xf   : > { %v316_v6 = vand.u32 15, %v7484_v5  ;;  %v304_v7 = vadd.s32 192, %v7484_v5  ;;  %v281_v8 = vadd.s32 8, %v7484_v5  ;;  %v282_v18 = vadd.s32 16, %v7484_v5  ;;  %s10427_s12 = scalar_lea.vmem %s10590_s7, %s7393_s30 }
  0x10   : > { %s7497_s14 = scalar_lea.vmem %s10583_s0, %s7397_s11  ;;  %v306_v23 = vadd.s32 208, %v7484_v5  ;;  %v283_v29 = vadd.s32 24, %v7484_v5  ;;  %v284_v40 = vadd.s32 32, %v7484_v5  ;;  %v308_v43 = vadd.s32 224, %v7484_v5 }
  0x11   : > { %vm696_vm1 = vcmp.ne.s32.totalorder %v316_v6, 0  ;;  %v484_v9 = vand.u32 15, %v304_v7  ;;  %v323_v10 = vand.u32 15, %v281_v8  ;;  %v892_v13 = vld [vmem:[%s7497_s14 + $0xf] sm:$0xff]  ;;  %v1482_v22 = vld [vmem:[%s7497_s14 + $0x19] sm:$0xff]  ;;  %v330_v24 = vand.u32 15, %v282_v18 }
  0x12   : > { %v7500_v12 = vsel %vm696_vm1, 1.0, %v10593_v11  ;;  %v916_v14 = vld [vmem:[%s7497_s14 + $0xcf] sm:$0xff]  ;;  %v498_v26 = vand.u32 15, %v306_v23  ;;  %v1204_v27 = vld [vmem:[%s7497_s14 + $0x18] sm:$0xff]  ;;  %v337_v33 = vand.u32 15, %v283_v29  ;;  %v7544_v37 = vld [vmem:[%s7497_s14 + $0x21] sm:$0xff] }
  0x13   : > { %10735 = vst [vmem:[#allocation3_spill] sm:$0xff] %v7500_v12  ;;  %v924_v15 = vmul.f32 %v7500_v12, %v892_v13  ;;  %vm720_vm3 = vcmp.ne.s32.totalorder %v484_v9, 0  ;;  %v1481_v16 = vld [vmem:[%s7497_s14 + $0x11] sm:$0xff]  ;;  %vm793_vm4 = vcmp.ne.s32.totalorder %v323_v10, 15  ;;  %vm698_vm5 = vcmp.ne.s32.totalorder %v330_v24, 0  ;;  %v7534_v32 = vld [vmem:[%s7497_s14 + $0x1f] sm:$0xff] }
  0x14   : > { %v1203_v17 = vld [vmem:[%s7497_s14 + $0x10] sm:$0xff]  ;;  %v7509_v19 = vsel %vm720_vm3, 1.0, %v10593_v11  ;;  %6803 = vmatmul.msk.f32.vlgmr.msra.gmra.mxu2 %vm957_vm2, %v1481_v16  ;;  %v7516_v21 = vsel %vm793_vm4, 1.0, %v10593_v11  ;;  %vm722_vm6 = vcmp.ne.s32.totalorder %v498_v26, 0  ;;  %v7531_v31 = vsel %vm698_vm5, 1.0, %v10593_v11  ;;  %v918_v35 = vld [vmem:[%s7497_s14 + $0xdf] sm:$0xff] }
  0x15   : > { %10736 = vst [vmem:[#allocation4_spill] sm:$0xff] %v7509_v19  ;;  %6769 = vmatmul.msk.f32.vlgmr.msra.gmra.mxu1 %vm957_vm2, %v1203_v17  ;;  %6735 = vmatmul.msk.f32.vlgmr.msra.gmra.mxu0 %vm957_vm2, %v924_v15  ;;  %v948_v20 = vmul.f32 %v7509_v19, %v916_v14  ;;  %v1514_v25 = vmul.f32 %v7516_v21, %v1482_v22  ;;  %v893_v28 = vld [vmem:[%s7497_s14 + $0x17] sm:$0xff]  ;;  %v7538_v34 = vsel %vm722_vm6, 1.0, %v10593_v11  ;;  %v7547_v38 = vld [vmem:[%s7497_s14 + $0x20] sm:$0xff]  ;;  %vm795_vm7 = vcmp.ne.s32.totalorder %v337_v33, 15  ;;  %v7560_v42 = vld [vmem:[%s7497_s14 + $0x29] sm:$0xff] }
  0x16   : > { %10737 = vst [vmem:[#allocation5_spill] sm:$0xff] %v7516_v21  ;;  %v917_v30 = vld [vmem:[%s7497_s14 + $0xd7] sm:$0xff]  ;;  %v926_v36 = vmul.f32 %v7531_v31, %v7534_v32  ;;  %v950_v39 = vmul.f32 %v7538_v34, %v918_v35  ;;  %v7557_v41 = vsel %vm795_vm7, 1.0, %v10593_v11  ;;  %v344_v44 = vand.u32 15, %v284_v40  ;;  %v7567_v47 = vld [vmem:[%s7497_s14 + $0x28] sm:$0xff]  ;;  %v7632_v9 = vld [vmem:[%s7497_s14 + $0x3f] sm:$0xff] }
  0x17   : > { %6759 = vmatmul.msk.f32.vlgmr.msra.gmra.mxu3 %vm957_vm2, %v948_v20  ;;  %10738 = vst [vmem:[#allocation6_spill] sm:$0xff] %v7531_v31  ;;  %v1516_v45 = vmul.f32 %v7557_v41, %v7560_v42  ;;  %v512_v46 = vand.u32 15, %v308_v43  ;;  %v7570_v48 = vld [vmem:[%s7497_s14 + $0x27] sm:$0xff]  ;;  %v285_v49 = vadd.s32 40, %v7484_v5  ;;  %v7583_v52 = vld [vmem:[%s7497_s14 + $0x2f] sm:$0xff]  ;;  %v286_v60 = vadd.s32 48, %v7484_v5 }
  0x18   : > { %7396 = vmatpush.msk.msra.mxu3 %vm1054_vm0, %v6801_v3  ;;  %10739 = vst [vmem:[#allocation7_spill] sm:$0xff] %v7538_v34  ;;  %vm700_vm8 = vcmp.ne.s32.totalorder %v344_v44, 0  ;;  %v919_v50 = vld [vmem:[%s7497_s14 + $0xe7] sm:$0xff]  ;;  %v920_v55 = vld [vmem:[%s7497_s14 + $0xef] sm:$0xff]  ;;  %v7609_v62 = vld [vmem:[%s7497_s14 + $0x39] sm:$0xff]  ;;  %v310_v63 = vadd.s32 240, %v7484_v5 }
  0x19   : > { %10740 = vst [vmem:[#allocation8_spill] sm:$0xff] %v7557_v41  ;;  %vm724_vm9 = vcmp.ne.s32.totalorder %v512_v46, 0  ;;  %v7580_v51 = vsel %vm700_vm8, 1.0, %v10593_v11  ;;  %v351_v53 = vand.u32 15, %v285_v49  ;;  %v7593_v57 = vld [vmem:[%s7497_s14 + $0x31] sm:$0xff]  ;;  %v358_v0 = vand.u32 15, %v286_v60 }
  0x1a   : > { %10741 = vst [vmem:[#allocation9_spill] sm:$0xff] %v7580_v51  ;;  %v7587_v54 = vsel %vm724_vm9, 1.0, %v10593_v11  ;;  %v928_v56 = vmul.f32 %v7580_v51, %v7583_v52  ;;  %v7596_v58 = vld [vmem:[%s7497_s14 + $0x30] sm:$0xff]  ;;  %v526_v2 = vand.u32 15, %v310_v63  ;;  %v7616_v3 = vld [vmem:[%s7497_s14 + $0x38] sm:$0xff]  ;;  %v287_v6 = vadd.s32 56, %v7484_v5 }
  0x1b   : > { %10742 = vst [vmem:[#allocation10_spill] sm:$0xff] %v7587_v54  ;;  %vm797_vm10 = vcmp.ne.s32.totalorder %v351_v53, 15  ;;  %v952_v59 = vmul.f32 %v7587_v54, %v920_v55  ;;  %v7619_v4 = vld [vmem:[%s7497_s14 + $0x37] sm:$0xff]  ;;  %vm702_vm11 = vcmp.ne.s32.totalorder %v358_v0, 0  ;;  %v922_v14 = vld [vmem:[%s7497_s14 + $0xff] sm:$0xff]  ;;  %v288_v20 = vadd.s32 64, %v7484_v5 }
  0x1c   : > { %6804 = vmatmul.msk.f32.gmra.mxu2 %vm957_vm2, %v1514_v25  ;;  %v7606_v61 = vsel %vm797_vm10, 1.0, %v10593_v11  ;;  %v921_v7 = vld [vmem:[%s7497_s14 + $0xf7] sm:$0xff]  ;;  %vm726_vm12 = vcmp.ne.s32.totalorder %v526_v2, 0  ;;  %v7629_v8 = vsel %vm702_vm11, 1.0, %v10593_v11  ;;  %v365_v10 = vand.u32 15, %v287_v6  ;;  %v7642_v16 = vld [vmem:[%s7497_s14 + $0x41] sm:$0xff] }
  0x1d   : > { %6770 = vmatmul.msk.f32.gmra.mxu1 %vm957_vm2, %v1204_v27  ;;  %6736 = vmatmul.msk.f32.gmra.mxu0 %vm957_vm2, %v893_v28  ;;  %10743 = vst [vmem:[#allocation11_spill] sm:$0xff] %v7606_v61  ;;  %v1518_v1 = vmul.f32 %v7606_v61, %v7609_v62  ;;  %v7636_v13 = vsel %vm726_vm12, 1.0, %v10593_v11  ;;  %v930_v15 = vmul.f32 %v7629_v8, %v7632_v9  ;;  %v7645_v17 = vld [vmem:[%s7497_s14 + $0x40] sm:$0xff]  ;;  %v7658_v23 = vld [vmem:[%s7497_s14 + $0x49] sm:$0xff]  ;;  %v372_v24 = vand.u32 15, %v288_v20  ;;  %v7708_v53 = vld [vmem:[%s7497_s14 + $0x58] sm:$0xff] }
  0x1e   : > { %10744 = vst [vmem:[#allocation12_spill] sm:$0xff] %v7629_v8  ;;  %vm799_vm13 = vcmp.ne.s32.totalorder %v365_v10, 15  ;;  %v954_v18 = vmul.f32 %v7636_v13, %v922_v14  ;;  %v7664_v26 = vld [vmem:[%s7497_s14 + $0x48] sm:$0xff]  ;;  %v289_v28 = vadd.s32 72, %v7484_v5  ;;  %v7689_v40 = vld [vmem:[%s7497_s14 + $0x50] sm:$0xff]  ;;  %v290_v43 = vadd.s32 80, %v7484_v5 }
  0x1f   : > { %6760 = vmatmul.msk.f32.gmra.mxu3 %vm957_vm2, %v917_v30  ;;  %10745 = vst [vmem:[#allocation13_spill] sm:$0xff] %v7636_v13  ;;  %v7655_v22 = vsel %vm799_vm13, 1.0, %v10593_v11  ;;  %v7667_v27 = vld [vmem:[%s7497_s14 + $0x47] sm:$0xff]  ;;  %vm704_vm14 = vcmp.ne.s32.totalorder %v372_v24, 0  ;;  %v7680_v33 = vld [vmem:[%s7497_s14 + $0x4f] sm:$0xff]  ;;  %v7702_v46 = vld [vmem:[%s7497_s14 + $0x59] sm:$0xff] }
  0x20   : > { %10746 = vst [vmem:[#allocation14_spill] sm:$0xff] %v7655_v22  ;;  %v1520_v25 = vmul.f32 %v7655_v22, %v7658_v23  ;;  %v923_v29 = vld [vmem:[%s7497_s14 + $0x107] sm:$0xff]  ;;  %v7677_v30 = vsel %vm704_vm14, 1.0, %v10593_v11  ;;  %v379_v35 = vand.u32 15, %v289_v28  ;;  %v1227_v44 = vld [vmem:[%s7497_s14 + $0xd0] sm:$0xff]  ;;  %v386_v49 = vand.u32 15, %v290_v43 }
  0x21   : > { %10747 = vst [vmem:[#allocation15_spill] sm:$0xff] %v7677_v30  ;;  %v7711_v55 = vld [vmem:[%s7497_s14 + $0x57] sm:$0xff]  ;;  %v7724_v63 = vld [vmem:[%s7497_s14 + $0x5f] sm:$0xff]  ;;  %v7752_v24 = vld [vmem:[%s7497_s14 + $0x68] sm:$0xff]  ;;  %v293_v28 = vadd.s32 104, %v7484_v5 }
  0x22   : > { %vm801_vm15 = vcmp.ne.s32.totalorder %v379_v35, 15  ;;  %vm706_vm1 = vcmp.ne.s32.totalorder %v386_v49, 0  ;;  %v7730_v2 = vld [vmem:[%s7497_s14 + $0x61] sm:$0xff]  ;;  %10751 = vst [vmem:[#allocation19_spill] sm:$0xff] %v7752_v24  ;;  %v7774_v49 = vld [vmem:[%s7497_s14 + $0x71] sm:$0xff]  ;;  %v7842_v54 = vld [vmem:[%s7497_s14 + $0x89] sm:$0xff] }
  0x23   : > { %v7721_v60 = vsel %vm706_vm1, 1.0, %v10593_v11  ;;  %v7733_v6 = vld [vmem:[%s7497_s14 + $0x60] sm:$0xff]  ;;  %v407_v43 = vand.u32 15, %v293_v28  ;;  %10753 = vst [vmem:[#allocation21_spill] sm:$0xff] %v7774_v49  ;;  %v7803_v28 = vld [vmem:[%s7497_s14 + $0x77] sm:$0xff]  ;;  %v7848_v19 = vld [vmem:[%s7497_s14 + $0x88] sm:$0xff] }
  0x24   : > { %6805 = vmatmul.msk.f32.gmra.mxu2 %vm957_vm2, %v7544_v37  ;;  %10749 = vst [vmem:[#allocation17_spill] sm:$0xff] %v7721_v60  ;;  %v1229_v10 = vld [vmem:[%s7497_s14 + $0xe0] sm:$0xff] }
  0x25   : > { %6771 = vmatmul.msk.f32.gmra.mxu1 %vm957_vm2, %v7547_v38  ;;  %6737 = vmatmul.msk.f32.gmra.mxu0 %vm957_vm2, %v926_v36  ;;  %v932_v36 = vmul.f32 %v7677_v30, %v7680_v33  ;;  %vm805_vm5 = vcmp.ne.s32.totalorder %v407_v43, 15  ;;  %10758 = vst [vmem:[#allocation26_spill] sm:$0xff] %v7803_v28  ;;  %v6903_v43 = vld [vmem:[%s10584_s1 + $0x14] sm:$0xf]  ;;  %v7829_v13 = vld [vmem:[%s7497_s14 + $0x80] sm:$0xff] }
  0x26   : > { %6904 = vmatpush.msk.msrb.mxu1 %vm1054_vm0, %v6903_v43  ;;  %10762 = vst [vmem:[#allocation30_spill] sm:$0xff] %v7829_v13  ;;  %v296_v43 = vadd.s32 128, %v7484_v5 }
  0x27   : > { %6761 = vmatmul.msk.f32.gmra.mxu3 %vm957_vm2, %v950_v39  ;;  %v7686_v39 = vld [vmem:[%s7497_s14 + $0x51] sm:$0xff]  ;;  %10765 = vst [vmem:[#allocation32_spill] sm:$0xff] %v7842_v54 }
  0x28   : > { %10766 = vst [vmem:[#allocation33_spill] sm:$0xff] %v7848_v19 }
  0x2c   : > { %6806 = vmatmul.msk.f32.gmra.mxu2 %vm957_vm2, %v1516_v45  ;;  %v7699_v45 = vsel %vm801_vm15, 1.0, %v10593_v11 }
  0x2d   : > { %6772 = vmatmul.msk.f32.gmra.mxu1 %vm957_vm2, %v7567_v47  ;;  %6738 = vmatmul.msk.f32.gmra.mxu0 %vm957_vm2, %v7570_v48  ;;  %10748 = vst [vmem:[#allocation16_spill] sm:$0xff] %v7699_v45 }
  0x2f   : > { %6762 = vmatmul.msk.f32.gmra.mxu3 %vm957_vm2, %v919_v50  ;;  %v1522_v50 = vmul.f32 %v7699_v45, %v7702_v46 }
  0x34   : > { %6807 = vmatmul.msk.f32.gmra.mxu2 %vm957_vm2, %v7593_v57 }
  0x35   : > { %6773 = vmatmul.msk.f32.gmra.mxu1 %vm957_vm2, %v7596_v58  ;;  %6739 = vmatmul.msk.f32.gmra.mxu0 %vm957_vm2, %v928_v56  ;;  %v291_v56 = vadd.s32 88, %v7484_v5 }
  0x37   : > { %6763 = vmatmul.msk.f32.gmra.mxu3 %vm957_vm2, %v952_v59  ;;  %v1228_v59 = vld [vmem:[%s7497_s14 + $0xd8] sm:$0xff]  ;;  %v393_v0 = vand.u32 15, %v291_v56  ;;  %v294_v56 = vadd.s32 112, %v7484_v5 }
  0x39   : > { %vm803_vm3 = vcmp.ne.s32.totalorder %v393_v0, 15  ;;  %v7787_v0 = vsel %vm805_vm5, 1.0, %v10593_v11  ;;  %vm3619_vm5 = vcmask 261120  }
  0x3a   : > { %v7743_v14 = vsel %vm803_vm3, 1.0, %v10593_v11  ;;  %10755 = vst [vmem:[#allocation23_spill] sm:$0xff] %v7787_v0 }
  0x3b   : > { %10750 = vst [vmem:[#allocation18_spill] sm:$0xff] %v7743_v14 }
  0x3c   : > { %6808 = vmatmul.msk.f32.gmra.mxu2 %vm957_vm2, %v1518_v1  ;;  %v934_v1 = vmul.f32 %v7721_v60, %v7724_v63  ;;  %v7969_v60 = vld [vmem:[%s7497_s14 + $0xa7] sm:$0xff] }
  0x3d   : > { %6774 = vmatmul.msk.f32.gmra.mxu1 %vm957_vm2, %v7616_v3  ;;  %6740 = vmatmul.msk.f32.gmra.mxu0 %vm957_vm2, %v7619_v4  ;;  %10788 = vst [vmem:[#allocation55_spill] sm:$0xff] %v7969_v60 }
  0x3f   : > { %6764 = vmatmul.msk.f32.gmra.mxu3 %vm957_vm2, %v921_v7  ;;  %v292_v7 = vadd.s32 96, %v7484_v5 }
  0x44   : > { %6809 = vmatmul.msk.f32.gmra.mxu2 %vm957_vm2, %v7642_v16 }
  0x45   : > { %6775 = vmatmul.msk.f32.gmra.mxu1 %vm957_vm2, %v7645_v17  ;;  %6741 = vmatmul.msk.f32.gmra.mxu0 %vm957_vm2, %v930_v15  ;;  %v7746_v15 = vld [vmem:[%s7497_s14 + $0x69] sm:$0xff] }
  0x46   : > { %v1524_v20 = vmul.f32 %v7743_v14, %v7746_v15 }
  0x47   : > { %6765 = vmatmul.msk.f32.gmra.mxu3 %vm957_vm2, %v954_v18  ;;  %v400_v18 = vand.u32 15, %v292_v7  ;;  %v414_v7 = vand.u32 15, %v294_v56 }
  0x49   : > { %vm708_vm4 = vcmp.ne.s32.totalorder %v400_v18, 0  ;;  %vm710_vm6 = vcmp.ne.s32.totalorder %v414_v7, 0 }
  0x4a   : > { %v7765_v35 = vsel %vm708_vm4, 1.0, %v10593_v11  ;;  %v7817_v56 = vsel %vm710_vm6, 1.0, %v10593_v11  ;;  %v1233_v11 = vld [vmem:[%s7497_s14 + $0x100] sm:$0xff] }
  0x4b   : > { %10752 = vst [vmem:[#allocation20_spill] sm:$0xff] %v7765_v35 }
  0x4c   : > { %6810 = vmatmul.msk.f32.gmra.mxu2 %vm957_vm2, %v1520_v25  ;;  %v7755_v25 = vld [vmem:[%s7497_s14 + $0x67] sm:$0xff]  ;;  %10759 = vst [vmem:[#allocation27_spill] sm:$0xff] %v7817_v56 }
  0x4d   : > { %6776 = vmatmul.msk.f32.gmra.mxu1 %vm957_vm2, %v7664_v26  ;;  %6742 = vmatmul.msk.f32.gmra.mxu0 %vm957_vm2, %v7667_v27 }
  0x4f   : > { %6766 = vmatmul.msk.f32.gmra.mxu3 %vm957_vm2, %v923_v29  ;;  %v1230_v29 = vld [vmem:[%s7497_s14 + $0xe8] sm:$0xff] }
  0x54   : > { %6811 = vmatmul.msk.f32.gmra.mxu2 %vm957_vm2, %v7686_v39 }
  0x55   : > { %6777 = vmatmul.msk.f32.gmra.mxu1 %vm957_vm2, %v7689_v40  ;;  %6743 = vmatmul.msk.f32.gmra.mxu0 %vm957_vm2, %v932_v36  ;;  %v7768_v36 = vld [vmem:[%s7497_s14 + $0x6f] sm:$0xff] }
  0x57   : > { %6793 = vmatmul.msk.f32.vlgmr.msrb.gmra.mxu3 %vm957_vm2, %v1227_v44  ;;  %v936_v44 = vmul.f32 %v7765_v35, %v7768_v36  ;;  %v7879_v35 = vld [vmem:[%s7497_s14 + $0x90] sm:$0xff] }
  0x58   : > { %10771 = vst [vmem:[#allocation38_spill] sm:$0xff] %v7879_v35 }
  0x5c   : > { %6812 = vmatmul.msk.f32.gmra.mxu2 %vm957_vm2, %v1522_v50  ;;  %v7777_v50 = vld [vmem:[%s7497_s14 + $0x70] sm:$0xff] }
  0x5d   : > { %6778 = vmatmul.msk.f32.gmra.mxu1 %vm957_vm2, %v7708_v53  ;;  %6744 = vmatmul.msk.f32.gmra.mxu0 %vm957_vm2, %v7711_v55  ;;  %10754 = vst [vmem:[#allocation22_spill] sm:$0xff] %v7777_v50 }
  0x5f   : > { %6794 = vmatmul.msk.f32.gmra.mxu3 %vm957_vm2, %v1228_v59  ;;  %v1231_v59 = vld [vmem:[%s7497_s14 + $0xf0] sm:$0xff] }
  0x64   : > { %6813 = vmatmul.msk.f32.gmra.mxu2 %vm957_vm2, %v7730_v2 }
  0x65   : > { %6779 = vmatmul.msk.f32.gmra.mxu1 %vm957_vm2, %v7733_v6  ;;  %6745 = vmatmul.msk.f32.gmra.mxu0 %vm957_vm2, %v934_v1  ;;  %v7790_v1 = vld [vmem:[%s7497_s14 + $0x79] sm:$0xff] }
  0x66   : > { %10756 = vst [vmem:[#allocation24_spill] sm:$0xff] %v7790_v1  ;;  %v1526_v18 = vmul.f32 %v7787_v0, %v7790_v1  ;;  %v297_v0 = vadd.s32 136, %v7484_v5 }
  0x67   : > { %6795 = vmatmul.msk.f32.gmra.mxu3 %vm957_vm2, %v1229_v10  ;;  %v6835_v10 = vld [vmem:[%s10584_s1 + $0xc] sm:$0xf] }
  0x68   : > { %6836 = vmatpush.msk.msrb.mxu3 %vm1054_vm0, %v6835_v10 }
  0x6c   : > { %6814 = vmatmul.msk.f32.gmra.mxu2 %vm957_vm2, %v1524_v20  ;;  %v7800_v20 = vld [vmem:[%s7497_s14 + $0x78] sm:$0xff] }
  0x6d   : > { %6780 = vmatmul.msk.f32.gmra.mxu1 %vm957_vm2, %v7752_v24  ;;  %6746 = vmatmul.msk.f32.gmra.mxu0 %vm957_vm2, %v7755_v25  ;;  %10757 = vst [vmem:[#allocation25_spill] sm:$0xff] %v7800_v20  ;;  %v303_v24 = vadd.s32 184, %v7484_v5 }
  0x6f   : > { %6796 = vmatmul.msk.f32.gmra.mxu3 %vm957_vm2, %v1230_v29  ;;  %v295_v29 = vadd.s32 120, %v7484_v5 }
  0x71   : > { %v421_v7 = vand.u32 15, %v295_v29  ;;  %v10763_v29 = vmov 0.0  }
  0x73   : > { %vm807_vm7 = vcmp.ne.s32.totalorder %v421_v7, 15  ;;  %v428_v7 = vand.u32 15, %v296_v43 }
  0x74   : > { %6815 = vmatmul.msk.f32.gmra.mxu2 %vm957_vm2, %v7774_v49 }
  0x75   : > { %6781 = vmatmul.msk.f32.gmra.mxu1 %vm957_vm2, %v7777_v50  ;;  %6747 = vmatmul.msk.f32.gmra.mxu0 %vm957_vm2, %v936_v44  ;;  %v1232_v44 = vld [vmem:[%s7497_s14 + $0xf8] sm:$0xff]  ;;  %vm712_vm8 = vcmp.ne.s32.totalorder %v428_v7, 0 }
  0x76   : > { %v7862_v43 = vsel %vm712_vm8, 1.0, %v10763_v29  ;;  %v7910_v50 = vld [vmem:[%s7497_s14 + $0x97] sm:$0xff] }
  0x77   : > { %6797 = vmatmul.msk.f32.gmra.mxu3 %vm957_vm2, %v1231_v59  ;;  %v7820_v59 = vld [vmem:[%s7497_s14 + $0x7f] sm:$0xff]  ;;  %10768 = vst [vmem:[#allocation35_spill] sm:$0xff] %v7862_v43 }
  0x78   : > { %10760 = vst [vmem:[#allocation28_spill] sm:$0xff] %v7820_v59  ;;  %v938_v10 = vmul.f32 %v7817_v56, %v7820_v59  ;;  %v7851_v56 = vld [vmem:[%s7497_s14 + $0x87] sm:$0xff] }
  0x79   : > { %10767 = vst [vmem:[#allocation34_spill] sm:$0xff] %v7851_v56 }
  0x7a   : > { %10777 = vst [vmem:[#allocation44_spill] sm:$0xff] %v7910_v50 }
  0x7c   : > { %6816 = vmatmul.msk.f32.gmra.mxu2 %vm957_vm2, %v1526_v18  ;;  %v7826_v18 = vld [vmem:[%s7497_s14 + $0x81] sm:$0xff] }
  0x7d   : > { %6782 = vmatmul.msk.f32.gmra.mxu1 %vm957_vm2, %v7800_v20  ;;  %6748 = vmatmul.msk.f32.gmra.mxu0 %vm957_vm2, %v7803_v28  ;;  %10761 = vst [vmem:[#allocation29_spill] sm:$0xff] %v7826_v18 }
  0x7f   : > { %6798 = vmatmul.msk.f32.gmra.mxu3 %vm957_vm2, %v1232_v44  ;;  %v7839_v44 = vsel %vm807_vm7, 1.0, %v10763_v29 }
  0x80   : > { %10764 = vst [vmem:[#allocation31_spill] sm:$0xff] %v7839_v44  ;;  %v1528_v34 = vmul.f32 %v7839_v44, %v7842_v54  ;;  %v7865_v44 = vld [vmem:[%s7497_s14 + $0x8f] sm:$0xff]  ;;  %v435_v54 = vand.u32 15, %v297_v0 }
  0x81   : > { %10769 = vst [vmem:[#allocation36_spill] sm:$0xff] %v7865_v44  ;;  %v940_v7 = vmul.f32 %v7862_v43, %v7865_v44 }
  0x82   : > { %vm809_vm9 = vcmp.ne.s32.totalorder %v435_v54, 15  ;;  %v7893_v54 = vld [vmem:[%s7497_s14 + $0x99] sm:$0xff] }
  0x83   : > { %v7890_v43 = vsel %vm809_vm9, 1.0, %v10763_v29  ;;  %10773 = vst [vmem:[#allocation40_spill] sm:$0xff] %v7893_v54 }
  0x84   : > { %6817 = vmatmul.msk.f32.gmra.mxu2 %vm957_vm2, %v7826_v18  ;;  %10772 = vst [vmem:[#allocation39_spill] sm:$0xff] %v7890_v43 }
  0x85   : > { %6783 = vmatmul.msk.f32.gmra.mxu1 %vm957_vm2, %v7829_v13  ;;  %6749 = vmatmul.msk.f32.gmra.mxu0 %vm957_vm2, %v938_v10  ;;  %v1234_v10 = vld [vmem:[%s7497_s14 + $0x108] sm:$0xff] }
  0x87   : > { %6799 = vmatmul.msk.f32.gmra.mxu3 %vm957_vm2, %v1233_v11  ;;  %v305_v11 = vadd.s32 200, %v7484_v5 }
  0x89   : > { %v491_v18 = vand.u32 15, %v305_v11 }
  0x8b   : > { %vm817_vm10 = vcmp.ne.s32.totalorder %v491_v18, 15  ;;  %v7905_v18 = vld [vmem:[%s7497_s14 + $0x98] sm:$0xff] }
  0x8c   : > { %6818 = vmatmul.msk.f32.gmra.mxu2 %vm957_vm2, %v1528_v34  ;;  %v7871_v34 = vld [vmem:[%s10585_s2] ss:$0 sm:$0xff]  ;;  %v7897_v14 = vsel %vm817_vm10, 1.0, %v10763_v29  ;;  %10776 = vst [vmem:[#allocation43_spill] sm:$0xff] %v7905_v18 }
  0x8d   : > { %6784 = vmatmul.msk.f32.gmra.mxu1 %vm957_vm2, %v7848_v19  ;;  %6750 = vmatmul.msk.f32.gmra.mxu0 %vm957_vm2, %v7851_v56  ;;  %v7876_v19 = vld [vmem:[%s7497_s14 + $0x91] sm:$0xff]  ;;  %10774 = vst [vmem:[#allocation41_spill] sm:$0xff] %v7897_v14 }
  0x8e   : > { %10770 = vst [vmem:[#allocation37_spill] sm:$0xff] %v7876_v19  ;;  %v1505_v56 = vld [vmem:[%s7497_s14 + $0xd1] sm:$0xff] }
  0x8f   : > { %6800 = vmatmul.msk.f32.gmra.mxu3 %vm957_vm2, %v1234_v10  ;;  %v298_v10 = vadd.s32 144, %v7484_v5 }
  0x91   : > { %v442_v44 = vand.u32 15, %v298_v10 }
  0x92   : > { %v1353_v13 = vpop.f32.mrf.mxu1  ;;  %v1075_v20 = vpop.f32.mrf.mxu0 }
  0x93   : > { %v1171_v0 = vadd.f32 %v7871_v34, %v1075_v20  ;;  %vm714_vm11 = vcmp.ne.s32.totalorder %v442_v44, 0 }
  0x94   : > { %6819 = vmatmul.msk.f32.gmra.mxu2 %vm957_vm2, %v7876_v19  ;;  %v1506_v19 = vld [vmem:[%s7497_s14 + $0xd9] sm:$0xff] }
  0x95   : > { %6785 = vmatmul.msk.f32.gmra.mxu1 %vm957_vm2, %v7879_v35  ;;  %6751 = vmatmul.msk.f32.gmra.mxu0 %vm957_vm2, %v940_v7  ;;  %v1449_v11 = vadd.f32 %v1353_v13, %v1171_v0  ;;  %v1530_v7 = vmul.f32 %v7890_v43, %v7893_v54  ;;  %v7922_v43 = vsel %vm714_vm11, 1.0, %v10763_v29  ;;  %v7936_v54 = vld [vmem:[%s7497_s14 + $0xa0] sm:$0xff] }
  0x96   : > { %10778 = vst [vmem:[#allocation45_spill] sm:$0xff] %v7922_v43 }
  0x97   : > { %6827 = vmatmul.msk.f32.vlgmr.msra.gmra.mxu3 %vm957_vm2, %v1505_v56  ;;  %v1663_v20 = vpop.f32.mrf.mxu2  ;;  %v299_v56 = vadd.s32 152, %v7484_v5  ;;  %10782 = vst [vmem:[#allocation49_spill] sm:$0xff] %v7936_v54 }
  0x98   : > { %v7900_v1 = vadd.f32 %v1663_v20, %v1449_v11  ;;  %v1538_v11 = vmul.f32 %v7897_v14, %v1506_v19 }
  0x99   : > { %v449_v19 = vand.u32 15, %v299_v56 }
  0x9a   : > { %10775 = vst [vmem:[#allocation42_spill] sm:$0xff] %v7900_v1  ;;  %v1356_v13 = vpop.f32.mrf.mxu1  ;;  %v1078_v0 = vpop.f32.mrf.mxu0  ;;  %v307_v1 = vadd.s32 216, %v7484_v5 }
  0x9b   : > { %v7907_v35 = vpop.f32.mrf.mxu3  ;;  %v1172_v10 = vadd.f32 %v7871_v34, %v1078_v0  ;;  %v7925_v0 = vld [vmem:[%s7497_s14 + $0x9f] sm:$0xff]  ;;  %vm811_vm12 = vcmp.ne.s32.totalorder %v449_v19, 15  ;;  %v7952_v19 = vld [vmem:[%s7497_s14 + $0xa9] sm:$0xff] }
  0x9c   : > { %6820 = vmatmul.msk.f32.gmra.mxu2 %vm957_vm2, %v1530_v7  ;;  %10779 = vst [vmem:[#allocation46_spill] sm:$0xff] %v7925_v0  ;;  %v942_v14 = vmul.f32 %v7922_v43, %v7925_v0 }
  0x9d   : > { %6786 = vmatmul.msk.f32.gmra.mxu1 %vm957_vm2, %v7905_v18  ;;  %6752 = vmatmul.msk.f32.gmra.mxu0 %vm957_vm2, %v7910_v50  ;;  %v1450_v20 = vadd.f32 %v1356_v13, %v1172_v10  ;;  %v7933_v18 = vld [vmem:[%s7497_s14 + $0xa1] sm:$0xff]  ;;  %v505_v10 = vand.u32 15, %v307_v1  ;;  %10784 = vst [vmem:[#allocation51_spill] sm:$0xff] %v7952_v19 }
  0x9e   : > { %10781 = vst [vmem:[#allocation48_spill] sm:$0xff] %v7933_v18 }
  0x9f   : > { %6828 = vmatmul.msk.f32.gmra.mxu3 %vm957_vm2, %v1538_v11  ;;  %v1666_v44 = vpop.f32.mrf.mxu2  ;;  %v300_v11 = vadd.s32 160, %v7484_v5  ;;  %vm819_vm13 = vcmp.ne.s32.totalorder %v505_v10, 15  ;;  %v7964_v10 = vld [vmem:[%s7497_s14 + $0xa8] sm:$0xff] }
  0xa0   : > { %v7928_v7 = vadd.f32 %v1666_v44, %v1450_v20  ;;  %v1507_v20 = vld [vmem:[%s7497_s14 + $0xe1] sm:$0xff]  ;;  %v7949_v44 = vsel %vm811_vm12, 1.0, %v10763_v29  ;;  %v7956_v43 = vsel %vm819_vm13, 1.0, %v10763_v29  ;;  %10787 = vst [vmem:[#allocation54_spill] sm:$0xff] %v7964_v10 }
  0xa1   : > { %10783 = vst [vmem:[#allocation50_spill] sm:$0xff] %v7949_v44 }
  0xa2   : > { %10780 = vst [vmem:[#allocation47_spill] sm:$0xff] %v7928_v7  ;;  %v1359_v13 = vpop.f32.mrf.mxu1  ;;  %v1081_v50 = vpop.f32.mrf.mxu0  ;;  %v456_v7 = vand.u32 15, %v300_v11  ;;  %v301_v11 = vadd.s32 168, %v7484_v5 }
  0xa3   : > { %v7938_v49 = vpop.f32.mrf.mxu3  ;;  %v1173_v56 = vadd.f32 %v7871_v34, %v1081_v50  ;;  %10785 = vst [vmem:[#allocation52_spill] sm:$0xff] %v7956_v43 }
  0xa4   : > { %6821 = vmatmul.msk.f32.gmra.mxu2 %vm957_vm2, %v7933_v18  ;;  %v1508_v18 = vld [vmem:[%s7497_s14 + $0xe9] sm:$0xff]  ;;  %vm716_vm14 = vcmp.ne.s32.totalorder %v456_v7, 0 }
  0xa5   : > { %6787 = vmatmul.msk.f32.gmra.mxu1 %vm957_vm2, %v7936_v54  ;;  %6753 = vmatmul.msk.f32.gmra.mxu0 %vm957_vm2, %v942_v14  ;;  %v1451_v1 = vadd.f32 %v1359_v13, %v1173_v56  ;;  %v1532_v14 = vmul.f32 %v7949_v44, %v7952_v19  ;;  %v7981_v44 = vsel %vm716_vm14, 1.0, %v10763_v29  ;;  %v7995_v19 = vld [vmem:[%s7497_s14 + $0xb0] sm:$0xff] }
  0xa6   : > { %10789 = vst [vmem:[#allocation56_spill] sm:$0xff] %v7981_v44 }
  0xa7   : > { %6829 = vmatmul.msk.f32.gmra.mxu3 %vm957_vm2, %v1507_v20  ;;  %v1669_v50 = vpop.f32.mrf.mxu2  ;;  %10793 = vst [vmem:[#allocation60_spill] sm:$0xff] %v7995_v19 }
  0xa8   : > { %v7959_v0 = vadd.f32 %v1669_v50, %v1451_v1  ;;  %v1540_v1 = vmul.f32 %v7956_v43, %v1508_v18  ;;  %v463_v18 = vand.u32 15, %v301_v11 }
  0xaa   : > { %10786 = vst [vmem:[#allocation53_spill] sm:$0xff] %v7959_v0  ;;  %v1362_v13 = vpop.f32.mrf.mxu1  ;;  %v1084_v56 = vpop.f32.mrf.mxu0  ;;  %v309_v0 = vadd.s32 232, %v7484_v5  ;;  %vm813_vm15 = vcmp.ne.s32.totalorder %v463_v18, 15 }
  0xab   : > { %v7966_v54 = vpop.f32.mrf.mxu3  ;;  %v1174_v20 = vadd.f32 %v7871_v34, %v1084_v56  ;;  %v7984_v56 = vld [vmem:[%s7497_s14 + $0xaf] sm:$0xff]  ;;  %v8008_v18 = vsel %vm813_vm15, 1.0, %v10763_v29 }
  0xac   : > { %6822 = vmatmul.msk.f32.gmra.mxu2 %vm957_vm2, %v1532_v14  ;;  %10790 = vst [vmem:[#allocation57_spill] sm:$0xff] %v7984_v56  ;;  %v944_v43 = vmul.f32 %v7981_v44, %v7984_v56  ;;  %v6971_v44 = vld [vmem:[%s10584_s1 + $0x1c] sm:$0xf] }
  0xad   : > { %6788 = vmatmul.msk.f32.gmra.mxu1 %vm957_vm2, %v7964_v10  ;;  %6754 = vmatmul.msk.f32.gmra.mxu0 %vm957_vm2, %v7969_v60  ;;  %v1452_v50 = vadd.f32 %v1362_v13, %v1174_v20  ;;  %v7992_v10 = vld [vmem:[%s7497_s14 + $0xb1] sm:$0xff]  ;;  %v519_v20 = vand.u32 15, %v309_v0  ;;  %10794 = vst [vmem:[#allocation61_spill] sm:$0xff] %v8008_v18 }
  0xae   : > { %10792 = vst [vmem:[#allocation59_spill] sm:$0xff] %v7992_v10  ;;  %6972 = vmatpush.msk.msra.mxu3 %vm1054_vm0, %v6971_v44  ;;  %v8032_v56 = vld [vmem:[%s7497_s14 + $0xb7] sm:$0xff] }
  0xaf   : > { %6830 = vmatmul.msk.f32.gmra.mxu3 %vm957_vm2, %v1540_v1  ;;  %v1672_v7 = vpop.f32.mrf.mxu2  ;;  %v302_v1 = vadd.s32 176, %v7484_v5  ;;  %vm821_vm1 = vcmp.ne.s32.totalorder %v519_v20, 15  ;;  %v6937_v44 = vld [vmem:[%s10584_s1 + $0x18] sm:$0xf] }
  0xb0   : > { %v7987_v14 = vadd.f32 %v1672_v7, %v1452_v50  ;;  %v1509_v50 = vld [vmem:[%s7497_s14 + $0xf1] sm:$0xff]  ;;  %v8011_v7 = vld [vmem:[%s7497_s14 + $0xb9] sm:$0xff]  ;;  %6938 = vmatpush.msk.msrb.mxu2 %vm1054_vm0, %v6937_v44 }
  0xb1   : > { %10795 = vst [vmem:[#allocation62_spill] sm:$0xff] %v8011_v7  ;;  %v1534_v20 = vmul.f32 %v8008_v18, %v8011_v7  ;;  %v8098_v7 = vld [vmem:[%s7497_s14 + $0xc7] sm:$0xff] }
  0xb2   : > { %10791 = vst [vmem:[#allocation58_spill] sm:$0xff] %v7987_v14  ;;  %v1365_v13 = vpop.f32.mrf.mxu1  ;;  %v1087_v60 = vpop.f32.mrf.mxu0  ;;  %v470_v14 = vand.u32 15, %v302_v1 }
  0xb3   : > { %v7997_v59 = vpop.f32.mrf.mxu3  ;;  %v1175_v11 = vadd.f32 %v7871_v34, %v1087_v60 }
  0xb4   : > { %6823 = vmatmul.msk.f32.gmra.mxu2 %vm957_vm2, %v7992_v10  ;;  %v8027_v10 = vld [vmem:[%s7497_s14 + $0xb8] sm:$0xff]  ;;  %vm718_vm3 = vcmp.ne.s32.totalorder %v470_v14, 0 }
  0xb5   : > { %6789 = vmatmul.msk.f32.gmra.mxu1 %vm957_vm2, %v7995_v19  ;;  %6755 = vmatmul.msk.f32.gmra.mxu0 %vm957_vm2, %v944_v43  ;;  %v1453_v0 = vadd.f32 %v1365_v13, %v1175_v11  ;;  %v8018_v19 = vsel %vm821_vm1, 1.0, %v10763_v29  ;;  %v1510_v43 = vld [vmem:[%s7497_s14 + $0xf9] sm:$0xff]  ;;  %10798 = vst [vmem:[#allocation65_spill] sm:$0xff] %v8027_v10  ;;  %v8048_v14 = vsel %vm718_vm3, 1.0, %v10763_v29 }
  0xb6   : > { %10796 = vst [vmem:[#allocation63_spill] sm:$0xff] %v8018_v19 }
  0xb7   : > { %6831 = vmatmul.msk.f32.gmra.mxu3 %vm957_vm2, %v1509_v50  ;;  %v1675_v60 = vpop.f32.mrf.mxu2  ;;  %10799 = vst [vmem:[#allocation66_spill] sm:$0xff] %v8048_v14 }
  0xb8   : > { %v8021_v13 = vadd.f32 %v1675_v60, %v1453_v0  ;;  %v1542_v0 = vmul.f32 %v8018_v19, %v1510_v43  ;;  %v8051_v43 = vld [vmem:[%s7497_s14 + $0xbf] sm:$0xff]  ;;  %v477_v19 = vand.u32 15, %v303_v24 }
  0xb9   : > { %10800 = vst [vmem:[#allocation67_spill] sm:$0xff] %v8051_v43  ;;  %v8066_v24 = vld [vmem:[%s7497_s14 + $0xc0] sm:$0xff] }
  0xba   : > { %10797 = vst [vmem:[#allocation64_spill] sm:$0xff] %v8021_v13  ;;  %v1368_v11 = vpop.f32.mrf.mxu1  ;;  %v1090_v1 = vpop.f32.mrf.mxu0  ;;  %v7005_v13 = vld [vmem:[%s10584_s1 + $0x20] sm:$0xf]  ;;  %vm815_vm4 = vcmp.ne.s32.totalorder %v477_v19, 15 }
  0xbb   : > { %v8029_v50 = vpop.f32.mrf.mxu3  ;;  %v1176_v28 = vadd.f32 %v7871_v34, %v1090_v1  ;;  %v311_v1 = vadd.s32 248, %v7484_v5  ;;  %7006 = vmatpush.msk.msra.mxu0 %vm1054_vm0, %v7005_v13  ;;  %v946_v5 = vmul.f32 %v8048_v14, %v8051_v43  ;;  %10803 = vst [vmem:[#allocation70_spill] sm:$0xff] %v8066_v24  ;;  %v1512_v14 = vld [vmem:[%s7497_s14 + $0x109] sm:$0xff] }
  0xbc   : > { %6824 = vmatmul.msk.f32.gmra.mxu2 %vm957_vm2, %v1534_v20 }
  0xbd   : > { %6790 = vmatmul.msk.f32.gmra.mxu1 %vm957_vm2, %v8027_v10  ;;  %6756 = vmatmul.msk.f32.gmra.mxu0 %vm957_vm2, %v8032_v56  ;;  %v1454_v60 = vadd.f32 %v1368_v11, %v1176_v28  ;;  %v8063_v28 = vld [vmem:[%s7497_s14 + $0xc1] sm:$0xff]  ;;  %v533_v44 = vand.u32 15, %v311_v1  ;;  %v8078_v1 = vsel %vm815_vm4, 1.0, %v10763_v29 }
  0xbe   : > { %10802 = vst [vmem:[#allocation69_spill] sm:$0xff] %v8063_v28 }
  0xbf   : > { %6832 = vmatmul.msk.f32.gmra.mxu3 %vm957_vm2, %v1542_v0  ;;  %v1678_v20 = vpop.f32.mrf.mxu2  ;;  %vm823_vm0 = vcmp.ne.s32.totalorder %v533_v44, 15  ;;  %10804 = vst [vmem:[#allocation71_spill] sm:$0xff] %v8078_v1 }
  0xc0   : > { %v8057_v18 = vadd.f32 %v1678_v20, %v1454_v60  ;;  %v1511_v20 = vld [vmem:[%s7497_s14 + $0x101] sm:$0xff] }
  0xc2   : > { %10801 = vst [vmem:[#allocation68_spill] sm:$0xff] %v8057_v18  ;;  %v1371_v11 = vpop.f32.mrf.mxu1  ;;  %v1093_v0 = vpop.f32.mrf.mxu0  ;;  %v8081_v18 = vld [vmem:[%s7497_s14 + $0xc9] sm:$0xff] }
  0xc3   : > { %v8068_v10 = vpop.f32.mrf.mxu3  ;;  %v1177_v60 = vadd.f32 %v7871_v34, %v1093_v0  ;;  %v8085_v0 = vsel %vm823_vm0, 1.0, %v10763_v29 }
  0xc4   : > { %6825 = vmatmul.msk.f32.gmra.mxu2 %vm957_vm2, %v8063_v28  ;;  %10805 = vst [vmem:[#allocation72_spill] sm:$0xff] %v8085_v0  ;;  %v1544_v43 = vmul.f32 %v8085_v0, %v1512_v14  ;;  %v1823_v0 = vmul.f32 %v7500_v12, %v7534_v32  ;;  %v1195_v32 = vadd.f32 %v7871_v34, %v7907_v35 }
  0xc5   : > { %6791 = vmatmul.msk.f32.gmra.mxu1 %vm957_vm2, %v8066_v24  ;;  %6757 = vmatmul.msk.f32.gmra.mxu0 %vm957_vm2, %v946_v5  ;;  %v1455_v13 = vadd.f32 %v1371_v11, %v1177_v60  ;;  %v1536_v24 = vmul.f32 %v8078_v1, %v8081_v18  ;;  %v8093_v11 = vld [vmem:[%s7497_s14 + $0xc8] sm:$0xff] }
  0xc7   : > { %6833 = vmatmul.msk.f32.gmra.mxu3 %vm957_vm2, %v1511_v20  ;;  %v1681_v19 = vpop.f32.mrf.mxu2 }
  0xc8   : > { %v8088_v28 = vadd.f32 %v1681_v19, %v1455_v13 }
  0xca   : > { %10806 = vst [vmem:[#allocation73_spill] sm:$0xff] %v8088_v28  ;;  %v1374_v5 = vpop.f32.mrf.mxu1  ;;  %v1096_v44 = vpop.f32.mrf.mxu0  ;;  %v2721_v28 = vmul.f32 %v7500_v12, %v7583_v52 }
  0xcb   : > { %v8095_v60 = vpop.f32.mrf.mxu3  ;;  %v1178_v20 = vadd.f32 %v7871_v34, %v1096_v44 }
  0xcc   : > { %6826 = vmatmul.msk.f32.gmra.mxu2 %vm957_vm2, %v1536_v24 }
  0xcd   : > { %6792 = vmatmul.msk.f32.gmra.mxu1 %vm957_vm2, %v8093_v11  ;;  %6758 = vmatmul.msk.f32.gmra.mxu0 %vm957_vm2, %v8098_v7  ;;  %v1456_v13 = vadd.f32 %v1374_v5, %v1178_v20 }
  0xcf   : > { %6834 = vmatmul.msk.f32.gmra.mxu3 %vm957_vm2, %v1544_v43  ;;  %v1684_v19 = vpop.f32.mrf.mxu2 }
  0xd0   : > { %v8108_v29 = vadd.f32 %v1684_v19, %v1456_v13 }
  0xd2   : > { %v1377_v44 = vpop.f32.mrf.mxu1  ;;  %v1099_v1 = vpop.f32.mrf.mxu0 }
  0xd3   : > { %v8112_v14 = vpop.f32.mrf.mxu3  ;;  %v1179_v24 = vadd.f32 %v7871_v34, %v1099_v1  ;;  %v2412_v1 = vmul.f32 %v7516_v21, %v7560_v42 }
  0xd4   : > { %6939 = vmatmul.msk.f32.vlgmr.msrb.gmra.mxu2 %vm957_vm2, %v2721_v28 }
  0xd5   : > { %6905 = vmatmul.msk.f32.vlgmr.msrb.gmra.mxu1 %vm957_vm2, %v7544_v37  ;;  %6871 = vmatmul.msk.f32.vlgmr.msrb.gmra.mxu0 %vm957_vm2, %v7547_v38  ;;  %v1457_v43 = vadd.f32 %v1377_v44, %v1179_v24  ;;  %v1196_v44 = vadd.f32 %v7871_v34, %v7938_v49 }
  0xd7   : > { %6837 = vmatmul.msk.f32.vlgmr.msrb.gmra.mxu3 %vm957_vm2, %v1823_v0  ;;  %v1687_v5 = vpop.f32.mrf.mxu2  ;;  %v2723_v0 = vmul.f32 %v7531_v31, %v7632_v9 }
  0xd8   : > { %v8123_v20 = vadd.f32 %v1687_v5, %v1457_v43 }
  0xda   : > { %v1380_v13 = vpop.f32.mrf.mxu1  ;;  %v1102_v28 = vpop.f32.mrf.mxu0 }
  0xdb   : > { %v1425_v19 = vpop.f32.mrf.mxu3  ;;  %v1180_v37 = vadd.f32 %v7871_v34, %v1102_v28  ;;  %v2414_v28 = vmul.f32 %v7557_v41, %v7609_v62 }
  0xdc   : > { %v8130_v12 = vadd.f32 %v1425_v19, %v1195_v32  ;;  %6940 = vmatmul.msk.f32.gmra.mxu2 %vm957_vm2, %v7619_v4 }
  0xdd   : > { %6906 = vmatmul.msk.f32.gmra.mxu1 %vm957_vm2, %v2412_v1  ;;  %6872 = vmatmul.msk.f32.gmra.mxu0 %vm957_vm2, %v7567_v47  ;;  %v1458_v38 = vadd.f32 %v1380_v13, %v1180_v37  ;;  %v1825_v47 = vmul.f32 %v7531_v31, %v7583_v52  ;;  %v1197_v52 = vadd.f32 %v7871_v34, %v7966_v54 }
  0xdf   : > { %6838 = vmatmul.msk.f32.gmra.mxu3 %vm957_vm2, %v7570_v48  ;;  %v1690_v42 = vpop.f32.mrf.mxu2 }
  0xe0   : > { %v8139_v35 = vadd.f32 %v1690_v42, %v1458_v38 }
  0xe2   : > { %v1383_v24 = vpop.f32.mrf.mxu1  ;;  %v1105_v43 = vpop.f32.mrf.mxu0 }
  0xe3   : > { %v1428_v5 = vpop.f32.mrf.mxu3  ;;  %v1181_v1 = vadd.f32 %v7871_v34, %v1105_v43 }
  0xe4   : > { %v8146_v32 = vadd.f32 %v1428_v5, %v1196_v44  ;;  %6941 = vmatmul.msk.f32.gmra.mxu2 %vm957_vm2, %v2723_v0  ;;  %v2725_v0 = vmul.f32 %v7580_v51, %v7680_v33  ;;  %v1198_v44 = vadd.f32 %v7871_v34, %v7997_v59 }
  0xe5   : > { %6907 = vmatmul.msk.f32.gmra.mxu1 %vm957_vm2, %v7593_v57  ;;  %6873 = vmatmul.msk.f32.gmra.mxu0 %vm957_vm2, %v7596_v58  ;;  %v1459_v48 = vadd.f32 %v1383_v24, %v1181_v1 }
  0xe7   : > { %6839 = vmatmul.msk.f32.gmra.mxu3 %vm957_vm2, %v1825_v47  ;;  %v1693_v49 = vpop.f32.mrf.mxu2 }
  0xe8   : > { %v8156_v13 = vadd.f32 %v1693_v49, %v1459_v48  ;;  %v2416_v49 = vmul.f32 %v7606_v61, %v7658_v23 }
  0xea   : > { %v1386_v19 = vpop.f32.mrf.mxu1  ;;  %v1108_v37 = vpop.f32.mrf.mxu0 }
  0xeb   : > { %v1431_v38 = vpop.f32.mrf.mxu3  ;;  %v1182_v57 = vadd.f32 %v7871_v34, %v1108_v37 }
  0xec   : > { %v8163_v42 = vadd.f32 %v1431_v38, %v1197_v52  ;;  %6942 = vmatmul.msk.f32.gmra.mxu2 %vm957_vm2, %v7667_v27  ;;  %v2727_v38 = vmul.f32 %v7629_v8, %v7724_v63 }
  0xed   : > { %6908 = vmatmul.msk.f32.gmra.mxu1 %vm957_vm2, %v2414_v28  ;;  %6874 = vmatmul.msk.f32.gmra.mxu0 %vm957_vm2, %v7616_v3  ;;  %v1460_v58 = vadd.f32 %v1386_v19, %v1182_v57  ;;  %v1827_v3 = vmul.f32 %v7580_v51, %v7632_v9  ;;  %v1199_v9 = vadd.f32 %v7871_v34, %v8029_v50 }
  0xee   : > { %v1200_v57 = vadd.f32 %v7871_v34, %v8068_v10 }
  0xef   : > { %6840 = vmatmul.msk.f32.gmra.mxu3 %vm957_vm2, %v7619_v4  ;;  %v1696_v62 = vpop.f32.mrf.mxu2 }
  0xf0   : > { %v8172_v54 = vadd.f32 %v1696_v62, %v1460_v58 }
  0xf2   : > { %v1389_v24 = vpop.f32.mrf.mxu1  ;;  %v1111_v43 = vpop.f32.mrf.mxu0 }
  0xf3   : > { %v1434_v5 = vpop.f32.mrf.mxu3  ;;  %v1183_v1 = vadd.f32 %v7871_v34, %v1111_v43 }
  0xf4   : > { %v8179_v47 = vadd.f32 %v1434_v5, %v1198_v44  ;;  %6943 = vmatmul.msk.f32.gmra.mxu2 %vm957_vm2, %v2725_v0  ;;  %v2418_v5 = vmul.f32 %v7655_v22, %v7702_v46 }
  0xf5   : > { %6909 = vmatmul.msk.f32.gmra.mxu1 %vm957_vm2, %v7642_v16  ;;  %6875 = vmatmul.msk.f32.gmra.mxu0 %vm957_vm2, %v7645_v17  ;;  %v1461_v4 = vadd.f32 %v1389_v24, %v1183_v1 }
  0xf7   : > { %6841 = vmatmul.msk.f32.gmra.mxu3 %vm957_vm2, %v1827_v3  ;;  %v1699_v59 = vpop.f32.mrf.mxu2 }
  0xf8   : > { %v8189_v48 = vadd.f32 %v1699_v59, %v1461_v4 }
  0xfa   : > { %v1392_v28 = vpop.f32.mrf.mxu1  ;;  %v1114_v52 = vpop.f32.mrf.mxu0 }
  0xfb   : > { %v1437_v19 = vpop.f32.mrf.mxu3  ;;  %v1184_v16 = vadd.f32 %v7871_v34, %v1114_v52 }
  0xfc   : > { %v8196_v37 = vadd.f32 %v1437_v19, %v1199_v9  ;;  %6944 = vmatmul.msk.f32.gmra.mxu2 %vm957_vm2, %v7711_v55  ;;  %v1202_v9 = vadd.f32 %v7871_v34, %v8112_v14 }
  0xfd   : > { %6910 = vmatmul.msk.f32.gmra.mxu1 %vm957_vm2, %v2416_v49  ;;  %6876 = vmatmul.msk.f32.gmra.mxu0 %vm957_vm2, %v7664_v26  ;;  %v1462_v17 = vadd.f32 %v1392_v28, %v1184_v16  ;;  %v1829_v26 = vmul.f32 %v7629_v8, %v7680_v33  ;;  %v1201_v33 = vadd.f32 %v7871_v34, %v8095_v60  ;;  %v8471_v8 = vld [vmem:[%s7497_s14 + $0xd8] sm:$0xff] }
  0xfe   : > { %v2729_v49 = vmul.f32 %v7677_v30, %v7768_v36 }
  0xff   : > { %6842 = vmatmul.msk.f32.gmra.mxu3 %vm957_vm2, %v7667_v27  ;;  %v1702_v23 = vpop.f32.mrf.mxu2 }
 0x100   : > { %v8205_v50 = vadd.f32 %v1702_v23, %v1462_v17 }
 0x102   : > { %v1395_v58 = vpop.f32.mrf.mxu1  ;;  %v1117_v62 = vpop.f32.mrf.mxu0 }
 0x103   : > { %v1440_v0 = vpop.f32.mrf.mxu3  ;;  %v1185_v44 = vadd.f32 %v7871_v34, %v1117_v62 }
 0x104   : > { %v8212_v24 = vadd.f32 %v1440_v0, %v1200_v57  ;;  %6945 = vmatmul.msk.f32.gmra.mxu2 %vm957_vm2, %v2727_v38  ;;  %v2420_v38 = vmul.f32 %v7699_v45, %v7746_v15 }
 0x105   : > { %6911 = vmatmul.msk.f32.gmra.mxu1 %vm957_vm2, %v7686_v39  ;;  %6877 = vmatmul.msk.f32.gmra.mxu0 %vm957_vm2, %v7689_v40  ;;  %v1463_v27 = vadd.f32 %v1395_v58, %v1185_v44 }
 0x107   : > { %6843 = vmatmul.msk.f32.gmra.mxu3 %vm957_vm2, %v1829_v26  ;;  %v1705_v10 = vpop.f32.mrf.mxu2 }
 0x108   : > { %v8222_v43 = vadd.f32 %v1705_v10, %v1463_v27  ;;  %v10809_v27 = vld [vmem:[#allocation28_spill] sm:$0xff]  ;;  %v10810_v10 = vld [vmem:[#allocation17_spill] sm:$0xff] }
 0x10a   : > { %v1398_v1 = vpop.f32.mrf.mxu1  ;;  %v1120_v3 = vpop.f32.mrf.mxu0 }
 0x10b   : > { %v1443_v4 = vpop.f32.mrf.mxu3  ;;  %v1186_v39 = vadd.f32 %v7871_v34, %v1120_v3 }
 0x10c   : > { %v8229_v59 = vadd.f32 %v1443_v4, %v1201_v33  ;;  %6946 = vmatmul.msk.f32.gmra.mxu2 %vm957_vm2, %v7755_v25 }
 0x10d   : > { %6912 = vmatmul.msk.f32.gmra.mxu1 %vm957_vm2, %v2418_v5  ;;  %6878 = vmatmul.msk.f32.gmra.mxu0 %vm957_vm2, %v7708_v53  ;;  %v1464_v40 = vadd.f32 %v1398_v1, %v1186_v39  ;;  %v1831_v53 = vmul.f32 %v7677_v30, %v7724_v63  ;;  %v2731_v5 = vmul.f32 %v10810_v10, %v10809_v27 }
 0x10e   : > { %v1833_v39 = vmul.f32 %v10810_v10, %v7768_v36 }
 0x10f   : > { %6844 = vmatmul.msk.f32.gmra.mxu3 %vm957_vm2, %v7711_v55  ;;  %v1708_v46 = vpop.f32.mrf.mxu2 }
 0x110   : > { %v8238_v60 = vadd.f32 %v1708_v46, %v1464_v40  ;;  %v10812_v40 = vld [vmem:[#allocation22_spill] sm:$0xff] }
 0x112   : > { %v1401_v28 = vpop.f32.mrf.mxu1  ;;  %v1123_v52 = vpop.f32.mrf.mxu0 }
 0x113   : > { %v1446_v19 = vpop.f32.mrf.mxu3  ;;  %v1187_v16 = vadd.f32 %v7871_v34, %v1123_v52 }
 0x114   : > { %v8245_v17 = vadd.f32 %v1446_v19, %v1202_v9  ;;  %6947 = vmatmul.msk.f32.gmra.mxu2 %vm957_vm2, %v2729_v49 }
 0x115   : > { %6913 = vmatmul.msk.f32.gmra.mxu1 %vm957_vm2, %v7730_v2  ;;  %6879 = vmatmul.msk.f32.gmra.mxu0 %vm957_vm2, %v7733_v6  ;;  %v1465_v55 = vadd.f32 %v1401_v28, %v1187_v16  ;;  %v10807_v2 = vld [vmem:[#allocation26_spill] sm:$0xff]  ;;  %v10808_v6 = vld [vmem:[#allocation19_spill] sm:$0xff]  ;;  %v10813_v28 = vld [vmem:[#allocation24_spill] sm:$0xff] }
 0x117   : > { %6845 = vmatmul.msk.f32.gmra.mxu3 %vm957_vm2, %v1831_v53  ;;  %v1711_v14 = vpop.f32.mrf.mxu2 }
 0x118   : > { %v8255_v23 = vadd.f32 %v1711_v14, %v1465_v55  ;;  %v10815_v14 = vld [vmem:[#allocation34_spill] sm:$0xff] }
 0x11a   : > { %v1404_v57 = vpop.f32.mrf.mxu1  ;;  %v1126_v58 = vpop.f32.mrf.mxu0 }
 0x11b   : > { %v1735_v63 = vpop.f32.mrf.mxu3  ;;  %v1188_v62 = vadd.f32 %v7871_v34, %v1126_v58 }
 0x11c   : > { %v8261_v0 = vadd.f32 %v1735_v63, %v8130_v12  ;;  %6948 = vmatmul.msk.f32.gmra.mxu2 %vm957_vm2, %v10807_v2 }
 0x11d   : > { %6914 = vmatmul.msk.f32.gmra.mxu1 %vm957_vm2, %v2420_v38  ;;  %6880 = vmatmul.msk.f32.gmra.mxu0 %vm957_vm2, %v10808_v6  ;;  %v1466_v44 = vadd.f32 %v1404_v57, %v1188_v62  ;;  %v10816_v38 = vld [vmem:[#allocation25_spill] sm:$0xff]  ;;  %v10817_v62 = vld [vmem:[#allocation36_spill] sm:$0xff] }
 0x11e   : > { %v10818_v6 = vld [vmem:[#allocation20_spill] sm:$0xff] }
 0x11f   : > { %6846 = vmatmul.msk.f32.gmra.mxu3 %vm957_vm2, %v7755_v25  ;;  %v1714_v15 = vpop.f32.mrf.mxu2  ;;  %v10811_v25 = vld [vmem:[#allocation21_spill] sm:$0xff] }
 0x120   : > { %v8270_v26 = vadd.f32 %v1714_v15, %v1466_v44  ;;  %v2733_v44 = vmul.f32 %v10818_v6, %v10817_v62 }
 0x122   : > { %v1407_v12 = vpop.f32.mrf.mxu1  ;;  %v1129_v33 = vpop.f32.mrf.mxu0 }
 0x123   : > { %v1738_v1 = vpop.f32.mrf.mxu3  ;;  %v1189_v3 = vadd.f32 %v7871_v34, %v1129_v33 }
 0x124   : > { %v8276_v4 = vadd.f32 %v1738_v1, %v8146_v32  ;;  %6949 = vmatmul.msk.f32.gmra.mxu2 %vm957_vm2, %v2731_v5  ;;  %v10814_v32 = vld [vmem:[#allocation18_spill] sm:$0xff]  ;;  %v1835_v1 = vmul.f32 %v10818_v6, %v10809_v27  ;;  %v10843_v6 = vld [vmem:[#allocation47_spill] sm:$0xff] }
 0x125   : > { %6915 = vmatmul.msk.f32.gmra.mxu1 %vm957_vm2, %v10811_v25  ;;  %6881 = vmatmul.msk.f32.gmra.mxu0 %vm957_vm2, %v10812_v40  ;;  %v1467_v46 = vadd.f32 %v1407_v12, %v1189_v3  ;;  %v2422_v52 = vmul.f32 %v10814_v32, %v10813_v28  ;;  %v10820_v3 = vld [vmem:[#allocation30_spill] sm:$0xff] }
 0x127   : > { %6847 = vmatmul.msk.f32.gmra.mxu3 %vm957_vm2, %v1833_v39  ;;  %v1717_v49 = vpop.f32.mrf.mxu2 }
 0x128   : > { %v8286_v9 = vadd.f32 %v1717_v49, %v1467_v46  ;;  %v10821_v46 = vld [vmem:[#allocation32_spill] sm:$0xff] }
 0x12a   : > { %v1410_v19 = vpop.f32.mrf.mxu1  ;;  %v1132_v16 = vpop.f32.mrf.mxu0 }
 0x12b   : > { %v1741_v36 = vpop.f32.mrf.mxu3  ;;  %v1190_v53 = vadd.f32 %v7871_v34, %v1132_v16 }
 0x12c   : > { %v8292_v55 = vadd.f32 %v1741_v36, %v8163_v42  ;;  %6950 = vmatmul.msk.f32.gmra.mxu2 %vm957_vm2, %v10815_v14  ;;  %v3731_v36 = vld [vmem:[%s10586_s3 + $0x18] sm:$0xff] }
 0x12d   : > { %6916 = vmatmul.msk.f32.gmra.mxu1 %vm957_vm2, %v2422_v52  ;;  %6882 = vmatmul.msk.f32.gmra.mxu0 %vm957_vm2, %v10816_v38  ;;  %v1468_v57 = vadd.f32 %v1410_v19, %v1190_v53  ;;  %v10823_v53 = vld [vmem:[#allocation44_spill] sm:$0xff]  ;;  %v10824_v38 = vld [vmem:[#allocation33_spill] sm:$0xff] }
 0x12e   : > { %3840 = vmatpush.msra.mxu1 %v3731_v36 }
 0x12f   : > { %6848 = vmatmul.msk.f32.gmra.mxu3 %vm957_vm2, %v10807_v2  ;;  %v1720_v58 = vpop.f32.mrf.mxu2  ;;  %v10819_v2 = vld [vmem:[#allocation29_spill] sm:$0xff] }
 0x130   : > { %v8301_v63 = vadd.f32 %v1720_v58, %v1468_v57 }
 0x132   : > { %v1413_v42 = vpop.f32.mrf.mxu1  ;;  %v1135_v15 = vpop.f32.mrf.mxu0 }
 0x133   : > { %v1744_v5 = vpop.f32.mrf.mxu3  ;;  %v1191_v12 = vadd.f32 %v7871_v34, %v1135_v15 }
 0x134   : > { %v8307_v33 = vadd.f32 %v1744_v5, %v8179_v47  ;;  %6951 = vmatmul.msk.f32.gmra.mxu2 %vm957_vm2, %v2733_v44  ;;  %v10822_v47 = vld [vmem:[#allocation23_spill] sm:$0xff]  ;;  %v10825_v44 = vld [vmem:[#allocation46_spill] sm:$0xff] }
 0x135   : > { %6917 = vmatmul.msk.f32.gmra.mxu1 %vm957_vm2, %v10819_v2  ;;  %6883 = vmatmul.msk.f32.gmra.mxu0 %vm957_vm2, %v10820_v3  ;;  %v1469_v39 = vadd.f32 %v1413_v42, %v1191_v12  ;;  %v2424_v49 = vmul.f32 %v10822_v47, %v10821_v46  ;;  %v10826_v42 = vld [vmem:[#allocation27_spill] sm:$0xff] }
 0x136   : > { %v2735_v15 = vmul.f32 %v10826_v42, %v10825_v44 }
 0x137   : > { %6849 = vmatmul.msk.f32.gmra.mxu3 %vm957_vm2, %v1835_v1  ;;  %v1723_v25 = vpop.f32.mrf.mxu2 }
 0x138   : > { %v8317_v40 = vadd.f32 %v1723_v25, %v1469_v39  ;;  %v1837_v39 = vmul.f32 %v10826_v42, %v10817_v62  ;;  %v10828_v25 = vld [vmem:[#allocation38_spill] sm:$0xff] }
 0x13a   : > { %v1416_v28 = vpop.f32.mrf.mxu1  ;;  %v1138_v52 = vpop.f32.mrf.mxu0 }
 0x13b   : > { %v1747_v27 = vpop.f32.mrf.mxu3  ;;  %v1192_v19 = vadd.f32 %v7871_v34, %v1138_v52  ;;  %v10829_v52 = vld [vmem:[#allocation40_spill] sm:$0xff] }
 0x13c   : > { %v8323_v16 = vadd.f32 %v1747_v27, %v8196_v37  ;;  %6952 = vmatmul.msk.f32.gmra.mxu2 %vm957_vm2, %v10823_v53 }
 0x13d   : > { %6918 = vmatmul.msk.f32.gmra.mxu1 %vm957_vm2, %v2424_v49  ;;  %6884 = vmatmul.msk.f32.gmra.mxu0 %vm957_vm2, %v10824_v38  ;;  %v1470_v57 = vadd.f32 %v1416_v28, %v1192_v19 }
 0x13f   : > { %6850 = vmatmul.msk.f32.gmra.mxu3 %vm957_vm2, %v10815_v14  ;;  %v1726_v58 = vpop.f32.mrf.mxu2  ;;  %v10827_v14 = vld [vmem:[#allocation37_spill] sm:$0xff] }
 0x140   : > { %v8335_v37 = vadd.f32 %v1726_v58, %v1470_v57  ;;  %v10831_v58 = vld [vmem:[#allocation55_spill] sm:$0xff] }
 0x142   : > { %v1419_v5 = vpop.f32.mrf.mxu1  ;;  %v1141_v12 = vpop.f32.mrf.mxu0 }
 0x143   : > { %v1750_v1 = vpop.f32.mrf.mxu3  ;;  %v1193_v2 = vadd.f32 %v7871_v34, %v1141_v12 }
 0x144   : > { %v8341_v3 = vadd.f32 %v1750_v1, %v8212_v24  ;;  %6953 = vmatmul.msk.f32.gmra.mxu2 %vm957_vm2, %v2735_v15  ;;  %v10830_v24 = vld [vmem:[#allocation31_spill] sm:$0xff] }
 0x145   : > { %6919 = vmatmul.msk.f32.gmra.mxu1 %vm957_vm2, %v10827_v14  ;;  %6885 = vmatmul.msk.f32.gmra.mxu0 %vm957_vm2, %v10828_v25  ;;  %v1471_v46 = vadd.f32 %v1419_v5, %v1193_v2  ;;  %v2426_v27 = vmul.f32 %v10830_v24, %v10829_v52  ;;  %v10832_v15 = vld [vmem:[#allocation43_spill] sm:$0xff]  ;;  %v10833_v2 = vld [vmem:[#allocation57_spill] sm:$0xff]  ;;  %v10835_v52 = vld [vmem:[#allocation48_spill] sm:$0xff] }
 0x147   : > { %6851 = vmatmul.msk.f32.gmra.mxu3 %vm957_vm2, %v1837_v39  ;;  %v1729_v49 = vpop.f32.mrf.mxu2 }
 0x148   : > { %v8351_v28 = vadd.f32 %v1729_v49, %v1471_v46 }
 0x14a   : > { %v1422_v19 = vpop.f32.mrf.mxu1  ;;  %v1144_v36 = vpop.f32.mrf.mxu0 }
 0x14b   : > { %v1753_v62 = vpop.f32.mrf.mxu3  ;;  %v1194_v38 = vadd.f32 %v7871_v34, %v1144_v36  ;;  %v10834_v34 = vld [vmem:[#allocation35_spill] sm:$0xff] }
 0x14c   : > { %v8357_v57 = vadd.f32 %v1753_v62, %v8229_v59  ;;  %6954 = vmatmul.msk.f32.gmra.mxu2 %vm957_vm2, %v10831_v58  ;;  %v2737_v39 = vmul.f32 %v10834_v34, %v10833_v2  ;;  %v1839_v49 = vmul.f32 %v10834_v34, %v10825_v44  ;;  %v10838_v36 = vld [vmem:[#allocation39_spill] sm:$0xff]  ;;  %v10840_v44 = vld [vmem:[#allocation54_spill] sm:$0xff] }
 0x14d   : > { %6920 = vmatmul.msk.f32.gmra.mxu1 %vm957_vm2, %v2426_v27  ;;  %6886 = vmatmul.msk.f32.gmra.mxu0 %vm957_vm2, %v10832_v15  ;;  %v1472_v5 = vadd.f32 %v1422_v19, %v1194_v38  ;;  %v10837_v19 = vld [vmem:[#allocation51_spill] sm:$0xff] }
 0x14e   : > { %v2428_v62 = vmul.f32 %v10838_v36, %v10837_v19 }
 0x14f   : > { %6852 = vmatmul.msk.f32.gmra.mxu3 %vm957_vm2, %v10823_v53  ;;  %v1732_v12 = vpop.f32.mrf.mxu2  ;;  %v10836_v53 = vld [vmem:[#allocation49_spill] sm:$0xff] }
 0x150   : > { %v8366_v1 = vadd.f32 %v1732_v12, %v1472_v5  ;;  %v10839_v5 = vld [vmem:[#allocation42_spill] sm:$0xff] }
 0x152   : > { %v2561_v59 = vpop.f32.mrf.mxu1  ;;  %v2251_v25 = vpop.f32.mrf.mxu0 }
 0x153   : > { %v1756_v14 = vpop.f32.mrf.mxu3 }
 0x154   : > { %v8371_v46 = vadd.f32 %v1756_v14, %v8245_v17  ;;  %6955 = vmatmul.msk.f32.gmra.mxu2 %vm957_vm2, %v2737_v39 }
 0x155   : > { %6921 = vmatmul.msk.f32.gmra.mxu1 %vm957_vm2, %v10835_v52  ;;  %6887 = vmatmul.msk.f32.gmra.mxu0 %vm957_vm2, %v10836_v53  ;;  %v10841_v52 = vld [vmem:[#allocation67_spill] sm:$0xff]  ;;  %v10842_v53 = vld [vmem:[#allocation45_spill] sm:$0xff] }
 0x156   : > { %v2739_v19 = vmul.f32 %v10842_v53, %v10841_v52 }
 0x157   : > { %6853 = vmatmul.msk.f32.gmra.mxu3 %vm957_vm2, %v1839_v49  ;;  %v2871_v27 = vpop.f32.mrf.mxu2 }
 0x15a   : > { %v2564_v38 = vpop.f32.mrf.mxu1  ;;  %v2254_v15 = vpop.f32.mrf.mxu0 }
 0x15b   : > { %v1973_v17 = vpop.f32.mrf.mxu3 }
 0x15c   : > { %v2069_v12 = vadd.f32 %v1973_v17, %v10839_v5  ;;  %6956 = vmatmul.msk.f32.gmra.mxu2 %vm957_vm2, %v8032_v56 }
 0x15d   : > { %6922 = vmatmul.msk.f32.gmra.mxu1 %vm957_vm2, %v2428_v62  ;;  %6888 = vmatmul.msk.f32.gmra.mxu0 %vm957_vm2, %v10840_v44  ;;  %v1841_v62 = vmul.f32 %v10842_v53, %v10833_v2  ;;  %v10846_v44 = vld [vmem:[#allocation62_spill] sm:$0xff] }
 0x15e   : > { %v2347_v39 = vadd.f32 %v2251_v25, %v2069_v12 }
 0x15f   : > { %6854 = vmatmul.msk.f32.gmra.mxu3 %vm957_vm2, %v10831_v58  ;;  %v2874_v49 = vpop.f32.mrf.mxu2  ;;  %v10845_v58 = vld [vmem:[#allocation60_spill] sm:$0xff] }
 0x160   : > { %v2657_v14 = vadd.f32 %v2561_v59, %v2347_v39  ;;  %v10844_v59 = vld [vmem:[#allocation59_spill] sm:$0xff]  ;;  %v10847_v39 = vld [vmem:[#allocation50_spill] sm:$0xff] }
 0x162   : > { %v8393_v34 = vadd.f32 %v2871_v27, %v2657_v14  ;;  %v2567_v17 = vpop.f32.mrf.mxu1  ;;  %v2257_v42 = vpop.f32.mrf.mxu0 }
 0x163   : > { %v1976_v5 = vpop.f32.mrf.mxu3 }
 0x164   : > { %v2070_v10 = vadd.f32 %v1976_v5, %v10843_v6  ;;  %6957 = vmatmul.msk.f32.gmra.mxu2 %vm957_vm2, %v2739_v19  ;;  %v2430_v6 = vmul.f32 %v10847_v39, %v10846_v44  ;;  %v10848_v19 = vld [vmem:[#allocation53_spill] sm:$0xff] }
 0x165   : > { %6923 = vmatmul.msk.f32.gmra.mxu1 %vm957_vm2, %v10844_v59  ;;  %6889 = vmatmul.msk.f32.gmra.mxu0 %vm957_vm2, %v10845_v58  ;;  %v10850_v59 = vld [vmem:[#allocation56_spill] sm:$0xff] }
 0x166   : > { %v2348_v25 = vadd.f32 %v2254_v15, %v2070_v10  ;;  %v10849_v10 = vld [vmem:[#allocation65_spill] sm:$0xff] }
 0x167   : > { %6855 = vmatmul.msk.f32.gmra.mxu3 %vm957_vm2, %v1841_v62  ;;  %v2877_v12 = vpop.f32.mrf.mxu2  ;;  %v2709_v15 = vld [vmem:[%s7497_s14 + $0xcf] sm:$0xff] }
 0x168   : > { %v2658_v27 = vadd.f32 %v2564_v38, %v2348_v25  ;;  %v2741_v58 = vmul.f32 %v10850_v59, %v2709_v15 }
 0x16a   : > { %v8406_v14 = vadd.f32 %v2874_v49, %v2658_v27  ;;  %v2260_v5 = vpop.f32.mrf.mxu0  ;;  %v2570_v30 = vpop.f32.mrf.mxu1 }
 0x16b   : > { %v1979_v2 = vpop.f32.mrf.mxu3 }
 0x16c   : > { %v2071_v53 = vadd.f32 %v1979_v2, %v10848_v19  ;;  %6958 = vmatmul.msk.f32.gmra.mxu2 %vm957_vm2, %v8098_v7  ;;  %v10851_v2 = vld [vmem:[#allocation58_spill] sm:$0xff] }
 0x16d   : > { %6924 = vmatmul.msk.f32.gmra.mxu1 %vm957_vm2, %v2430_v6  ;;  %6890 = vmatmul.msk.f32.gmra.mxu0 %vm957_vm2, %v10849_v10  ;;  %v1843_v6 = vmul.f32 %v10850_v59, %v10841_v52  ;;  %v2710_v52 = vld [vmem:[%s7497_s14 + $0xd7] sm:$0xff] }
 0x16e   : > { %v2349_v38 = vadd.f32 %v2257_v42, %v2071_v53  ;;  %v10852_v42 = vld [vmem:[#allocation69_spill] sm:$0xff]  ;;  %v10853_v53 = vld [vmem:[#allocation70_spill] sm:$0xff] }
 0x16f   : > { %6856 = vmatmul.msk.f32.gmra.mxu3 %vm957_vm2, %v8032_v56  ;;  %v2880_v49 = vpop.f32.mrf.mxu2 }
 0x170   : > { %v2659_v62 = vadd.f32 %v2567_v17, %v2349_v38  ;;  %v10854_v38 = vld [vmem:[#allocation61_spill] sm:$0xff] }
 0x172   : > { %v8418_v25 = vadd.f32 %v2877_v12, %v2659_v62  ;;  %v2263_v44 = vpop.f32.mrf.mxu0  ;;  %v2573_v17 = vpop.f32.mrf.mxu1  ;;  %v2432_v62 = vmul.f32 %v10854_v38, %v8081_v18  ;;  %v2711_v18 = vld [vmem:[%s7497_s14 + $0xdf] sm:$0xff] }
 0x173   : > { %v1982_v27 = vpop.f32.mrf.mxu3  ;;  %v8487_v38 = vld [vmem:[%s7497_s14 + $0xe0] sm:$0xff] }
 0x174   : > { %v2072_v19 = vadd.f32 %v1982_v27, %v10851_v2  ;;  %6959 = vmatmul.msk.f32.gmra.mxu2 %vm957_vm2, %v2741_v58 }
 0x175   : > { %6925 = vmatmul.msk.f32.gmra.mxu1 %vm957_vm2, %v10852_v42  ;;  %6891 = vmatmul.msk.f32.gmra.mxu0 %vm957_vm2, %v10853_v53  ;;  %v10855_v42 = vld [vmem:[#allocation64_spill] sm:$0xff] }
 0x176   : > { %v2350_v56 = vadd.f32 %v2260_v5, %v2072_v19  ;;  %v3730_v5 = vld [vmem:[%s10586_s3 + $0x10] sm:$0xff] }
 0x177   : > { %6857 = vmatmul.msk.f32.gmra.mxu3 %vm957_vm2, %v1843_v6  ;;  %v2883_v10 = vpop.f32.mrf.mxu2  ;;  %3841 = vmatpush.msra.mxu1 %v3730_v5  ;;  %v10856_v6 = vld [vmem:[#allocation66_spill] sm:$0xff] }
 0x178   : > { %v2660_v12 = vadd.f32 %v2570_v30, %v2350_v56  ;;  %v2743_v53 = vmul.f32 %v10856_v6, %v2711_v18 }
 0x17a   : > { %v8431_v27 = vadd.f32 %v2880_v49, %v2660_v12  ;;  %v2266_v2 = vpop.f32.mrf.mxu0  ;;  %v2576_v19 = vpop.f32.mrf.mxu1 }
 0x17b   : > { %v1985_v58 = vpop.f32.mrf.mxu3 }
 0x17c   : > { %v2073_v59 = vadd.f32 %v1985_v58, %v10855_v42  ;;  %6960 = vmatmul.msk.f32.gmra.mxu2 %vm957_vm2, %v2710_v52  ;;  %v8449_v58 = vld [vmem:[%s7497_s14 + $0xd1] sm:$0xff] }
 0x17d   : > { %6926 = vmatmul.msk.f32.gmra.mxu1 %vm957_vm2, %v2432_v62  ;;  %6892 = vmatmul.msk.f32.gmra.mxu0 %vm957_vm2, %v8093_v11  ;;  %v8452_v11 = vld [vmem:[%s7497_s14 + $0xd0] sm:$0xff] }
 0x17e   : > { %v2351_v30 = vadd.f32 %v2263_v44, %v2073_v59  ;;  %v10858_v59 = vld [vmem:[#allocation68_spill] sm:$0xff] }
 0x17f   : > { %6858 = vmatmul.msk.f32.gmra.mxu3 %vm957_vm2, %v8098_v7  ;;  %v2886_v12 = vpop.f32.mrf.mxu2 }
 0x180   : > { %v2661_v49 = vadd.f32 %v2573_v17, %v2351_v30  ;;  %v1845_v17 = vmul.f32 %v10856_v6, %v2709_v15  ;;  %v10859_v30 = vld [vmem:[#allocation71_spill] sm:$0xff] }
 0x182   : > { %v8446_v56 = vadd.f32 %v2883_v10, %v2661_v49  ;;  %v2269_v42 = vpop.f32.mrf.mxu0  ;;  %v8462_v10 = vld [vmem:[%s7497_s14 + $0xd9] sm:$0xff]  ;;  %v2579_v15 = vpop.f32.mrf.mxu1 }
 0x183   : > { %v1988_v62 = vpop.f32.mrf.mxu3  ;;  %v2434_v49 = vmul.f32 %v10859_v30, %v8462_v10 }
 0x184   : > { %10857 = vst [vmem:[#allocation26_spill] sm:$0xff] %v8446_v56  ;;  %v2074_v44 = vadd.f32 %v1988_v62, %v10858_v59  ;;  %6961 = vmatmul.msk.f32.gmra.mxu2 %vm957_vm2, %v2743_v53  ;;  %v2712_v53 = vld [vmem:[%s7497_s14 + $0xe7] sm:$0xff] }
 0x185   : > { %6927 = vmatmul.msk.f32.gmra.mxu1 %vm957_vm2, %v8449_v58  ;;  %6893 = vmatmul.msk.f32.gmra.mxu0 %vm957_vm2, %v8452_v11 }
 0x186   : > { %v2352_v7 = vadd.f32 %v2266_v2, %v2074_v44  ;;  %v10861_v2 = vld [vmem:[#allocation73_spill] sm:$0xff] }
 0x187   : > { %6859 = vmatmul.msk.f32.gmra.mxu3 %vm957_vm2, %v1845_v17  ;;  %v2889_v56 = vpop.f32.mrf.mxu2 }
 0x188   : > { %v2662_v5 = vadd.f32 %v2576_v19, %v2352_v7  ;;  %v10862_v7 = vld [vmem:[#allocation4_spill] sm:$0xff] }
 0x18a   : > { %v8467_v62 = vadd.f32 %v2886_v12, %v2662_v5  ;;  %v2272_v6 = vpop.f32.mrf.mxu0  ;;  %v2713_v12 = vld [vmem:[%s7497_s14 + $0xef] sm:$0xff] }
 0x18b   : > { %v1991_v59 = vpop.f32.mrf.mxu3  ;;  %v2745_v5 = vmul.f32 %v10862_v7, %v2713_v12 }
 0x18c   : > { %10860 = vst [vmem:[#allocation19_spill] sm:$0xff] %v8467_v62  ;;  %v2075_v44 = vadd.f32 %v1991_v59, %v10861_v2  ;;  %6962 = vmatmul.msk.f32.gmra.mxu2 %vm957_vm2, %v2712_v53  ;;  %v8484_v62 = vld [vmem:[%s7497_s14 + $0xe1] sm:$0xff] }
 0x18d   : > { %6928 = vmatmul.msk.f32.gmra.mxu1 %vm957_vm2, %v2434_v49  ;;  %6894 = vmatmul.msk.f32.gmra.mxu0 %vm957_vm2, %v8471_v8 }
 0x18e   : > { %v2353_v19 = vadd.f32 %v2269_v42, %v2075_v44  ;;  %v1847_v42 = vmul.f32 %v10862_v7, %v2711_v18  ;;  %v2582_v44 = vpop.f32.mrf.mxu1 }
 0x18f   : > { %6860 = vmatmul.msk.f32.gmra.mxu3 %vm957_vm2, %v2710_v52 }
 0x190   : > { %v2663_v17 = vadd.f32 %v2579_v15, %v2353_v19  ;;  %v2892_v15 = vpop.f32.mrf.mxu2 }
 0x192   : > { %v8481_v30 = vadd.f32 %v2889_v56, %v2663_v17  ;;  %v2275_v2 = vpop.f32.mrf.mxu0  ;;  %v8497_v56 = vld [vmem:[%s7497_s14 + $0xe9] sm:$0xff] }
 0x193   : > { %v1994_v59 = vpop.f32.mrf.mxu3 }
 0x194   : > { %10863 = vst [vmem:[#allocation28_spill] sm:$0xff] %v8481_v30  ;;  %v2076_v49 = vadd.f32 %v1994_v59, %v8108_v29  ;;  %6963 = vmatmul.msk.f32.gmra.mxu2 %vm957_vm2, %v2745_v5  ;;  %v10864_v29 = vld [vmem:[#allocation41_spill] sm:$0xff]  ;;  %v8506_v30 = vld [vmem:[%s7497_s14 + $0xe8] sm:$0xff] }
 0x195   : > { %6929 = vmatmul.msk.f32.gmra.mxu1 %vm957_vm2, %v8484_v62  ;;  %6895 = vmatmul.msk.f32.gmra.mxu0 %vm957_vm2, %v8487_v38  ;;  %v2436_v18 = vmul.f32 %v10864_v29, %v8497_v56  ;;  %v2714_v5 = vld [vmem:[%s7497_s14 + $0xf7] sm:$0xff] }
 0x196   : > { %v2354_v52 = vadd.f32 %v2272_v6, %v2076_v49 }
 0x197   : > { %6861 = vmatmul.msk.f32.gmra.mxu3 %vm957_vm2, %v1847_v42  ;;  %v2715_v42 = vld [vmem:[%s7497_s14 + $0xff] sm:$0xff] }
 0x198   : > { %v2664_v19 = vadd.f32 %v2582_v44, %v2354_v52  ;;  %v10865_v44 = vld [vmem:[#allocation7_spill] sm:$0xff] }
 0x199   : > { %v2747_v52 = vmul.f32 %v10865_v44, %v2715_v42  ;;  %v1849_v29 = vmul.f32 %v10865_v44, %v2713_v12  ;;  %v2716_v12 = vld [vmem:[%s7497_s14 + $0x107] sm:$0xff]  ;;  %v8541_v44 = vld [vmem:[%s7497_s14 + $0xf8] sm:$0xff] }
 0x19a   : > { %v8502_v17 = vadd.f32 %v2892_v15, %v2664_v19  ;;  %v2278_v7 = vpop.f32.mrf.mxu0  ;;  %v8519_v15 = vld [vmem:[%s7497_s14 + $0xf1] sm:$0xff] }
 0x19b   : > { %v1997_v59 = vpop.f32.mrf.mxu3  ;;  %10866 = vst [vmem:[#allocation21_spill] sm:$0xff] %v8519_v15 }
 0x19c   : > { %v2077_v6 = vadd.f32 %v1997_v59, %v8123_v20  ;;  %6964 = vmatmul.msk.f32.gmra.mxu2 %vm957_vm2, %v2714_v5  ;;  %v8522_v59 = vld [vmem:[%s7497_s14 + $0xf0] sm:$0xff] }
 0x19d   : > { %6930 = vmatmul.msk.f32.gmra.mxu1 %vm957_vm2, %v2436_v18  ;;  %6896 = vmatmul.msk.f32.gmra.mxu0 %vm957_vm2, %v8506_v30  ;;  %10867 = vst [vmem:[#allocation22_spill] sm:$0xff] %v8522_v59 }
 0x19e   : > { %v8513_v49 = vadd.f32 %v2275_v2, %v2077_v6  ;;  %v8534_v2 = vld [vmem:[%s7497_s14 + $0xf9] sm:$0xff] }
 0x19f   : > { %6862 = vmatmul.msk.f32.gmra.mxu3 %vm957_vm2, %v2712_v53  ;;  %10869 = vst [vmem:[#allocation34_spill] sm:$0xff] %v8534_v2 }
 0x1a2   : > { %v2281_v19 = vpop.f32.mrf.mxu0 }
 0x1a3   : > { %v2000_v20 = vpop.f32.mrf.mxu3 }
 0x1a4   : > { %v2078_v18 = vadd.f32 %v2000_v20, %v8139_v35  ;;  %6965 = vmatmul.msk.f32.gmra.mxu2 %vm957_vm2, %v2747_v52  ;;  %v10870_v35 = vld [vmem:[#allocation52_spill] sm:$0xff] }
 0x1a5   : > { %6931 = vmatmul.msk.f32.gmra.mxu1 %vm957_vm2, %v8519_v15  ;;  %6897 = vmatmul.msk.f32.gmra.mxu0 %vm957_vm2, %v8522_v59  ;;  %v2438_v6 = vmul.f32 %v10870_v35, %v8534_v2  ;;  %v8557_v2 = vld [vmem:[%s7497_s14 + $0x100] sm:$0xff] }
 0x1a6   : > { %v8531_v53 = vadd.f32 %v2278_v7, %v2078_v18  ;;  %v10871_v18 = vld [vmem:[#allocation10_spill] sm:$0xff] }
 0x1a7   : > { %6863 = vmatmul.msk.f32.gmra.mxu3 %vm957_vm2, %v1849_v29  ;;  %v2717_v29 = vld [vmem:[%s7497_s14 + $0x10f] sm:$0xff]  ;;  %v1851_v59 = vmul.f32 %v10871_v18, %v2715_v42 }
 0x1a8   : > { %10868 = vst [vmem:[#allocation24_spill] sm:$0xff] %v8531_v53  ;;  %v2749_v35 = vmul.f32 %v10871_v18, %v2717_v29  ;;  %v8554_v53 = vld [vmem:[%s7497_s14 + $0x101] sm:$0xff] }
 0x1a9   : > { %10872 = vst [vmem:[#allocation25_spill] sm:$0xff] %v8554_v53  ;;  %v8576_v18 = vld [vmem:[%s7497_s14 + $0x108] sm:$0xff] }
 0x1aa   : > { %v2284_v20 = vpop.f32.mrf.mxu0  ;;  %10875 = vst [vmem:[#allocation29_spill] sm:$0xff] %v8576_v18 }
 0x1ab   : > { %v2003_v52 = vpop.f32.mrf.mxu3 }
 0x1ac   : > { %v2079_v15 = vadd.f32 %v2003_v52, %v8156_v13  ;;  %6966 = vmatmul.msk.f32.gmra.mxu2 %vm957_vm2, %v2716_v12 }
 0x1ad   : > { %6932 = vmatmul.msk.f32.gmra.mxu1 %vm957_vm2, %v2438_v6  ;;  %6898 = vmatmul.msk.f32.gmra.mxu0 %vm957_vm2, %v8541_v44 }
 0x1ae   : > { %v8548_v7 = vadd.f32 %v2281_v19, %v2079_v15  ;;  %v8569_v15 = vld [vmem:[%s7497_s14 + $0x109] sm:$0xff]  ;;  %v10874_v19 = vld [vmem:[#allocation63_spill] sm:$0xff] }
 0x1af   : > { %6864 = vmatmul.msk.f32.gmra.mxu3 %vm957_vm2, %v2714_v5 }
 0x1b2   : > { %v2287_v52 = vpop.f32.mrf.mxu0 }
 0x1b3   : > { %v2006_v13 = vpop.f32.mrf.mxu3 }
 0x1b4   : > { %v2080_v6 = vadd.f32 %v2006_v13, %v8172_v54  ;;  %6967 = vmatmul.msk.f32.gmra.mxu2 %vm957_vm2, %v2749_v35  ;;  %v2440_v54 = vmul.f32 %v10874_v19, %v8569_v15  ;;  %v2718_v13 = vld [vmem:[%s7497_s14 + $0x117] sm:$0xff] }
 0x1b5   : > { %6933 = vmatmul.msk.f32.gmra.mxu1 %vm957_vm2, %v8554_v53  ;;  %6899 = vmatmul.msk.f32.gmra.mxu0 %vm957_vm2, %v8557_v2 }
 0x1b6   : > { %v8566_v5 = vadd.f32 %v2284_v20, %v2080_v6  ;;  %v3729_v20 = vld [vmem:[%s10586_s3 + $0x8] sm:$0xff]  ;;  %v2719_v6 = vld [vmem:[%s7497_s14 + $0x11f] sm:$0xff] }
 0x1b7   : > { %6865 = vmatmul.msk.f32.gmra.mxu3 %vm957_vm2, %v1851_v59  ;;  %3842 = vmatpush.msra.mxu1 %v3729_v20 }
 0x1b8   : > { %10873 = vst [vmem:[#allocation36_spill] sm:$0xff] %v8566_v5  ;;  %v8595_v5 = vld [vmem:[%s7497_s14 + $0x111] sm:$0xff] }
 0x1b9   : > { %10877 = vst [vmem:[#allocation30_spill] sm:$0xff] %v8595_v5 }
 0x1ba   : > { %v2290_v35 = vpop.f32.mrf.mxu0 }
 0x1bb   : > { %v2009_v42 = vpop.f32.mrf.mxu3 }
 0x1bc   : > { %v2081_v53 = vadd.f32 %v2009_v42, %v8189_v48  ;;  %6968 = vmatmul.msk.f32.gmra.mxu2 %vm957_vm2, %v2718_v13  ;;  %v7074_v48 = vld [vmem:[%s10586_s3 + $0x38] sm:$0xff]  ;;  %v10876_v42 = vld [vmem:[#allocation13_spill] sm:$0xff] }
 0x1bd   : > { %6934 = vmatmul.msk.f32.gmra.mxu1 %vm957_vm2, %v2440_v54  ;;  %6900 = vmatmul.msk.f32.gmra.mxu0 %vm957_vm2, %v8576_v18  ;;  %v2751_v19 = vmul.f32 %v10876_v42, %v2719_v6  ;;  %v1853_v20 = vmul.f32 %v10876_v42, %v2717_v29  ;;  %v8610_v6 = vld [vmem:[%s7497_s14 + $0x119] sm:$0xff]  ;;  %v2720_v29 = vld [vmem:[%s7497_s14 + $0x127] sm:$0xff] }
 0x1be   : > { %v8586_v59 = vadd.f32 %v2287_v52, %v2081_v53  ;;  %4118 = vmatpush.msra.mxu2 %v7074_v48  ;;  %v8598_v53 = vld [vmem:[%s7497_s14 + $0x110] sm:$0xff]  ;;  %10879 = vst [vmem:[#allocation44_spill] sm:$0xff] %v8610_v6  ;;  %v10880_v48 = vld [vmem:[#allocation72_spill] sm:$0xff]  ;;  %v8617_v42 = vld [vmem:[%s7497_s14 + $0x118] sm:$0xff] }
 0x1bf   : > { %6866 = vmatmul.msk.f32.gmra.mxu3 %vm957_vm2, %v2716_v12 }
 0x1c2   : > { %v2293_v18 = vpop.f32.mrf.mxu0 }
 0x1c3   : > { %v2012_v54 = vpop.f32.mrf.mxu3 }
 0x1c4   : > { %v2082_v52 = vadd.f32 %v2012_v54, %v8205_v50  ;;  %6969 = vmatmul.msk.f32.gmra.mxu2 %vm957_vm2, %v2751_v19  ;;  %v2442_v50 = vmul.f32 %v10880_v48, %v8610_v6  ;;  %v3277_v48 = vld [vmem:[%s7497_s14 + $0x31] sm:$0xff] }
 0x1c5   : > { %6935 = vmatmul.msk.f32.gmra.mxu1 %vm957_vm2, %v8595_v5  ;;  %6901 = vmatmul.msk.f32.gmra.mxu0 %vm957_vm2, %v8598_v53  ;;  %v2999_v6 = vld [vmem:[%s7497_s14 + $0x30] sm:$0xff] }
 0x1c6   : > { %v8607_v12 = vadd.f32 %v2290_v35, %v2082_v52 }
 0x1c7   : > { %6867 = vmatmul.msk.f32.gmra.mxu3 %vm957_vm2, %v1853_v20 }
 0x1c8   : > { %10878 = vst [vmem:[#allocation32_spill] sm:$0xff] %v8607_v12 }
 0x1ca   : > { %v2296_v19 = vpop.f32.mrf.mxu0 }
 0x1cb   : > { %v2015_v54 = vpop.f32.mrf.mxu3 }
 0x1cc   : > { %v2083_v5 = vadd.f32 %v2015_v54, %v8222_v43  ;;  %6970 = vmatmul.msk.f32.gmra.mxu2 %vm957_vm2, %v2720_v29  ;;  %v3000_v54 = vld [vmem:[%s7497_s14 + $0x38] sm:$0xff] }
 0x1cd   : > { %6936 = vmatmul.msk.f32.gmra.mxu1 %vm957_vm2, %v2442_v50  ;;  %6902 = vmatmul.msk.f32.gmra.mxu0 %vm957_vm2, %v8617_v42  ;;  %v3278_v50 = vld [vmem:[%s7497_s14 + $0x39] sm:$0xff] }
 0x1ce   : > { %v8624_v35 = vadd.f32 %v2293_v18, %v2083_v5  ;;  %v3310_v18 = vmul.f32 %v7516_v21, %v3278_v50  ;;  %v8645_v50 = vpop.f32.mrf.mxu1  ;;  %v3003_v21 = vld [vmem:[%s7497_s14 + $0x50] sm:$0xff] }
 0x1cf   : > { %6868 = vmatmul.msk.f32.gmra.mxu3 %vm957_vm2, %v2718_v13 }
 0x1d2   : > { %v2299_v20 = vpop.f32.mrf.mxu0 }
 0x1d3   : > { %v2018_v52 = vpop.f32.mrf.mxu3 }
 0x1d4   : > { %v2084_v12 = vadd.f32 %v2018_v52, %v8238_v60  ;;  %v3001_v52 = vld [vmem:[%s7497_s14 + $0x40] sm:$0xff] }
 0x1d5   : > { %7007 = vmatmul.msk.f32.vlgmr.msra.gmra.mxu0 %vm957_vm2, %v3277_v48 }
 0x1d6   : > { %v8631_v43 = vadd.f32 %v2296_v19, %v2084_v12  ;;  %v3279_v19 = vld [vmem:[%s7497_s14 + $0x41] sm:$0xff] }
 0x1d7   : > { %6973 = vmatmul.msk.f32.vlgmr.msra.gmra.mxu3 %vm957_vm2, %v2999_v6 }
 0x1da   : > { %v2302_v13 = vpop.f32.mrf.mxu0 }
 0x1db   : > { %v2021_v5 = vpop.f32.mrf.mxu3 }
 0x1dc   : > { %v2085_v29 = vadd.f32 %v2021_v5, %v8255_v23  ;;  %v3280_v5 = vld [vmem:[%s7497_s14 + $0x49] sm:$0xff] }
 0x1dd   : > { %7008 = vmatmul.msk.f32.gmra.mxu0 %vm957_vm2, %v3310_v18 }
 0x1de   : > { %v8639_v60 = vadd.f32 %v2299_v20, %v2085_v29  ;;  %v3312_v20 = vmul.f32 %v7557_v41, %v3280_v5  ;;  %v3281_v5 = vld [vmem:[%s7497_s14 + $0x51] sm:$0xff] }
 0x1df   : > { %6974 = vmatmul.msk.f32.gmra.mxu3 %vm957_vm2, %v3000_v54  ;;  %v8653_v54 = vpop.f32.mrf.mxu2 }
 0x1e0   : > { %10881 = vst [vmem:[#allocation33_spill] sm:$0xff] %v8639_v60 }
 0x1e2   : > { %v2305_v48 = vpop.f32.mrf.mxu0 }
 0x1e3   : > { %v2024_v12 = vpop.f32.mrf.mxu3 }
 0x1e4   : > { %v2086_v6 = vadd.f32 %v2024_v12, %v8270_v26  ;;  %v3002_v12 = vld [vmem:[%s7497_s14 + $0x48] sm:$0xff] }
 0x1e5   : > { %7009 = vmatmul.msk.f32.gmra.mxu0 %vm957_vm2, %v3279_v19 }
 0x1e6   : > { %v8648_v23 = vadd.f32 %v2302_v13, %v2086_v6  ;;  %v8660_v13 = vpop.f32.mrf.mxu1 }
 0x1e7   : > { %6975 = vmatmul.msk.f32.gmra.mxu3 %vm957_vm2, %v3001_v52 }
 0x1e8   : > { %10882 = vst [vmem:[#allocation46_spill] sm:$0xff] %v8648_v23  ;;  %v8666_v23 = vpop.f32.mrf.mxu2 }
 0x1ea   : > { %v2308_v29 = vpop.f32.mrf.mxu0 }
 0x1eb   : > { %v2027_v18 = vpop.f32.mrf.mxu3 }
 0x1ec   : > { %v2087_v26 = vadd.f32 %v2027_v18, %v8286_v9 }
 0x1ed   : > { %7010 = vmatmul.msk.f32.gmra.mxu0 %vm957_vm2, %v3312_v20  ;;  %v3282_v20 = vld [vmem:[%s7497_s14 + $0x59] sm:$0xff] }
 0x1ee   : > { %v8658_v19 = vadd.f32 %v2305_v48, %v2087_v26  ;;  %v8673_v48 = vpop.f32.mrf.mxu1  ;;  %v3314_v18 = vmul.f32 %v7606_v61, %v3282_v20 }
 0x1ef   : > { %6976 = vmatmul.msk.f32.gmra.mxu3 %vm957_vm2, %v3002_v12 }
 0x1f0   : > { %10883 = vst [vmem:[#allocation37_spill] sm:$0xff] %v8658_v19 }
 0x1f2   : > { %v2311_v52 = vpop.f32.mrf.mxu0 }
 0x1f3   : > { %v2030_v6 = vpop.f32.mrf.mxu3 }
 0x1f4   : > { %v2088_v41 = vadd.f32 %v2030_v6, %v8301_v63  ;;  %v3728_v6 = vld [vmem:[%s10586_s3] sm:$0xff] }
 0x1f5   : > { %7011 = vmatmul.msk.f32.gmra.mxu0 %vm957_vm2, %v3281_v5  ;;  %v3004_v5 = vld [vmem:[%s7497_s14 + $0x58] sm:$0xff]  ;;  %3843 = vmatpush.msra.mxu1 %v3728_v6 }
 0x1f6   : > { %v8669_v9 = vadd.f32 %v2308_v29, %v2088_v41  ;;  %v7073_v41 = vld [vmem:[%s10586_s3 + $0x30] sm:$0xff]  ;;  %v8687_v29 = vpop.f32.mrf.mxu2  ;;  %v8691_v61 = vpop.f32.mrf.mxu1 }
 0x1f7   : > { %6977 = vmatmul.msk.f32.gmra.mxu3 %vm957_vm2, %v3003_v21  ;;  %4119 = vmatpush.msra.mxu2 %v7073_v41 }
 0x1f8   : > { %10884 = vst [vmem:[#allocation38_spill] sm:$0xff] %v8669_v9 }
 0x1fa   : > { %v2314_v12 = vpop.f32.mrf.mxu0 }
 0x1fb   : > { %v2033_v26 = vpop.f32.mrf.mxu3 }
 0x1fc   : > { %v2089_v63 = vadd.f32 %v2033_v26, %v8317_v40  ;;  %v3283_v26 = vld [vmem:[%s7497_s14 + $0x61] sm:$0xff] }
 0x1fd   : > { %7012 = vmatmul.msk.f32.gmra.mxu0 %vm957_vm2, %v3314_v18  ;;  %v3005_v18 = vld [vmem:[%s7497_s14 + $0x60] sm:$0xff] }
 0x1fe   : > { %v8682_v21 = vadd.f32 %v2311_v52, %v2089_v63  ;;  %v3284_v63 = vld [vmem:[%s7497_s14 + $0x69] sm:$0xff]  ;;  %v8700_v41 = vpop.f32.mrf.mxu2 }
 0x1ff   : > { %6978 = vmatmul.msk.f32.gmra.mxu3 %vm957_vm2, %v3004_v5  ;;  %v3316_v5 = vmul.f32 %v7655_v22, %v3284_v63  ;;  %v3007_v22 = vld [vmem:[%s7497_s14 + $0x70] sm:$0xff] }
 0x200   : > { %10885 = vst [vmem:[#allocation40_spill] sm:$0xff] %v8682_v21 }
 0x202   : > { %v2317_v20 = vpop.f32.mrf.mxu0 }
 0x203   : > { %v2036_v40 = vpop.f32.mrf.mxu3 }
 0x204   : > { %v2090_v6 = vadd.f32 %v2036_v40, %v8335_v37  ;;  %v3006_v37 = vld [vmem:[%s7497_s14 + $0x68] sm:$0xff]  ;;  %v8705_v40 = vpop.f32.mrf.mxu1 }
 0x205   : > { %7013 = vmatmul.msk.f32.gmra.mxu0 %vm957_vm2, %v3283_v26 }
 0x206   : > { %v8696_v52 = vadd.f32 %v2314_v12, %v2090_v6 }
 0x207   : > { %6979 = vmatmul.msk.f32.gmra.mxu3 %vm957_vm2, %v3005_v18  ;;  %v3285_v18 = vld [vmem:[%s7497_s14 + $0x71] sm:$0xff] }
 0x208   : > { %10886 = vst [vmem:[#allocation55_spill] sm:$0xff] %v8696_v52  ;;  %v8712_v52 = vpop.f32.mrf.mxu2 }
 0x20a   : > { %v2320_v9 = vpop.f32.mrf.mxu0 }
 0x20b   : > { %v2039_v21 = vpop.f32.mrf.mxu3 }
 0x20c   : > { %v2091_v19 = vadd.f32 %v2039_v21, %v8351_v28  ;;  %v3286_v21 = vld [vmem:[%s7497_s14 + $0x79] sm:$0xff] }
 0x20d   : > { %7014 = vmatmul.msk.f32.gmra.mxu0 %vm957_vm2, %v3316_v5  ;;  %v8720_v5 = vpop.f32.mrf.mxu1 }
 0x20e   : > { %v8708_v12 = vadd.f32 %v2317_v20, %v2091_v19  ;;  %v3318_v19 = vmul.f32 %v7699_v45, %v3286_v21  ;;  %v3287_v21 = vld [vmem:[%s7497_s14 + $0x81] sm:$0xff] }
 0x20f   : > { %6980 = vmatmul.msk.f32.gmra.mxu3 %vm957_vm2, %v3006_v37 }
 0x210   : > { %10887 = vst [vmem:[#allocation43_spill] sm:$0xff] %v8708_v12 }
 0x212   : > { %v2323_v6 = vpop.f32.mrf.mxu0 }
 0x213   : > { %v2042_v26 = vpop.f32.mrf.mxu3 }
 0x214   : > { %v2092_v63 = vadd.f32 %v2042_v26, %v8366_v1  ;;  %v3008_v1 = vld [vmem:[%s7497_s14 + $0x78] sm:$0xff]  ;;  %v8726_v26 = vpop.f32.mrf.mxu2 }
 0x215   : > { %7015 = vmatmul.msk.f32.gmra.mxu0 %vm957_vm2, %v3285_v18  ;;  %v8732_v18 = vpop.f32.mrf.mxu1 }
 0x216   : > { %v8717_v28 = vadd.f32 %v2320_v9, %v2092_v63 }
 0x217   : > { %6981 = vmatmul.msk.f32.gmra.mxu3 %vm957_vm2, %v3007_v22 }
 0x218   : > { %10888 = vst [vmem:[#allocation57_spill] sm:$0xff] %v8717_v28  ;;  %v3009_v28 = vld [vmem:[%s7497_s14 + $0x80] sm:$0xff] }
 0x21a   : > { %v2326_v37 = vpop.f32.mrf.mxu0 }
 0x21b   : > { %v2045_v20 = vpop.f32.mrf.mxu3 }
 0x21c   : > { %v2093_v12 = vadd.f32 %v2045_v20, %v8261_v0  ;;  %v3288_v20 = vld [vmem:[%s7497_s14 + $0x89] sm:$0xff]  ;;  %v8741_v60 = vpop.f32.mrf.mxu2 }
 0x21d   : > { %7016 = vmatmul.msk.f32.gmra.mxu0 %vm957_vm2, %v3318_v19 }
 0x21e   : > { %v8729_v9 = vadd.f32 %v2323_v6, %v2093_v12  ;;  %v3320_v12 = vmul.f32 %v10814_v32, %v3288_v20  ;;  %v7072_v20 = vld [vmem:[%s10586_s3 + $0x28] sm:$0xff] }
 0x21f   : > { %6982 = vmatmul.msk.f32.gmra.mxu3 %vm957_vm2, %v3008_v1  ;;  %v8745_v1 = vpop.f32.mrf.mxu1  ;;  %4120 = vmatpush.msra.mxu2 %v7072_v20 }
 0x220   : > { %10889 = vst [vmem:[#allocation48_spill] sm:$0xff] %v8729_v9 }
 0x222   : > { %v2329_v63 = vpop.f32.mrf.mxu0 }
 0x223   : > { %v2048_v22 = vpop.f32.mrf.mxu3 }
 0x224   : > { %v2094_v45 = vadd.f32 %v2048_v22, %v8276_v4  ;;  %v3010_v4 = vld [vmem:[%s7497_s14 + $0x88] sm:$0xff]  ;;  %v7110_v22 = vld [vmem:[%s10586_s3 + $0x58] sm:$0xff] }
 0x225   : > { %7017 = vmatmul.msk.f32.gmra.mxu0 %vm957_vm2, %v3287_v21  ;;  %4428 = vmatpush.msrb.mxu3 %v7110_v22  ;;  %v3290_v22 = vld [vmem:[%s7497_s14 + $0x99] sm:$0xff] }
 0x226   : > { %v8738_v0 = vadd.f32 %v2326_v37, %v2094_v45  ;;  %v10892_v37 = vmov 0.0  }
 0x227   : > { %6983 = vmatmul.msk.f32.gmra.mxu3 %vm957_vm2, %v3009_v28  ;;  %3622 = vst.msk [vmem:[#allocation2 + $0x10] sm:$0xff] %vm3619_vm5, %v10892_v37  ;;  %v8755_v28 = vpop.f32.mrf.mxu2 }
 0x228   : > { %10890 = vst [vmem:[#allocation49_spill] sm:$0xff] %v8738_v0 }
 0x229   : > { %3621 = vst.msk [vmem:[#allocation2 + $0x8] sm:$0xff] %vm3619_vm5, %v10892_v37 }
 0x22a   : > { %v2332_v19 = vpop.f32.mrf.mxu0  ;;  %3623 = vst.msk [vmem:[#allocation2 + $0x18] sm:$0xff] %vm3619_vm5, %v10892_v37 }
 0x22b   : > { %v2051_v6 = vpop.f32.mrf.mxu3  ;;  %3624 = vst.msk [vmem:[#allocation2 + $0x120] sm:$0xff] %vm3619_vm5, %v10892_v37 }
 0x22c   : > { %v2095_v9 = vadd.f32 %v2051_v6, %v8292_v55  ;;  %3625 = vst.msk [vmem:[#allocation2 + $0x128] sm:$0xff] %vm3619_vm5, %v10892_v37  ;;  %v8774_v6 = vpop.f32.mrf.mxu1 }
 0x22d   : > { %7018 = vmatmul.msk.f32.gmra.mxu0 %vm957_vm2, %v3320_v12  ;;  %v3011_v12 = vld [vmem:[%s7497_s14 + $0x90] sm:$0xff]  ;;  %3626 = vst.msk [vmem:[#allocation2 + $0x130] sm:$0xff] %vm3619_vm5, %v10892_v37 }
 0x22e   : > { %v8750_v45 = vadd.f32 %v2329_v63, %v2095_v9  ;;  %v3289_v9 = vld [vmem:[%s7497_s14 + $0x91] sm:$0xff] }
 0x22f   : > { %6984 = vmatmul.msk.f32.gmra.mxu3 %vm957_vm2, %v3010_v4 }
 0x230   : > { %10891 = vst [vmem:[#allocation51_spill] sm:$0xff] %v8750_v45  ;;  %v3664_v20 = vld [vmem:[#allocation2 + $0xf] sm:$0xff]  ;;  %v8792_v45 = vpop.f32.mrf.mxu2 }
 0x232   : > { %v2335_v21 = vpop.f32.mrf.mxu0 }
 0x233   : > { %v2054_v55 = vpop.f32.mrf.mxu3 }
 0x234   : > { %v2096_v63 = vadd.f32 %v2054_v55, %v8307_v33  ;;  %v7071_v33 = vld [vmem:[%s10586_s3 + $0x20] sm:$0xff]  ;;  %v3973_v55 = vld [vmem:[#allocation2 + $0x10] sm:$0xff] }
 0x235   : > { %7019 = vmatmul.msk.f32.gmra.mxu0 %vm957_vm2, %v3289_v9  ;;  %4121 = vmatpush.msra.mxu2 %v7071_v33  ;;  %v3322_v9 = vmul.f32 %v10822_v47, %v3290_v22  ;;  %v8800_v47 = vpop.f32.mrf.mxu1 }
 0x236   : > { %v8777_v4 = vadd.f32 %v2332_v19, %v2096_v63  ;;  %7075 = vmatmul.msk.f32.vlgmr.msra.gmra.mxu2 %vm3619_vm5, %v3973_v55  ;;  %v7146_v19 = vld [vmem:[%s10586_s3 + $0x78] sm:$0xff]  ;;  %v10894_v63 = vld [vmem:[#allocation3_spill] sm:$0xff] }
 0x237   : > { %6985 = vmatmul.msk.f32.gmra.mxu3 %vm957_vm2, %v3011_v12  ;;  %v3696_v32 = vmul.f32 %v10894_v63, %v3664_v20  ;;  %4738 = vmatpush.msrb.mxu0 %v7146_v19  ;;  %v3012_v12 = vld [vmem:[%s7497_s14 + $0x98] sm:$0xff]  ;;  %v3291_v20 = vld [vmem:[%s7497_s14 + $0xa1] sm:$0xff] }
 0x238   : > { %10893 = vst [vmem:[#allocation42_spill] sm:$0xff] %v8777_v4  ;;  %v3974_v55 = vld [vmem:[#allocation2 + $0x18] sm:$0xff]  ;;  %v3013_v19 = vld [vmem:[%s7497_s14 + $0xa0] sm:$0xff] }
 0x239   : > { %7039 = vmatmul.msk.f32.vlgmr.msra.gmra.mxu1 %vm3619_vm5, %v3696_v32 }
 0x23a   : > { %v2338_v37 = vpop.f32.mrf.mxu0 }
 0x23b   : > { %v2057_v4 = vpop.f32.mrf.mxu3 }
 0x23c   : > { %v2097_v33 = vadd.f32 %v2057_v4, %v8323_v16  ;;  %v7182_v16 = vld [vmem:[%s10586_s3 + $0x98] sm:$0xff] }
 0x23d   : > { %7020 = vmatmul.msk.f32.gmra.mxu0 %vm957_vm2, %v3322_v9  ;;  %5016 = vmatpush.msrb.mxu1 %v7182_v16  ;;  %v3665_v9 = vld [vmem:[#allocation2 + $0x17] sm:$0xff] }
 0x23e   : > { %v8798_v22 = vadd.f32 %v2335_v21, %v2097_v33  ;;  %7076 = vmatmul.msk.f32.gmra.mxu2 %vm3619_vm5, %v3974_v55  ;;  %v8811_v33 = vpop.f32.mrf.mxu2  ;;  %v3292_v55 = vld [vmem:[%s7497_s14 + $0xa9] sm:$0xff] }
 0x23f   : > { %6986 = vmatmul.msk.f32.gmra.mxu3 %vm957_vm2, %v3012_v12  ;;  %v3324_v16 = vmul.f32 %v10830_v24, %v3292_v55  ;;  %v3015_v24 = vld [vmem:[%s7497_s14 + $0xb0] sm:$0xff] }
 0x240   : > { %10895 = vst [vmem:[#allocation54_spill] sm:$0xff] %v8798_v22  ;;  %v8818_v22 = vpop.f32.mrf.mxu1 }
 0x241   : > { %7040 = vmatmul.msk.f32.gmra.mxu1 %vm3619_vm5, %v3665_v9  ;;  %10897 = vst [vmem:[#allocation47_spill] sm:$0xff] %v8818_v22  ;;  %v3014_v9 = vld [vmem:[%s7497_s14 + $0xa8] sm:$0xff] }
 0x242   : > { %v2341_v32 = vpop.f32.mrf.mxu0 }
 0x243   : > { %v2060_v4 = vpop.f32.mrf.mxu3 }
 0x244   : > { %v2098_v21 = vadd.f32 %v2060_v4, %v8341_v3 }
 0x245   : > { %7021 = vmatmul.msk.f32.gmra.mxu0 %vm957_vm2, %v3291_v20 }
 0x246   : > { %v8814_v12 = vadd.f32 %v2338_v37, %v2098_v21  ;;  %v8826_v37 = vpop.f32.mrf.mxu2 }
 0x247   : > { %6987 = vmatmul.msk.f32.gmra.mxu3 %vm957_vm2, %v3013_v19 }
 0x248   : > { %10896 = vst [vmem:[#allocation67_spill] sm:$0xff] %v8814_v12  ;;  %v3293_v12 = vld [vmem:[%s7497_s14 + $0xb1] sm:$0xff]  ;;  %v8830_v22 = vpop.f32.mrf.mxu1 }
 0x24a   : > { %v2344_v3 = vpop.f32.mrf.mxu0 }
 0x24b   : > { %v2063_v0 = vpop.f32.mrf.mxu3 }
 0x24c   : > { %v2099_v4 = vadd.f32 %v2063_v0, %v8357_v57  ;;  %v3294_v0 = vld [vmem:[%s7497_s14 + $0xb9] sm:$0xff] }
 0x24d   : > { %7022 = vmatmul.msk.f32.gmra.mxu0 %vm957_vm2, %v3324_v16  ;;  %v3326_v16 = vmul.f32 %v10838_v36, %v3294_v0  ;;  %v3295_v0 = vld [vmem:[%s7497_s14 + $0xc1] sm:$0xff] }
 0x24e   : > { %v8824_v20 = vadd.f32 %v2341_v32, %v2099_v4  ;;  %v8839_v32 = vpop.f32.mrf.mxu2 }
 0x24f   : > { %6988 = vmatmul.msk.f32.gmra.mxu3 %vm957_vm2, %v3014_v9 }
 0x250   : > { %10898 = vst [vmem:[#allocation59_spill] sm:$0xff] %v8824_v20 }
 0x252   : > { %v3459_v19 = vpop.f32.mrf.mxu0 }
 0x253   : > { %v2066_v21 = vpop.f32.mrf.mxu3 }
 0x254   : > { %v2100_v55 = vadd.f32 %v2066_v21, %v8371_v46  ;;  %v3016_v46 = vld [vmem:[%s7497_s14 + $0xb8] sm:$0xff]  ;;  %v8844_v21 = vpop.f32.mrf.mxu1 }
 0x255   : > { %7023 = vmatmul.msk.f32.gmra.mxu0 %vm957_vm2, %v3293_v12 }
 0x256   : > { %v8835_v57 = vadd.f32 %v2344_v3, %v2100_v55  ;;  %v8850_v36 = vpop.f32.mrf.mxu2 }
 0x257   : > { %6989 = vmatmul.msk.f32.gmra.mxu3 %vm957_vm2, %v3015_v24 }
 0x258   : > { %10899 = vst [vmem:[#allocation60_spill] sm:$0xff] %v8835_v57 }
 0x25a   : > { %v3462_v9 = vpop.f32.mrf.mxu0 }
 0x25b   : > { %v3149_v4 = vpop.f32.mrf.mxu3 }
 0x25c   : > { %v3245_v20 = vadd.f32 %v3149_v4, %v8393_v34  ;;  %v3017_v34 = vld [vmem:[%s7497_s14 + $0xc0] sm:$0xff] }
 0x25d   : > { %7024 = vmatmul.msk.f32.gmra.mxu0 %vm957_vm2, %v3326_v16 }
 0x25e   : > { %v3555_v12 = vadd.f32 %v3459_v19, %v3245_v20  ;;  %v3296_v20 = vld [vmem:[%s7497_s14 + $0xc9] sm:$0xff]  ;;  %v8856_v19 = vpop.f32.mrf.mxu1 }
 0x25f   : > { %6990 = vmatmul.msk.f32.gmra.mxu3 %vm957_vm2, %v3016_v46  ;;  %10900 = vst [vmem:[#allocation62_spill] sm:$0xff] %v8856_v19 }
 0x260   : > { %v3587_v3 = vmax.f32 %v3555_v12, 0.0 }
 0x262   : > { %3628 = vst.msk [vmem:[#allocation2 + $0x20] sm:$0xff] %vm3619_vm5, %v3587_v3  ;;  %v3465_v55 = vpop.f32.mrf.mxu0 }
 0x263   : > { %v3152_v24 = vpop.f32.mrf.mxu3 }
 0x264   : > { %v3246_v57 = vadd.f32 %v3152_v24, %v8406_v14 }
 0x265   : > { %7025 = vmatmul.msk.f32.gmra.mxu0 %vm957_vm2, %v3295_v0  ;;  %v3018_v0 = vld [vmem:[%s7497_s14 + $0xc8] sm:$0xff] }
 0x266   : > { %v3556_v4 = vadd.f32 %v3462_v9, %v3246_v57  ;;  %v3328_v57 = vmul.f32 %v10847_v39, %v3296_v20  ;;  %v8873_v19 = vpop.f32.mrf.mxu1 }
 0x267   : > { %6991 = vmatmul.msk.f32.gmra.mxu3 %vm957_vm2, %v3017_v34  ;;  %v8869_v34 = vpop.f32.mrf.mxu2 }
 0x268   : > { %v3588_v16 = vmax.f32 %v3556_v4, 0.0 }
 0x269   : > { %v3975_v46 = vld [vmem:[#allocation2 + $0x20] sm:$0xff] }
 0x26a   : > { %v8859_v12 = vld [vmem:[#allocation2 + $0x1f] sm:$0xff]  ;;  %3629 = vst.msk [vmem:[#allocation2 + $0x28] sm:$0xff] %vm3619_vm5, %v3588_v16  ;;  %7077 = vmatmul.msk.f32.gmra.mxu2 %vm3619_vm5, %v3975_v46  ;;  %v3468_v3 = vpop.f32.mrf.mxu0 }
 0x26b   : > { %v3698_v14 = vmul.f32 %v7531_v31, %v8859_v12  ;;  %v3155_v9 = vpop.f32.mrf.mxu3 }
 0x26c   : > { %v3247_v24 = vadd.f32 %v3155_v9, %v8418_v25  ;;  %v7109_v25 = vld [vmem:[%s10586_s3 + $0x50] sm:$0xff] }
 0x26d   : > { %7041 = vmatmul.msk.f32.gmra.mxu1 %vm3619_vm5, %v3698_v14  ;;  %7026 = vmatmul.msk.f32.gmra.mxu0 %vm957_vm2, %v3328_v57 }
 0x26e   : > { %v3557_v4 = vadd.f32 %v3465_v55, %v3247_v24  ;;  %4429 = vmatpush.msrb.mxu3 %v7109_v25 }
 0x26f   : > { %6992 = vmatmul.msk.f32.gmra.mxu3 %vm957_vm2, %v3018_v0  ;;  %v8887_v24 = vpop.f32.mrf.mxu2 }
 0x270   : > { %v3589_v16 = vmax.f32 %v3557_v4, 0.0 }
 0x271   : > { %v3976_v46 = vld [vmem:[#allocation2 + $0x28] sm:$0xff] }
 0x272   : > { %3630 = vst.msk [vmem:[#allocation2 + $0x30] sm:$0xff] %vm3619_vm5, %v3589_v16  ;;  %7078 = vmatmul.msk.f32.gmra.mxu2 %vm3619_vm5, %v3976_v46  ;;  %v3471_v14 = vpop.f32.mrf.mxu0  ;;  %v8880_v9 = vld [vmem:[#allocation2 + $0x27] sm:$0xff] }
 0x273   : > { %v3158_v20 = vpop.f32.mrf.mxu3 }
 0x274   : > { %v3248_v55 = vadd.f32 %v3158_v20, %v8431_v27 }
 0x275   : > { %7042 = vmatmul.msk.f32.gmra.mxu1 %vm3619_vm5, %v8880_v9  ;;  %7027 = vmatmul.msk.f32.gmra.mxu0 %vm957_vm2, %v8449_v58  ;;  %v7145_v58 = vld [vmem:[%s10586_s3 + $0x70] sm:$0xff] }
 0x276   : > { %v3558_v57 = vadd.f32 %v3468_v3, %v3248_v55  ;;  %v10901_v3 = vld [vmem:[#allocation61_spill] sm:$0xff]  ;;  %4739 = vmatpush.msrb.mxu0 %v7145_v58  ;;  %v10902_v55 = vld [vmem:[#allocation26_spill] sm:$0xff] }
 0x277   : > { %6993 = vmatmul.msk.f32.gmra.mxu3 %vm957_vm2, %v8452_v11  ;;  %v3330_v46 = vmul.f32 %v10901_v3, %v8462_v10  ;;  %v8902_v11 = vpop.f32.mrf.mxu1  ;;  %v8909_v3 = vpop.f32.mrf.mxu2  ;;  %v7181_v58 = vld [vmem:[%s10586_s3 + $0x90] sm:$0xff] }
 0x278   : > { %v3590_v0 = vmax.f32 %v3558_v57, 0.0  ;;  %10903 = vst [vmem:[#allocation53_spill] sm:$0xff] %v8909_v3  ;;  %5017 = vmatpush.msrb.mxu1 %v7181_v58  ;;  %v10906_v58 = vld [vmem:[#allocation12_spill] sm:$0xff] }
 0x279   : > { %v3977_v4 = vld [vmem:[#allocation2 + $0x30] sm:$0xff] }
 0x27a   : > { %v8891_v16 = vld [vmem:[#allocation2 + $0x2f] sm:$0xff]  ;;  %3631 = vst.msk [vmem:[#allocation2 + $0x38] sm:$0xff] %vm3619_vm5, %v3590_v0  ;;  %7079 = vmatmul.msk.f32.gmra.mxu2 %vm3619_vm5, %v3977_v4  ;;  %v3474_v20 = vpop.f32.mrf.mxu0 }
 0x27b   : > { %v3700_v27 = vmul.f32 %v7580_v51, %v8891_v16  ;;  %v3161_v25 = vpop.f32.mrf.mxu3 }
 0x27c   : > { %v3249_v57 = vadd.f32 %v3161_v25, %v10902_v55 }
 0x27d   : > { %7043 = vmatmul.msk.f32.gmra.mxu1 %vm3619_vm5, %v3700_v27  ;;  %7028 = vmatmul.msk.f32.gmra.mxu0 %vm957_vm2, %v3330_v46  ;;  %v10904_v46 = vld [vmem:[#allocation19_spill] sm:$0xff] }
 0x27e   : > { %v3559_v0 = vadd.f32 %v3471_v14, %v3249_v57 }
 0x27f   : > { %6994 = vmatmul.msk.f32.gmra.mxu3 %vm957_vm2, %v8471_v8  ;;  %v8921_v8 = vpop.f32.mrf.mxu1 }
 0x280   : > { %v3591_v4 = vmax.f32 %v3559_v0, 0.0  ;;  %10905 = vst [vmem:[#allocation65_spill] sm:$0xff] %v8921_v8 }
 0x281   : > { %v3978_v10 = vld [vmem:[#allocation2 + $0x38] sm:$0xff] }
 0x282   : > { %3632 = vst.msk [vmem:[#allocation2 + $0x40] sm:$0xff] %vm3619_vm5, %v3591_v4  ;;  %7080 = vmatmul.msk.f32.gmra.mxu2 %vm3619_vm5, %v3978_v10  ;;  %v3477_v27 = vpop.f32.mrf.mxu0  ;;  %v8916_v14 = vld [vmem:[#allocation2 + $0x37] sm:$0xff] }
 0x283   : > { %v3164_v25 = vpop.f32.mrf.mxu3 }
 0x284   : > { %v3250_v55 = vadd.f32 %v3164_v25, %v10904_v46  ;;  %v10907_v46 = vld [vmem:[#allocation71_spill] sm:$0xff] }
 0x285   : > { %7044 = vmatmul.msk.f32.gmra.mxu1 %vm3619_vm5, %v8916_v14  ;;  %7029 = vmatmul.msk.f32.gmra.mxu0 %vm957_vm2, %v8484_v62  ;;  %v8935_v62 = vpop.f32.mrf.mxu2 }
 0x286   : > { %v3560_v57 = vadd.f32 %v3474_v20, %v3250_v55  ;;  %v3332_v20 = vmul.f32 %v10907_v46, %v8497_v56  ;;  %10908 = vst [vmem:[#allocation58_spill] sm:$0xff] %v8935_v62 }
 0x287   : > { %6995 = vmatmul.msk.f32.gmra.mxu3 %vm957_vm2, %v8487_v38 }
 0x288   : > { %v3592_v0 = vmax.f32 %v3560_v57, 0.0  ;;  %v10909_v57 = vld [vmem:[#allocation28_spill] sm:$0xff] }
 0x289   : > { %v3979_v4 = vld [vmem:[#allocation2 + $0x40] sm:$0xff] }
 0x28a   : > { %v8927_v10 = vld [vmem:[#allocation2 + $0x3f] sm:$0xff]  ;;  %3633 = vst.msk [vmem:[#allocation2 + $0x48] sm:$0xff] %vm3619_vm5, %v3592_v0  ;;  %7081 = vmatmul.msk.f32.gmra.mxu2 %vm3619_vm5, %v3979_v4  ;;  %v3480_v39 = vpop.f32.mrf.mxu0  ;;  %v8940_v0 = vpop.f32.mrf.mxu1 }
 0x28b   : > { %v3702_v25 = vmul.f32 %v10906_v58, %v8927_v10  ;;  %v3167_v55 = vpop.f32.mrf.mxu3 }
 0x28c   : > { %v3251_v8 = vadd.f32 %v3167_v55, %v10909_v57 }
 0x28d   : > { %7045 = vmatmul.msk.f32.gmra.mxu1 %vm3619_vm5, %v3702_v25  ;;  %7030 = vmatmul.msk.f32.gmra.mxu0 %vm957_vm2, %v3332_v20  ;;  %v10911_v20 = vld [vmem:[#allocation21_spill] sm:$0xff] }
 0x28e   : > { %v3561_v38 = vadd.f32 %v3477_v27, %v3251_v8  ;;  %v2665_v27 = vadd.f32 %v8645_v50, %v8513_v49  ;;  %v8953_v8 = vpop.f32.mrf.mxu2  ;;  %v10915_v50 = vld [vmem:[#allocation34_spill] sm:$0xff] }
 0x28f   : > { %6996 = vmatmul.msk.f32.gmra.mxu3 %vm957_vm2, %v8506_v30  ;;  %10910 = vst [vmem:[#allocation69_spill] sm:$0xff] %v8953_v8  ;;  %v10917_v8 = vld [vmem:[#allocation24_spill] sm:$0xff] }
 0x290   : > { %v3593_v4 = vmax.f32 %v3561_v38, 0.0 }
 0x291   : > { %v3980_v3 = vld [vmem:[#allocation2 + $0x48] sm:$0xff] }
 0x292   : > { %3634 = vst.msk [vmem:[#allocation2 + $0x50] sm:$0xff] %vm3619_vm5, %v3593_v4  ;;  %7082 = vmatmul.msk.f32.gmra.mxu2 %vm3619_vm5, %v3980_v3  ;;  %v3483_v46 = vpop.f32.mrf.mxu0  ;;  %v8946_v62 = vld [vmem:[#allocation2 + $0x47] sm:$0xff]  ;;  %v10912_v3 = vld [vmem:[#allocation22_spill] sm:$0xff]  ;;  %v8962_v4 = vpop.f32.mrf.mxu1 }
 0x293   : > { %v3170_v56 = vpop.f32.mrf.mxu3  ;;  %10913 = vst [vmem:[#allocation70_spill] sm:$0xff] %v8962_v4 }
 0x294   : > { %v3252_v25 = vadd.f32 %v3170_v56, %v8502_v17  ;;  %v2975_v17 = vadd.f32 %v8653_v54, %v2665_v27  ;;  %v10916_v56 = vld [vmem:[#allocation41_spill] sm:$0xff]  ;;  %v2666_v54 = vadd.f32 %v8660_v13, %v10917_v8 }
 0x295   : > { %7046 = vmatmul.msk.f32.gmra.mxu1 %vm3619_vm5, %v8946_v62  ;;  %7031 = vmatmul.msk.f32.gmra.mxu0 %vm957_vm2, %v10911_v20 }
 0x296   : > { %v3562_v30 = vadd.f32 %v3480_v39, %v3252_v25  ;;  %v10914_v39 = vld [vmem:[#allocation15_spill] sm:$0xff]  ;;  %v3334_v25 = vmul.f32 %v10916_v56, %v10915_v50  ;;  %v2976_v50 = vadd.f32 %v8666_v23, %v2666_v54 }
 0x297   : > { %6997 = vmatmul.msk.f32.gmra.mxu3 %vm957_vm2, %v10912_v3 }
 0x298   : > { %v3594_v55 = vmax.f32 %v3562_v30, 0.0 }
 0x299   : > { %v3981_v57 = vld [vmem:[#allocation2 + $0x50] sm:$0xff] }
 0x29a   : > { %v8959_v38 = vld [vmem:[#allocation2 + $0x4f] sm:$0xff]  ;;  %3635 = vst.msk [vmem:[#allocation2 + $0x58] sm:$0xff] %vm3619_vm5, %v3594_v55  ;;  %7083 = vmatmul.msk.f32.gmra.mxu2 %vm3619_vm5, %v3981_v57  ;;  %v3486_v20 = vpop.f32.mrf.mxu0  ;;  %v8974_v55 = vpop.f32.mrf.mxu2 }
 0x29b   : > { %v3704_v49 = vmul.f32 %v10914_v39, %v8959_v38  ;;  %v3173_v30 = vpop.f32.mrf.mxu3  ;;  %v8983_v13 = vpop.f32.mrf.mxu1 }
 0x29c   : > { %v3253_v3 = vadd.f32 %v3173_v30, %v2975_v17 }
 0x29d   : > { %7047 = vmatmul.msk.f32.gmra.mxu1 %vm3619_vm5, %v3704_v49  ;;  %7032 = vmatmul.msk.f32.gmra.mxu0 %vm957_vm2, %v3334_v25  ;;  %v10918_v25 = vld [vmem:[#allocation25_spill] sm:$0xff] }
 0x29e   : > { %v3563_v27 = vadd.f32 %v3483_v46, %v3253_v3 }
 0x29f   : > { %6998 = vmatmul.msk.f32.gmra.mxu3 %vm957_vm2, %v8541_v44  ;;  %v2667_v44 = vadd.f32 %v8673_v48, %v8548_v7  ;;  %v10919_v7 = vld [vmem:[#allocation17_spill] sm:$0xff] }
 0x2a0   : > { %v3595_v57 = vmax.f32 %v3563_v27, 0.0 }
 0x2a1   : > { %v3982_v4 = vld [vmem:[#allocation2 + $0x58] sm:$0xff]  ;;  %v2977_v54 = vadd.f32 %v8687_v29, %v2667_v44 }
 0x2a2   : > { %3636 = vst.msk [vmem:[#allocation2 + $0x60] sm:$0xff] %vm3619_vm5, %v3595_v57  ;;  %7084 = vmatmul.msk.f32.gmra.mxu2 %vm3619_vm5, %v3982_v4  ;;  %v3489_v49 = vpop.f32.mrf.mxu0  ;;  %v8981_v30 = vld [vmem:[#allocation2 + $0x57] sm:$0xff]  ;;  %v8996_v27 = vpop.f32.mrf.mxu2 }
 0x2a3   : > { %v3176_v17 = vpop.f32.mrf.mxu3  ;;  %v9007_v44 = vpop.f32.mrf.mxu1 }
 0x2a4   : > { %v3254_v46 = vadd.f32 %v3176_v17, %v2976_v50 }
 0x2a5   : > { %7048 = vmatmul.msk.f32.gmra.mxu1 %vm3619_vm5, %v8981_v30  ;;  %7033 = vmatmul.msk.f32.gmra.mxu0 %vm957_vm2, %v10918_v25 }
 0x2a6   : > { %v3564_v8 = vadd.f32 %v3486_v20, %v3254_v46  ;;  %v10920_v20 = vld [vmem:[#allocation52_spill] sm:$0xff] }
 0x2a7   : > { %6999 = vmatmul.msk.f32.gmra.mxu3 %vm957_vm2, %v8557_v2  ;;  %v3336_v57 = vmul.f32 %v10920_v20, %v8569_v15  ;;  %v10921_v46 = vld [vmem:[#allocation36_spill] sm:$0xff] }
 0x2a8   : > { %v3596_v23 = vmax.f32 %v3564_v8, 0.0  ;;  %v2668_v29 = vadd.f32 %v8691_v61, %v10921_v46  ;;  %v7108_v61 = vld [vmem:[%s10586_s3 + $0x48] sm:$0xff]  ;;  %v2669_v46 = vadd.f32 %v8705_v40, %v8586_v59 }
 0x2a9   : > { %v3983_v4 = vld [vmem:[#allocation2 + $0x60] sm:$0xff]  ;;  %4430 = vmatpush.msrb.mxu3 %v7108_v61  ;;  %v10924_v40 = vld [vmem:[#allocation20_spill] sm:$0xff] }
 0x2aa   : > { %v8993_v3 = vld [vmem:[#allocation2 + $0x5f] sm:$0xff]  ;;  %3637 = vst.msk [vmem:[#allocation2 + $0x68] sm:$0xff] %vm3619_vm5, %v3596_v23  ;;  %7085 = vmatmul.msk.f32.gmra.mxu2 %vm3619_vm5, %v3983_v4  ;;  %v3492_v17 = vpop.f32.mrf.mxu0  ;;  %v10922_v23 = vld [vmem:[#allocation29_spill] sm:$0xff]  ;;  %v2978_v15 = vadd.f32 %v8700_v41, %v2668_v29  ;;  %v2979_v59 = vadd.f32 %v8712_v52, %v2669_v46 }
 0x2ab   : > { %v3706_v48 = vmul.f32 %v10919_v7, %v8993_v3  ;;  %v3179_v50 = vpop.f32.mrf.mxu3 }
 0x2ac   : > { %v3255_v2 = vadd.f32 %v3179_v50, %v2977_v54  ;;  %v9023_v50 = vpop.f32.mrf.mxu2 }
 0x2ad   : > { %7049 = vmatmul.msk.f32.gmra.mxu1 %vm3619_vm5, %v3706_v48  ;;  %7034 = vmatmul.msk.f32.gmra.mxu0 %vm957_vm2, %v3336_v57 }
 0x2ae   : > { %v3565_v8 = vadd.f32 %v3489_v49, %v3255_v2  ;;  %v7144_v49 = vld [vmem:[%s10586_s3 + $0x68] sm:$0xff]  ;;  %v7143_v2 = vld [vmem:[%s10586_s3 + $0x60] sm:$0xff] }
 0x2af   : > { %7000 = vmatmul.msk.f32.gmra.mxu3 %vm957_vm2, %v10922_v23  ;;  %4740 = vmatpush.msrb.mxu0 %v7144_v49  ;;  %v9037_v23 = vpop.f32.mrf.mxu1  ;;  %v10925_v49 = vld [vmem:[#allocation44_spill] sm:$0xff] }
 0x2b0   : > { %v3597_v25 = vmax.f32 %v3565_v8, 0.0  ;;  %v10923_v8 = vld [vmem:[#allocation30_spill] sm:$0xff] }
 0x2b1   : > { %v3984_v4 = vld [vmem:[#allocation2 + $0x68] sm:$0xff]  ;;  %4741 = vmatpush.msrb.mxu0 %v7143_v2 }
 0x2b2   : > { %3638 = vst.msk [vmem:[#allocation2 + $0x70] sm:$0xff] %vm3619_vm5, %v3597_v25  ;;  %7086 = vmatmul.msk.f32.gmra.mxu2 %vm3619_vm5, %v3984_v4  ;;  %v3495_v48 = vpop.f32.mrf.mxu0  ;;  %v9021_v57 = vld [vmem:[#allocation2 + $0x67] sm:$0xff] }
 0x2b3   : > { %v3182_v54 = vpop.f32.mrf.mxu3  ;;  %v7107_v25 = vld [vmem:[%s10586_s3 + $0x40] sm:$0xff] }
 0x2b4   : > { %v3256_v41 = vadd.f32 %v3182_v54, %v2978_v15  ;;  %4431 = vmatpush.msrb.mxu3 %v7107_v25  ;;  %v10926_v54 = vld [vmem:[#allocation63_spill] sm:$0xff]  ;;  %v9053_v52 = vpop.f32.mrf.mxu2 }
 0x2b5   : > { %7050 = vmatmul.msk.f32.gmra.mxu1 %vm3619_vm5, %v9021_v57  ;;  %7035 = vmatmul.msk.f32.gmra.mxu0 %vm957_vm2, %v10923_v8 }
 0x2b6   : > { %v3566_v29 = vadd.f32 %v3492_v17, %v3256_v41  ;;  %v3338_v41 = vmul.f32 %v10926_v54, %v10925_v49 }
 0x2b7   : > { %7001 = vmatmul.msk.f32.gmra.mxu3 %vm957_vm2, %v8598_v53  ;;  %v10927_v53 = vld [vmem:[#allocation32_spill] sm:$0xff] }
 0x2b8   : > { %v3598_v4 = vmax.f32 %v3566_v29, 0.0  ;;  %v2670_v25 = vadd.f32 %v8720_v5, %v10927_v53  ;;  %v7180_v5 = vld [vmem:[%s10586_s3 + $0x88] sm:$0xff]  ;;  %v2671_v53 = vadd.f32 %v8732_v18, %v8624_v35  ;;  %v10928_v35 = vld [vmem:[#allocation27_spill] sm:$0xff] }
 0x2b9   : > { %v3985_v15 = vld [vmem:[#allocation2 + $0x70] sm:$0xff]  ;;  %5018 = vmatpush.msrb.mxu1 %v7180_v5 }
 0x2ba   : > { %v9041_v61 = vld [vmem:[#allocation2 + $0x6f] sm:$0xff]  ;;  %3639 = vst.msk [vmem:[#allocation2 + $0x78] sm:$0xff] %vm3619_vm5, %v3598_v4  ;;  %7087 = vmatmul.msk.f32.gmra.mxu2 %vm3619_vm5, %v3985_v15  ;;  %v3498_v29 = vpop.f32.mrf.mxu0  ;;  %v2980_v49 = vadd.f32 %v8726_v26, %v2670_v25  ;;  %v3307_v26 = vld [vmem:[%s7497_s14 + $0x121] sm:$0xff] }
 0x2bb   : > { %v3708_v17 = vmul.f32 %v10924_v40, %v9041_v61  ;;  %v3185_v2 = vpop.f32.mrf.mxu3 }
 0x2bc   : > { %v3257_v8 = vadd.f32 %v3185_v2, %v2979_v59  ;;  %v9059_v59 = vpop.f32.mrf.mxu1 }
 0x2bd   : > { %7051 = vmatmul.msk.f32.gmra.mxu1 %vm3619_vm5, %v3708_v17  ;;  %7036 = vmatmul.msk.f32.gmra.mxu0 %vm957_vm2, %v3338_v41 }
 0x2be   : > { %v3567_v46 = vadd.f32 %v3495_v48, %v3257_v8  ;;  %v7218_v48 = vld [vmem:[%s10586_s3 + $0xb8] sm:$0xff]  ;;  %v3029_v8 = vld [vmem:[%s7497_s14 + $0x120] sm:$0xff] }
 0x2bf   : > { %7002 = vmatmul.msk.f32.gmra.mxu3 %vm957_vm2, %v8617_v42  ;;  %5326 = vmatpush.msrb.mxu2 %v7218_v48 }
 0x2c0   : > { %v3599_v4 = vmax.f32 %v3567_v46, 0.0  ;;  %v3308_v46 = vld [vmem:[%s7497_s14 + $0x129] sm:$0xff] }
 0x2c1   : > { %v3986_v15 = vld [vmem:[#allocation2 + $0x78] sm:$0xff] }
 0x2c2   : > { %3640 = vst.msk [vmem:[#allocation2 + $0x80] sm:$0xff] %vm3619_vm5, %v3599_v4  ;;  %7088 = vmatmul.msk.f32.gmra.mxu2 %vm3619_vm5, %v3986_v15  ;;  %v3501_v17 = vpop.f32.mrf.mxu0  ;;  %v9069_v41 = vld [vmem:[#allocation2 + $0x77] sm:$0xff]  ;;  %v9079_v4 = vpop.f32.mrf.mxu2 }
 0x2c3   : > { %v3188_v42 = vpop.f32.mrf.mxu3 }
 0x2c4   : > { %v3258_v2 = vadd.f32 %v3188_v42, %v2980_v49  ;;  %v2981_v49 = vadd.f32 %v8741_v60, %v2671_v53  ;;  %v2672_v60 = vadd.f32 %v8745_v1, %v8631_v43  ;;  %v4593_v1 = vmul.f32 %v10894_v63, %v8859_v12 }
 0x2c5   : > { %7052 = vmatmul.msk.f32.gmra.mxu1 %vm3619_vm5, %v9069_v41  ;;  %7037 = vmatmul.msk.f32.gmra.mxu0 %vm957_vm2, %v3307_v26 }
 0x2c6   : > { %v3568_v25 = vadd.f32 %v3498_v29, %v3258_v2  ;;  %v10929_v29 = vld [vmem:[#allocation72_spill] sm:$0xff] }
 0x2c7   : > { %7003 = vmatmul.msk.f32.gmra.mxu3 %vm957_vm2, %v3029_v8  ;;  %v3340_v42 = vmul.f32 %v10929_v29, %v3308_v46  ;;  %v9091_v8 = vpop.f32.mrf.mxu1  ;;  %v2982_v46 = vadd.f32 %v8755_v28, %v2672_v60  ;;  %v10930_v28 = vld [vmem:[#allocation33_spill] sm:$0xff] }
 0x2c8   : > { %v3600_v15 = vmax.f32 %v3568_v25, 0.0  ;;  %v3030_v25 = vld [vmem:[%s7497_s14 + $0x128] sm:$0xff] }
 0x2c9   : > { %v3987_v5 = vld [vmem:[#allocation2 + $0x80] sm:$0xff] }
 0x2ca   : > { %v9082_v48 = vld [vmem:[#allocation2 + $0x7f] sm:$0xff]  ;;  %3641 = vst.msk [vmem:[#allocation2 + $0x88] sm:$0xff] %vm3619_vm5, %v3600_v15  ;;  %7089 = vmatmul.msk.f32.gmra.mxu2 %vm3619_vm5, %v3987_v5  ;;  %v3504_v2 = vpop.f32.mrf.mxu0  ;;  %v9099_v29 = vpop.f32.mrf.mxu2 }
 0x2cb   : > { %v3710_v18 = vmul.f32 %v10928_v35, %v9082_v48  ;;  %v3191_v26 = vpop.f32.mrf.mxu3 }
 0x2cc   : > { %v3259_v54 = vadd.f32 %v3191_v26, %v2981_v49 }
 0x2cd   : > { %7053 = vmatmul.msk.f32.gmra.mxu1 %vm3619_vm5, %v3710_v18  ;;  %7038 = vmatmul.msk.f32.gmra.mxu0 %vm957_vm2, %v3340_v42  ;;  %v2673_v42 = vadd.f32 %v8774_v6, %v10930_v28 }
 0x2ce   : > { %v3569_v53 = vadd.f32 %v3501_v17, %v3259_v54  ;;  %v4251_v54 = vld [vmem:[#allocation2 + $0x11] sm:$0xff] }
 0x2cf   : > { %7004 = vmatmul.msk.f32.gmra.mxu3 %vm957_vm2, %v3030_v25  ;;  %v9109_v17 = vpop.f32.mrf.mxu1  ;;  %vm6606_vm2 = vcmask 64512  }
 0x2d0   : > { %v3601_v15 = vmax.f32 %v3569_v53, 0.0 }
 0x2d1   : > { %v3988_v5 = vld [vmem:[#allocation2 + $0x88] sm:$0xff] }
 0x2d2   : > { %3642 = vst.msk [vmem:[#allocation2 + $0x90] sm:$0xff] %vm3619_vm5, %v3601_v15  ;;  %7090 = vmatmul.msk.f32.gmra.mxu2 %vm3619_vm5, %v3988_v5  ;;  %v3507_v18 = vpop.f32.mrf.mxu0  ;;  %v9103_v26 = vld [vmem:[#allocation2 + $0x87] sm:$0xff]  ;;  %v2983_v5 = vadd.f32 %v8792_v45, %v2673_v42  ;;  %v9120_v12 = vpop.f32.mrf.mxu2  ;;  %v10933_v45 = vld [vmem:[#allocation5_spill] sm:$0xff] }
 0x2d3   : > { %v3194_v49 = vpop.f32.mrf.mxu3 }
 0x2d4   : > { %v3260_v43 = vadd.f32 %v3194_v49, %v2982_v46  ;;  %v10931_v46 = vld [vmem:[#allocation35_spill] sm:$0xff] }
 0x2d5   : > { %7054 = vmatmul.msk.f32.gmra.mxu1 %vm3619_vm5, %v9103_v26  ;;  %7147 = vmatmul.msk.f32.vlgmr.msrb.gmra.mxu0 %vm3619_vm5, %v4593_v1 }
 0x2d6   : > { %v3570_v25 = vadd.f32 %v3504_v2, %v3260_v43  ;;  %v4252_v43 = vld [vmem:[#allocation2 + $0x19] sm:$0xff] }
 0x2d7   : > { %7111 = vmatmul.msk.f32.vlgmr.msrb.gmra.mxu3 %vm3619_vm5, %v4251_v54  ;;  %v10932_v54 = vld [vmem:[#allocation46_spill] sm:$0xff]  ;;  %v4284_v42 = vmul.f32 %v10933_v45, %v4252_v43  ;;  %v10934_v43 = vld [vmem:[#allocation37_spill] sm:$0xff] }
 0x2d8   : > { %v3602_v60 = vmax.f32 %v3570_v25, 0.0  ;;  %v2674_v28 = vadd.f32 %v8800_v47, %v10932_v54 }
 0x2d9   : > { %v3989_v53 = vld [vmem:[#allocation2 + $0x90] sm:$0xff] }
 0x2da   : > { %v9115_v15 = vld [vmem:[#allocation2 + $0x8f] sm:$0xff]  ;;  %3643 = vst.msk [vmem:[#allocation2 + $0x98] sm:$0xff] %vm3619_vm5, %v3602_v60  ;;  %7091 = vmatmul.msk.f32.gmra.mxu2 %vm3619_vm5, %v3989_v53  ;;  %v3510_v49 = vpop.f32.mrf.mxu0  ;;  %v9130_v60 = vpop.f32.mrf.mxu1  ;;  %v2984_v20 = vadd.f32 %v8811_v33, %v2674_v28 }
 0x2db   : > { %v3712_v6 = vmul.f32 %v10931_v46, %v9115_v15  ;;  %v3197_v2 = vpop.f32.mrf.mxu3 }
 0x2dc   : > { %v3261_v1 = vadd.f32 %v3197_v2, %v2983_v5  ;;  %v9142_v2 = vpop.f32.mrf.mxu2 }
 0x2dd   : > { %7055 = vmatmul.msk.f32.gmra.mxu1 %vm3619_vm5, %v3712_v6  ;;  %7148 = vmatmul.msk.f32.gmra.mxu0 %vm3619_vm5, %v8880_v9  ;;  %v4595_v9 = vmul.f32 %v7531_v31, %v8891_v16 }
 0x2de   : > { %v3571_v25 = vadd.f32 %v3507_v18, %v3261_v1  ;;  %v10935_v1 = vld [vmem:[#allocation47_spill] sm:$0xff] }
 0x2df   : > { %7112 = vmatmul.msk.f32.gmra.mxu3 %vm3619_vm5, %v4284_v42  ;;  %v2675_v33 = vadd.f32 %v10935_v1, %v10934_v43 }
 0x2e0   : > { %v3603_v53 = vmax.f32 %v3571_v25, 0.0 }
 0x2e1   : > { %v3990_v63 = vld [vmem:[#allocation2 + $0x98] sm:$0xff]  ;;  %v2985_v16 = vadd.f32 %v8826_v37, %v2675_v33  ;;  %v10938_v33 = vld [vmem:[#allocation8_spill] sm:$0xff] }
 0x2e2   : > { %3644 = vst.msk [vmem:[#allocation2 + $0xa0] sm:$0xff] %vm3619_vm5, %v3603_v53  ;;  %7092 = vmatmul.msk.f32.gmra.mxu2 %vm3619_vm5, %v3990_v63  ;;  %v3513_v47 = vpop.f32.mrf.mxu0  ;;  %v9136_v18 = vld [vmem:[#allocation2 + $0x97] sm:$0xff]  ;;  %v9147_v63 = vld [vmem:[#allocation2 + $0x21] sm:$0xff] }
 0x2e3   : > { %v3200_v5 = vpop.f32.mrf.mxu3 }
 0x2e4   : > { %v3262_v6 = vadd.f32 %v3200_v5, %v2984_v20 }
 0x2e5   : > { %7056 = vmatmul.msk.f32.gmra.mxu1 %vm3619_vm5, %v9136_v18  ;;  %7149 = vmatmul.msk.f32.gmra.mxu0 %vm3619_vm5, %v4595_v9  ;;  %v9160_v9 = vld [vmem:[#allocation2 + $0x29] sm:$0xff] }
 0x2e6   : > { %v3572_v54 = vadd.f32 %v3510_v49, %v3262_v6  ;;  %v10936_v49 = vld [vmem:[#allocation45_spill] sm:$0xff] }
 0x2e7   : > { %7113 = vmatmul.msk.f32.gmra.mxu3 %vm3619_vm5, %v9147_v63 }
 0x2e8   : > { %v3604_v28 = vmax.f32 %v3572_v54, 0.0  ;;  %v10937_v54 = vld [vmem:[#allocation38_spill] sm:$0xff] }
 0x2e9   : > { %v3991_v25 = vld [vmem:[#allocation2 + $0xa0] sm:$0xff]  ;;  %v2676_v31 = vadd.f32 %v8830_v22, %v10937_v54 }
 0x2ea   : > { %v9151_v20 = vpop.f32.mrf.mxu1  ;;  %v9153_v42 = vld [vmem:[#allocation2 + $0x9f] sm:$0xff]  ;;  %3645 = vst.msk [vmem:[#allocation2 + $0xa8] sm:$0xff] %vm3619_vm5, %v3604_v28  ;;  %7093 = vmatmul.msk.f32.gmra.mxu2 %vm3619_vm5, %v3991_v25  ;;  %v3516_v6 = vpop.f32.mrf.mxu0  ;;  %v4286_v28 = vmul.f32 %v10938_v33, %v9160_v9 }
 0x2eb   : > { %v3714_v53 = vmul.f32 %v10936_v49, %v9153_v42  ;;  %v3203_v5 = vpop.f32.mrf.mxu3 }
 0x2ec   : > { %v3263_v43 = vadd.f32 %v3203_v5, %v2985_v16 }
 0x2ed   : > { %7057 = vmatmul.msk.f32.gmra.mxu1 %vm3619_vm5, %v3714_v53  ;;  %v9163_v1 = vpop.f32.mrf.mxu2  ;;  %7150 = vmatmul.msk.f32.gmra.mxu0 %vm3619_vm5, %v8916_v14  ;;  %v2986_v53 = vadd.f32 %v8839_v32, %v2676_v31 }
 0x2ee   : > { %v3573_v37 = vadd.f32 %v3513_v47, %v3263_v43  ;;  %v4597_v43 = vmul.f32 %v7580_v51, %v8927_v10 }
 0x2ef   : > { %7114 = vmatmul.msk.f32.gmra.mxu3 %vm3619_vm5, %v4286_v28  ;;  %v9188_v28 = vld [vmem:[#allocation2 + $0x31] sm:$0xff] }
 0x2f0   : > { %v3605_v25 = vmax.f32 %v3573_v37, 0.0  ;;  %v10940_v37 = vld [vmem:[#allocation40_spill] sm:$0xff] }
 0x2f1   : > { %v3992_v16 = vld [vmem:[#allocation2 + $0xa8] sm:$0xff]  ;;  %v2677_v31 = vadd.f32 %v8844_v21, %v10940_v37  ;;  %v9201_v37 = vld [vmem:[#allocation2 + $0x39] sm:$0xff] }
 0x2f2   : > { %v9172_v56 = vpop.f32.mrf.mxu1  ;;  %3646 = vst.msk [vmem:[#allocation2 + $0xb0] sm:$0xff] %vm3619_vm5, %v3605_v25  ;;  %7094 = vmatmul.msk.f32.gmra.mxu2 %vm3619_vm5, %v3992_v16  ;;  %v3519_v47 = vpop.f32.mrf.mxu0  ;;  %v9177_v5 = vld [vmem:[#allocation2 + $0xa7] sm:$0xff] }
 0x2f3   : > { %v3206_v22 = vpop.f32.mrf.mxu3  ;;  %v2987_v10 = vadd.f32 %v8850_v36, %v2677_v31  ;;  %v10942_v21 = vld [vmem:[#allocation56_spill] sm:$0xff]  ;;  %v10945_v31 = vld [vmem:[#allocation11_spill] sm:$0xff] }
 0x2f4   : > { %v3264_v14 = vadd.f32 %v3206_v22, %v2986_v53 }
 0x2f5   : > { %7058 = vmatmul.msk.f32.gmra.mxu1 %vm3619_vm5, %v9177_v5  ;;  %v9183_v54 = vpop.f32.mrf.mxu2  ;;  %7151 = vmatmul.msk.f32.gmra.mxu0 %vm3619_vm5, %v4597_v43 }
 0x2f6   : > { %10939 = vst [vmem:[#allocation64_spill] sm:$0xff] %v9183_v54  ;;  %v3574_v32 = vadd.f32 %v3516_v6, %v3264_v14  ;;  %v10944_v54 = vld [vmem:[#allocation62_spill] sm:$0xff] }
 0x2f7   : > { %7115 = vmatmul.msk.f32.gmra.mxu3 %vm3619_vm5, %v9188_v28 }
 0x2f8   : > { %v3606_v25 = vmax.f32 %v3574_v32, 0.0 }
 0x2f9   : > { %v3993_v53 = vld [vmem:[#allocation2 + $0xb0] sm:$0xff] }
 0x2fa   : > { %v9192_v16 = vpop.f32.mrf.mxu1  ;;  %v9194_v22 = vld [vmem:[#allocation2 + $0xaf] sm:$0xff]  ;;  %3647 = vst.msk [vmem:[#allocation2 + $0xb8] sm:$0xff] %vm3619_vm5, %v3606_v25  ;;  %7095 = vmatmul.msk.f32.gmra.mxu2 %vm3619_vm5, %v3993_v53  ;;  %v3522_v43 = vpop.f32.mrf.mxu0  ;;  %v4288_v25 = vmul.f32 %v10945_v31, %v9201_v37 }
 0x2fb   : > { %10941 = vst [vmem:[#allocation68_spill] sm:$0xff] %v9192_v16  ;;  %v3716_v6 = vmul.f32 %v10942_v21, %v9194_v22  ;;  %v3209_v14 = vpop.f32.mrf.mxu3  ;;  %v10943_v16 = vld [vmem:[#allocation55_spill] sm:$0xff] }
 0x2fc   : > { %v3265_v32 = vadd.f32 %v3209_v14, %v2987_v10  ;;  %v2678_v33 = vadd.f32 %v10944_v54, %v10943_v16 }
 0x2fd   : > { %7059 = vmatmul.msk.f32.gmra.mxu1 %vm3619_vm5, %v3716_v6  ;;  %v9204_v51 = vpop.f32.mrf.mxu2  ;;  %7152 = vmatmul.msk.f32.gmra.mxu0 %vm3619_vm5, %v8946_v62  ;;  %v7217_v62 = vld [vmem:[%s10586_s3 + $0xb0] sm:$0xff] }
 0x2fe   : > { %v3575_v36 = vadd.f32 %v3519_v47, %v3265_v32  ;;  %v2988_v6 = vadd.f32 %v8869_v34, %v2678_v33  ;;  %v7179_v47 = vld [vmem:[%s10586_s3 + $0x80] sm:$0xff]  ;;  %5327 = vmatpush.msrb.mxu2 %v7217_v62  ;;  %v4599_v34 = vmul.f32 %v10906_v58, %v8959_v38  ;;  %v10949_v58 = vld [vmem:[#allocation57_spill] sm:$0xff] }
 0x2ff   : > { %7116 = vmatmul.msk.f32.gmra.mxu3 %vm3619_vm5, %v4288_v25  ;;  %5019 = vmatpush.msrb.mxu1 %v7179_v47 }
 0x300   : > { %v3607_v53 = vmax.f32 %v3575_v36, 0.0  ;;  %v10946_v36 = vld [vmem:[#allocation43_spill] sm:$0xff] }
 0x301   : > { %v3994_v10 = vld [vmem:[#allocation2 + $0xb8] sm:$0xff]  ;;  %v2679_v25 = vadd.f32 %v8873_v19, %v10946_v36 }
 0x302   : > { %v9213_v21 = vpop.f32.mrf.mxu1  ;;  %3648 = vst.msk [vmem:[#allocation2 + $0xc0] sm:$0xff] %vm3619_vm5, %v3607_v53  ;;  %7096 = vmatmul.msk.f32.gmra.mxu2 %vm3619_vm5, %v3994_v10  ;;  %v3525_v16 = vpop.f32.mrf.mxu0  ;;  %v9224_v14 = vld [vmem:[#allocation2 + $0xb7] sm:$0xff]  ;;  %v9235_v10 = vld [vmem:[#allocation2 + $0x41] sm:$0xff] }
 0x303   : > { %v3212_v54 = vpop.f32.mrf.mxu3  ;;  %v2989_v38 = vadd.f32 %v8887_v24, %v2679_v25  ;;  %v10948_v19 = vld [vmem:[#allocation66_spill] sm:$0xff] }
 0x304   : > { %v3266_v32 = vadd.f32 %v3212_v54, %v2988_v6 }
 0x305   : > { %7060 = vmatmul.msk.f32.gmra.mxu1 %vm3619_vm5, %v9224_v14  ;;  %v9230_v33 = vpop.f32.mrf.mxu2  ;;  %7153 = vmatmul.msk.f32.gmra.mxu0 %vm3619_vm5, %v4599_v34  ;;  %v9248_v34 = vld [vmem:[#allocation2 + $0x49] sm:$0xff] }
 0x306   : > { %v3576_v53 = vadd.f32 %v3522_v43, %v3266_v32 }
 0x307   : > { %7117 = vmatmul.msk.f32.gmra.mxu3 %vm3619_vm5, %v9235_v10 }
 0x308   : > { %v3608_v31 = vmax.f32 %v3576_v53, 0.0 }
 0x309   : > { %v3995_v47 = vld [vmem:[#allocation2 + $0xc0] sm:$0xff] }
 0x30a   : > { %v9239_v6 = vpop.f32.mrf.mxu1  ;;  %v9241_v62 = vld [vmem:[#allocation2 + $0xbf] sm:$0xff]  ;;  %3649 = vst.msk [vmem:[#allocation2 + $0xc8] sm:$0xff] %vm3619_vm5, %v3608_v31  ;;  %7097 = vmatmul.msk.f32.gmra.mxu2 %vm3619_vm5, %v3995_v47  ;;  %v3528_v32 = vpop.f32.mrf.mxu0 }
 0x30b   : > { %10947 = vst [vmem:[#allocation73_spill] sm:$0xff] %v9239_v6  ;;  %v3718_v43 = vmul.f32 %v10948_v19, %v9241_v62  ;;  %v3215_v54 = vpop.f32.mrf.mxu3  ;;  %v2680_v6 = vadd.f32 %v8902_v11, %v10949_v58  ;;  %v10950_v31 = vld [vmem:[#allocation14_spill] sm:$0xff] }
 0x30c   : > { %v3267_v36 = vadd.f32 %v3215_v54, %v2989_v38  ;;  %v4290_v25 = vmul.f32 %v10950_v31, %v9248_v34  ;;  %v10952_v54 = vld [vmem:[#allocation53_spill] sm:$0xff] }
 0x30d   : > { %7061 = vmatmul.msk.f32.gmra.mxu1 %vm3619_vm5, %v3718_v43  ;;  %v9251_v53 = vpop.f32.mrf.mxu2  ;;  %7154 = vmatmul.msk.f32.gmra.mxu0 %vm3619_vm5, %v8981_v30  ;;  %v2990_v43 = vadd.f32 %v10952_v54, %v2680_v6  ;;  %v10955_v31 = vld [vmem:[#allocation65_spill] sm:$0xff] }
 0x30e   : > { %v3577_v24 = vadd.f32 %v3525_v16, %v3267_v36  ;;  %v4601_v36 = vmul.f32 %v10914_v39, %v8993_v3  ;;  %v10958_v3 = vld [vmem:[#allocation58_spill] sm:$0xff] }
 0x30f   : > { %7118 = vmatmul.msk.f32.gmra.mxu3 %vm3619_vm5, %v4290_v25  ;;  %v10954_v25 = vld [vmem:[#allocation48_spill] sm:$0xff] }
 0x310   : > { %v3609_v47 = vmax.f32 %v3577_v24, 0.0  ;;  %v2681_v6 = vadd.f32 %v10955_v31, %v10954_v25  ;;  %v9289_v25 = vld [vmem:[#allocation2 + $0x59] sm:$0xff] }
 0x311   : > { %v3996_v38 = vld [vmem:[#allocation2 + $0xc8] sm:$0xff] }
 0x312   : > { %v9260_v19 = vpop.f32.mrf.mxu1  ;;  %3650 = vst.msk [vmem:[#allocation2 + $0xd0] sm:$0xff] %vm3619_vm5, %v3609_v47  ;;  %7098 = vmatmul.msk.f32.gmra.mxu2 %vm3619_vm5, %v3996_v38  ;;  %v3531_v58 = vpop.f32.mrf.mxu0  ;;  %v9265_v16 = vld [vmem:[#allocation2 + $0xc7] sm:$0xff]  ;;  %v9276_v47 = vld [vmem:[#allocation2 + $0x51] sm:$0xff]  ;;  %v2991_v39 = vadd.f32 %v10958_v3, %v2681_v6 }
 0x313   : > { %10951 = vst [vmem:[#allocation26_spill] sm:$0xff] %v9260_v19  ;;  %v3218_v11 = vpop.f32.mrf.mxu3 }
 0x314   : > { %v3268_v30 = vadd.f32 %v3218_v11, %v2990_v43  ;;  %10956 = vst [vmem:[#allocation28_spill] sm:$0xff] %v9276_v47 }
 0x315   : > { %7062 = vmatmul.msk.f32.gmra.mxu1 %vm3619_vm5, %v9265_v16  ;;  %v9271_v24 = vpop.f32.mrf.mxu2  ;;  %7155 = vmatmul.msk.f32.gmra.mxu0 %vm3619_vm5, %v4601_v36 }
 0x316   : > { %10953 = vst [vmem:[#allocation19_spill] sm:$0xff] %v9271_v24  ;;  %v3578_v54 = vadd.f32 %v3528_v32, %v3268_v30  ;;  %v10959_v32 = vld [vmem:[#allocation4_spill] sm:$0xff]  ;;  %v10960_v24 = vld [vmem:[#allocation49_spill] sm:$0xff] }
 0x317   : > { %7119 = vmatmul.msk.f32.gmra.mxu3 %vm3619_vm5, %v9276_v47  ;;  %v2682_v47 = vadd.f32 %v8940_v0, %v10960_v24 }
 0x318   : > { %v3610_v38 = vmax.f32 %v3578_v54, 0.0 }
 0x319   : > { %v3997_v11 = vld [vmem:[#allocation2 + $0xd0] sm:$0xff] }
 0x31a   : > { %v9280_v43 = vpop.f32.mrf.mxu1  ;;  %v9282_v19 = vld [vmem:[#allocation2 + $0xcf] sm:$0xff]  ;;  %3651 = vst.msk [vmem:[#allocation2 + $0xd8] sm:$0xff] %vm3619_vm5, %v3610_v38  ;;  %7099 = vmatmul.msk.f32.gmra.mxu2 %vm3619_vm5, %v3997_v11  ;;  %v3534_v36 = vpop.f32.mrf.mxu0 }
 0x31b   : > { %10957 = vst [vmem:[#allocation21_spill] sm:$0xff] %v9280_v43  ;;  %v3720_v31 = vmul.f32 %v10959_v32, %v9282_v19  ;;  %v3221_v30 = vpop.f32.mrf.mxu3  ;;  %v10961_v38 = vld [vmem:[#allocation16_spill] sm:$0xff] }
 0x31c   : > { %v3269_v54 = vadd.f32 %v3221_v30, %v2991_v39  ;;  %v4292_v11 = vmul.f32 %v10961_v38, %v9289_v25  ;;  %v10963_v30 = vld [vmem:[#allocation69_spill] sm:$0xff]  ;;  %v10966_v38 = vld [vmem:[#allocation70_spill] sm:$0xff] }
 0x31d   : > { %7063 = vmatmul.msk.f32.gmra.mxu1 %vm3619_vm5, %v3720_v31  ;;  %v9292_v43 = vpop.f32.mrf.mxu2  ;;  %7156 = vmatmul.msk.f32.gmra.mxu0 %vm3619_vm5, %v9021_v57  ;;  %v2992_v31 = vadd.f32 %v10963_v30, %v2682_v47 }
 0x31e   : > { %v3579_v6 = vadd.f32 %v3531_v58, %v3269_v54  ;;  %v4603_v54 = vmul.f32 %v10919_v7, %v9041_v61 }
 0x31f   : > { %7120 = vmatmul.msk.f32.gmra.mxu3 %vm3619_vm5, %v4292_v11  ;;  %v10965_v11 = vld [vmem:[#allocation51_spill] sm:$0xff] }
 0x320   : > { %v3611_v3 = vmax.f32 %v3579_v6, 0.0  ;;  %v2683_v47 = vadd.f32 %v10966_v38, %v10965_v11  ;;  %v9330_v11 = vld [vmem:[#allocation2 + $0x69] sm:$0xff] }
 0x321   : > { %v3998_v39 = vld [vmem:[#allocation2 + $0xd8] sm:$0xff] }
 0x322   : > { %v9301_v32 = vpop.f32.mrf.mxu1  ;;  %3652 = vst.msk [vmem:[#allocation2 + $0xe0] sm:$0xff] %vm3619_vm5, %v3611_v3  ;;  %7100 = vmatmul.msk.f32.gmra.mxu2 %vm3619_vm5, %v3998_v39  ;;  %v3537_v58 = vpop.f32.mrf.mxu0  ;;  %v9306_v24 = vld [vmem:[#allocation2 + $0xd7] sm:$0xff]  ;;  %v9317_v3 = vld [vmem:[#allocation2 + $0x61] sm:$0xff]  ;;  %v2993_v61 = vadd.f32 %v8974_v55, %v2683_v47 }
 0x323   : > { %10962 = vst [vmem:[#allocation22_spill] sm:$0xff] %v9301_v32  ;;  %v3224_v0 = vpop.f32.mrf.mxu3  ;;  %v10970_v47 = vld [vmem:[#allocation18_spill] sm:$0xff] }
 0x324   : > { %v3270_v57 = vadd.f32 %v3224_v0, %v2992_v31 }
 0x325   : > { %7064 = vmatmul.msk.f32.gmra.mxu1 %vm3619_vm5, %v9306_v24  ;;  %v9312_v6 = vpop.f32.mrf.mxu2  ;;  %7157 = vmatmul.msk.f32.gmra.mxu0 %vm3619_vm5, %v4603_v54 }
 0x326   : > { %10964 = vst [vmem:[#allocation34_spill] sm:$0xff] %v9312_v6  ;;  %v3580_v30 = vadd.f32 %v3534_v36, %v3270_v57  ;;  %v10968_v36 = vld [vmem:[#allocation7_spill] sm:$0xff] }
 0x327   : > { %7121 = vmatmul.msk.f32.gmra.mxu3 %vm3619_vm5, %v9317_v3 }
 0x328   : > { %v3612_v39 = vmax.f32 %v3580_v30, 0.0 }
 0x329   : > { %v3999_v0 = vld [vmem:[#allocation2 + $0xe0] sm:$0xff] }
 0x32a   : > { %v9321_v31 = vpop.f32.mrf.mxu1  ;;  %v9323_v32 = vld [vmem:[#allocation2 + $0xdf] sm:$0xff]  ;;  %3653 = vst.msk [vmem:[#allocation2 + $0xe8] sm:$0xff] %vm3619_vm5, %v3612_v39  ;;  %7101 = vmatmul.msk.f32.gmra.mxu2 %vm3619_vm5, %v3999_v0  ;;  %v3540_v54 = vpop.f32.mrf.mxu0  ;;  %v4294_v39 = vmul.f32 %v10970_v47, %v9330_v11 }
 0x32b   : > { %10967 = vst [vmem:[#allocation24_spill] sm:$0xff] %v9321_v31  ;;  %v3722_v38 = vmul.f32 %v10968_v36, %v9323_v32  ;;  %v3227_v57 = vpop.f32.mrf.mxu3  ;;  %v10969_v31 = vld [vmem:[#allocation42_spill] sm:$0xff] }
 0x32c   : > { %v3271_v30 = vadd.f32 %v3227_v57, %v2993_v61  ;;  %v2684_v6 = vadd.f32 %v8983_v13, %v10969_v31  ;;  %v7254_v13 = vld [vmem:[%s10586_s3 + $0xd8] sm:$0xff] }
 0x32d   : > { %7065 = vmatmul.msk.f32.gmra.mxu1 %vm3619_vm5, %v3722_v38  ;;  %v9333_v7 = vpop.f32.mrf.mxu2  ;;  %7158 = vmatmul.msk.f32.gmra.mxu0 %vm3619_vm5, %v9069_v41 }
 0x32e   : > { %v3581_v55 = vadd.f32 %v3537_v58, %v3271_v30  ;;  %v2994_v38 = vadd.f32 %v8996_v27, %v2684_v6  ;;  %5636 = vmatpush.msra.mxu3 %v7254_v13  ;;  %v4605_v27 = vmul.f32 %v10924_v40, %v9082_v48  ;;  %v10972_v30 = vld [vmem:[#allocation54_spill] sm:$0xff] }
 0x32f   : > { %7122 = vmatmul.msk.f32.gmra.mxu3 %vm3619_vm5, %v4294_v39  ;;  %v9383_v40 = vld [vmem:[#allocation2 + $0x79] sm:$0xff] }
 0x330   : > { %v3613_v0 = vmax.f32 %v3581_v55, 0.0  ;;  %v2685_v55 = vadd.f32 %v9007_v44, %v10972_v30  ;;  %v7215_v44 = vld [vmem:[%s10586_s3 + $0xa0] sm:$0xff]  ;;  %v7290_v30 = vld [vmem:[%s10586_s3 + $0xf8] sm:$0xff] }
 0x331   : > { %v4000_v61 = vld [vmem:[#allocation2 + $0xe8] sm:$0xff]  ;;  %5914 = vmatpush.msra.mxu0 %v7290_v30 }
 0x332   : > { %v9342_v36 = vpop.f32.mrf.mxu1  ;;  %3654 = vst.msk [vmem:[#allocation2 + $0xf0] sm:$0xff] %vm3619_vm5, %v3613_v0  ;;  %7102 = vmatmul.msk.f32.gmra.mxu2 %vm3619_vm5, %v4000_v61  ;;  %v3543_v58 = vpop.f32.mrf.mxu0  ;;  %v9350_v31 = vld [vmem:[#allocation2 + $0xe7] sm:$0xff]  ;;  %v9361_v0 = vld [vmem:[#allocation2 + $0x71] sm:$0xff] }
 0x333   : > { %v3230_v41 = vpop.f32.mrf.mxu3  ;;  %v7216_v61 = vld [vmem:[%s10586_s3 + $0xa8] sm:$0xff] }
 0x334   : > { %v3272_v57 = vadd.f32 %v3230_v41, %v2994_v38  ;;  %5328 = vmatpush.msrb.mxu2 %v7216_v61 }
 0x335   : > { %7066 = vmatmul.msk.f32.gmra.mxu1 %vm3619_vm5, %v9350_v31  ;;  %v9356_v6 = vpop.f32.mrf.mxu2  ;;  %7159 = vmatmul.msk.f32.gmra.mxu0 %vm3619_vm5, %v4605_v27 }
 0x336   : > { %10971 = vst [vmem:[#allocation25_spill] sm:$0xff] %v9356_v6  ;;  %v3582_v39 = vadd.f32 %v3540_v54, %v3272_v57  ;;  %v2995_v54 = vadd.f32 %v9023_v50, %v2685_v55  ;;  %v10974_v57 = vld [vmem:[#allocation10_spill] sm:$0xff]  ;;  %5329 = vmatpush.msrb.mxu2 %v7215_v44  ;;  %v10976_v44 = vld [vmem:[#allocation23_spill] sm:$0xff] }
 0x337   : > { %7123 = vmatmul.msk.f32.gmra.mxu3 %vm3619_vm5, %v9361_v0  ;;  %v7326_v50 = vld [vmem:[%s10586_s3 + $0x118] sm:$0xff]  ;;  %v4296_v30 = vmul.f32 %v10976_v44, %v9383_v40 }
 0x338   : > { %v3614_v38 = vmax.f32 %v3582_v39, 0.0  ;;  %6224 = vmatpush.msra.mxu1 %v7326_v50 }
 0x339   : > { %v4001_v13 = vld [vmem:[#allocation2 + $0xf0] sm:$0xff] }
 0x33a   : > { %v9368_v48 = vpop.f32.mrf.mxu1  ;;  %v9370_v41 = vld [vmem:[#allocation2 + $0xef] sm:$0xff]  ;;  %3655 = vst.msk [vmem:[#allocation2 + $0xf8] sm:$0xff] %vm3619_vm5, %v3614_v38  ;;  %7103 = vmatmul.msk.f32.gmra.mxu2 %vm3619_vm5, %v4001_v13  ;;  %v3546_v61 = vpop.f32.mrf.mxu0  ;;  %v10975_v38 = vld [vmem:[#allocation67_spill] sm:$0xff] }
 0x33b   : > { %10973 = vst [vmem:[#allocation36_spill] sm:$0xff] %v9368_v48  ;;  %v3724_v27 = vmul.f32 %v10974_v57, %v9370_v41  ;;  %v3233_v39 = vpop.f32.mrf.mxu3  ;;  %v2686_v13 = vadd.f32 %v9037_v23, %v10975_v38  ;;  %v10978_v38 = vld [vmem:[#allocation59_spill] sm:$0xff] }
 0x33c   : > { %v3273_v48 = vadd.f32 %v3233_v39, %v2995_v54 }
 0x33d   : > { %7067 = vmatmul.msk.f32.gmra.mxu1 %vm3619_vm5, %v3724_v27  ;;  %v9389_v55 = vpop.f32.mrf.mxu2  ;;  %7160 = vmatmul.msk.f32.gmra.mxu0 %vm3619_vm5, %v9103_v26  ;;  %v2996_v6 = vadd.f32 %v9053_v52, %v2686_v13  ;;  %v2687_v52 = vadd.f32 %v9059_v59, %v10978_v38  ;;  %v10980_v59 = vld [vmem:[#allocation13_spill] sm:$0xff] }
 0x33e   : > { %v3583_v57 = vadd.f32 %v3543_v58, %v3273_v48  ;;  %v9427_v38 = vld [vmem:[#allocation2 + $0x89] sm:$0xff] }
 0x33f   : > { %7124 = vmatmul.msk.f32.gmra.mxu3 %vm3619_vm5, %v4296_v30  ;;  %v9414_v30 = vld [vmem:[#allocation2 + $0x81] sm:$0xff] }
 0x340   : > { %v3615_v54 = vmax.f32 %v3583_v57, 0.0  ;;  %v4607_v57 = vmul.f32 %v10928_v35, %v9115_v15  ;;  %v2997_v15 = vadd.f32 %v9079_v4, %v2687_v52  ;;  %v10982_v52 = vld [vmem:[#allocation31_spill] sm:$0xff] }
 0x341   : > { %v4002_v39 = vld [vmem:[#allocation2 + $0xf8] sm:$0xff] }
 0x342   : > { %v9398_v27 = vpop.f32.mrf.mxu1  ;;  %3656 = vst.msk [vmem:[#allocation2 + $0x100] sm:$0xff] %vm3619_vm5, %v3615_v54  ;;  %7104 = vmatmul.msk.f32.gmra.mxu2 %vm3619_vm5, %v4002_v39  ;;  %v3549_v58 = vpop.f32.mrf.mxu0  ;;  %v9403_v48 = vld [vmem:[#allocation2 + $0xf7] sm:$0xff] }
 0x343   : > { %v3236_v23 = vpop.f32.mrf.mxu3 }
 0x344   : > { %v3274_v26 = vadd.f32 %v3236_v23, %v2996_v6 }
 0x345   : > { %7068 = vmatmul.msk.f32.gmra.mxu1 %vm3619_vm5, %v9403_v48  ;;  %v9409_v50 = vpop.f32.mrf.mxu2  ;;  %7161 = vmatmul.msk.f32.gmra.mxu0 %vm3619_vm5, %v4607_v57 }
 0x346   : > { %10977 = vst [vmem:[#allocation29_spill] sm:$0xff] %v9409_v50  ;;  %v3584_v13 = vadd.f32 %v3546_v61, %v3274_v26 }
 0x347   : > { %7125 = vmatmul.msk.f32.gmra.mxu3 %vm3619_vm5, %v9414_v30 }
 0x348   : > { %v3616_v54 = vmax.f32 %v3584_v13, 0.0 }
 0x349   : > { %v4003_v39 = vld [vmem:[#allocation2 + $0x100] sm:$0xff] }
 0x34a   : > { %v9418_v6 = vpop.f32.mrf.mxu1  ;;  %v9420_v23 = vld [vmem:[#allocation2 + $0xff] sm:$0xff]  ;;  %3657 = vst.msk [vmem:[#allocation2 + $0x108] sm:$0xff] %vm3619_vm5, %v3616_v54  ;;  %7105 = vmatmul.msk.f32.gmra.mxu2 %vm3619_vm5, %v4003_v39  ;;  %v3552_v57 = vpop.f32.mrf.mxu0  ;;  %v4298_v54 = vmul.f32 %v10982_v52, %v9427_v38 }
 0x34b   : > { %10979 = vst [vmem:[#allocation30_spill] sm:$0xff] %v9418_v6  ;;  %v3726_v61 = vmul.f32 %v10980_v59, %v9420_v23  ;;  %v3239_v26 = vpop.f32.mrf.mxu3  ;;  %v10981_v6 = vld [vmem:[#allocation60_spill] sm:$0xff] }
 0x34c   : > { %v3275_v13 = vadd.f32 %v3239_v26, %v2997_v15  ;;  %v2688_v50 = vadd.f32 %v9091_v8, %v10981_v6  ;;  %v9445_v26 = vld [vmem:[%s10587_s4] ss:$0 sm:$0xff] }
 0x34d   : > { %7069 = vmatmul.msk.f32.gmra.mxu1 %vm3619_vm5, %v3726_v61  ;;  %v9430_v35 = vpop.f32.mrf.mxu2  ;;  %7162 = vmatmul.msk.f32.gmra.mxu0 %vm3619_vm5, %v9136_v18 }
 0x34e   : > { %v3585_v4 = vadd.f32 %v3549_v58, %v3275_v13  ;;  %v2998_v61 = vadd.f32 %v9099_v29, %v2688_v50  ;;  %v4609_v29 = vmul.f32 %v10931_v46, %v9153_v42  ;;  %v3941_v13 = vadd.f32 %v9445_v26, %v9109_v17  ;;  %v4872_v46 = vld [vmem:[#allocation2 + $0x28] sm:$0xff] }
 0x34f   : > { %7126 = vmatmul.msk.f32.gmra.mxu3 %vm3619_vm5, %v4298_v54  ;;  %v9460_v54 = vld [vmem:[#allocation2 + $0x91] sm:$0xff] }
 0x350   : > { %v3617_v39 = vmax.f32 %v3585_v4, 0.0 }
 0x351   : > { %v4004_v15 = vld [vmem:[#allocation2 + $0x108] sm:$0xff] }
 0x352   : > { %v9439_v59 = vpop.f32.mrf.mxu1  ;;  %3658 = vst.msk [vmem:[#allocation2 + $0x110] sm:$0xff] %vm3619_vm5, %v3617_v39  ;;  %7106 = vmatmul.msk.f32.gmra.mxu2 %vm3619_vm5, %v4004_v15  ;;  %v4743_v18 = vpop.f32.mrf.mxu0  ;;  %v9449_v58 = vld [vmem:[#allocation2 + $0x107] sm:$0xff] }
 0x353   : > { %v3242_v8 = vpop.f32.mrf.mxu3 }
 0x354   : > { %v3276_v6 = vadd.f32 %v3242_v8, %v2998_v61  ;;  %v4219_v61 = vadd.f32 %v9120_v12, %v3941_v13  ;;  %v9470_v8 = vld [vmem:[#allocation2 + $0x99] sm:$0xff] }
 0x355   : > { %7070 = vmatmul.msk.f32.gmra.mxu1 %vm3619_vm5, %v9449_v58  ;;  %v9455_v50 = vpop.f32.mrf.mxu2  ;;  %7163 = vmatmul.msk.f32.gmra.mxu0 %vm3619_vm5, %v4609_v29  ;;  %v10983_v12 = vld [vmem:[#allocation39_spill] sm:$0xff] }
 0x356   : > { %v3586_v4 = vadd.f32 %v3552_v57, %v3276_v6  ;;  %v4871_v57 = vld [vmem:[#allocation2 + $0x20] sm:$0xff]  ;;  %v4300_v13 = vmul.f32 %v10983_v12, %v9470_v8 }
 0x357   : > { %7127 = vmatmul.msk.f32.gmra.mxu3 %vm3619_vm5, %v9460_v54 }
 0x358   : > { %v3618_v39 = vmax.f32 %v3586_v4, 0.0  ;;  %v3942_v4 = vadd.f32 %v9445_v26, %v9130_v60 }
 0x35a   : > { %v9464_v15 = vpop.f32.mrf.mxu1  ;;  %3659 = vst.msk [vmem:[#allocation2 + $0x118] sm:$0xff] %vm3619_vm5, %v3618_v39  ;;  %7219 = vmatmul.msk.f32.vlgmr.msrb.gmra.mxu2 %vm3619_vm5, %v9147_v63  ;;  %v4746_v17 = vpop.f32.mrf.mxu0  ;;  %v5182_v39 = vmul.f32 %v10933_v45, %v9160_v9 }
 0x35b   : > { %v4433_v42 = vpop.f32.mrf.mxu3 }
 0x35c   : > { %v4529_v6 = vadd.f32 %v4433_v42, %v4219_v61  ;;  %v4220_v42 = vadd.f32 %v9142_v2, %v3942_v4  ;;  %v3943_v2 = vadd.f32 %v9445_v26, %v9151_v20 }
 0x35d   : > { %7183 = vmatmul.msk.f32.vlgmr.msrb.gmra.mxu1 %vm3619_vm5, %v4871_v57  ;;  %v9473_v29 = vpop.f32.mrf.mxu2  ;;  %7164 = vmatmul.msk.f32.gmra.mxu0 %vm3619_vm5, %v9177_v5 }
 0x35e   : > { %v9481_v63 = vadd.f32 %v4743_v18, %v4529_v6  ;;  %v4611_v18 = vmul.f32 %v10936_v49, %v9194_v22  ;;  %v10987_v49 = vld [vmem:[#allocation64_spill] sm:$0xff] }
 0x35f   : > { %7128 = vmatmul.msk.f32.gmra.mxu3 %vm3619_vm5, %v4300_v13  ;;  %v9498_v13 = vld [vmem:[#allocation2 + $0xa1] sm:$0xff] }
 0x362   : > { %v9486_v61 = vpop.f32.mrf.mxu1  ;;  %7220 = vmatmul.msk.f32.gmra.mxu2 %vm3619_vm5, %v5182_v39  ;;  %v4749_v57 = vpop.f32.mrf.mxu0 }
 0x363   : > { %v4436_v60 = vpop.f32.mrf.mxu3 }
 0x364   : > { %v4530_v5 = vadd.f32 %v4436_v60, %v4220_v42  ;;  %v9509_v42 = vld [vmem:[#allocation2 + $0x30] sm:$0xff] }
 0x365   : > { %7184 = vmatmul.msk.f32.gmra.mxu1 %vm3619_vm5, %v4872_v46  ;;  %v9493_v6 = vpop.f32.mrf.mxu2  ;;  %7165 = vmatmul.msk.f32.gmra.mxu0 %vm3619_vm5, %v4611_v18  ;;  %v4221_v46 = vadd.f32 %v9163_v1, %v3943_v2  ;;  %v10984_v1 = vld [vmem:[#allocation50_spill] sm:$0xff]  ;;  %v10985_v2 = vld [vmem:[#allocation8_spill] sm:$0xff] }
 0x366   : > { %v9496_v9 = vadd.f32 %v4746_v17, %v4530_v5  ;;  %v9511_v17 = vld [vmem:[#allocation2 + $0xa9] sm:$0xff] }
 0x367   : > { %7129 = vmatmul.msk.f32.gmra.mxu3 %vm3619_vm5, %v9498_v13  ;;  %v4302_v5 = vmul.f32 %v10984_v1, %v9511_v17  ;;  %v9535_v1 = vld [vmem:[#allocation2 + $0x38] sm:$0xff] }
 0x36a   : > { %v9504_v4 = vpop.f32.mrf.mxu1  ;;  %7221 = vmatmul.msk.f32.gmra.mxu2 %vm3619_vm5, %v9188_v28  ;;  %v4752_v39 = vpop.f32.mrf.mxu0  ;;  %v3944_v28 = vadd.f32 %v9445_v26, %v9172_v56 }
 0x36b   : > { %v4439_v22 = vpop.f32.mrf.mxu3 }
 0x36c   : > { %v4531_v60 = vadd.f32 %v4439_v22, %v4221_v46  ;;  %v5184_v46 = vmul.f32 %v10985_v2, %v9201_v37  ;;  %v4222_v45 = vadd.f32 %v10987_v49, %v3944_v28  ;;  %v10988_v37 = vld [vmem:[#allocation56_spill] sm:$0xff]  ;;  %v9546_v28 = vld [vmem:[#allocation2 + $0xb1] sm:$0xff] }
 0x36d   : > { %7185 = vmatmul.msk.f32.gmra.mxu1 %vm3619_vm5, %v9509_v42  ;;  %v9515_v20 = vpop.f32.mrf.mxu2  ;;  %7166 = vmatmul.msk.f32.gmra.mxu0 %vm3619_vm5, %v9224_v14  ;;  %v7253_v14 = vld [vmem:[%s10586_s3 + $0xd0] sm:$0xff] }
 0x36e   : > { %v9521_v18 = vadd.f32 %v4749_v57, %v4531_v60  ;;  %5637 = vmatpush.msra.mxu3 %v7253_v14 }
 0x36f   : > { %7130 = vmatmul.msk.f32.gmra.mxu3 %vm3619_vm5, %v4302_v5  ;;  %v4613_v5 = vmul.f32 %v10988_v37, %v9241_v62  ;;  %v7289_v62 = vld [vmem:[%s10586_s3 + $0xf0] sm:$0xff] }
 0x370   : > { %5915 = vmatpush.msra.mxu0 %v7289_v62  ;;  %v10996_v62 = vld [vmem:[#allocation11_spill] sm:$0xff] }
 0x372   : > { %v9528_v22 = vpop.f32.mrf.mxu1  ;;  %7222 = vmatmul.msk.f32.gmra.mxu2 %vm3619_vm5, %v5184_v46  ;;  %v4755_v60 = vpop.f32.mrf.mxu0  ;;  %v10991_v46 = vld [vmem:[#allocation68_spill] sm:$0xff] }
 0x373   : > { %10986 = vst [vmem:[#allocation44_spill] sm:$0xff] %v9528_v22  ;;  %v4442_v57 = vpop.f32.mrf.mxu3  ;;  %v3945_v22 = vadd.f32 %v9445_v26, %v10991_v46 }
 0x374   : > { %v4532_v56 = vadd.f32 %v4442_v57, %v4222_v45 }
 0x375   : > { %7186 = vmatmul.msk.f32.gmra.mxu1 %vm3619_vm5, %v9535_v1  ;;  %v9541_v2 = vpop.f32.mrf.mxu2  ;;  %7167 = vmatmul.msk.f32.gmra.mxu0 %vm3619_vm5, %v4613_v5  ;;  %v4223_v14 = vadd.f32 %v9204_v51, %v3945_v22  ;;  %v9562_v5 = vld [vmem:[#allocation2 + $0xb9] sm:$0xff]  ;;  %v7325_v51 = vld [vmem:[%s10586_s3 + $0x110] sm:$0xff] }
 0x376   : > { %10989 = vst [vmem:[#allocation32_spill] sm:$0xff] %v9541_v2  ;;  %v9544_v49 = vadd.f32 %v4752_v39, %v4532_v56  ;;  %v9560_v56 = vld [vmem:[#allocation2 + $0x40] sm:$0xff]  ;;  %6225 = vmatpush.msra.mxu1 %v7325_v51  ;;  %v10994_v22 = vld [vmem:[#allocation61_spill] sm:$0xff]  ;;  %v9586_v2 = vld [vmem:[#allocation2 + $0x48] sm:$0xff] }
 0x377   : > { %7131 = vmatmul.msk.f32.gmra.mxu3 %vm3619_vm5, %v9546_v28  ;;  %v4304_v37 = vmul.f32 %v10994_v22, %v9562_v5  ;;  %v11009_v22 = vld [vmem:[#allocation19_spill] sm:$0xff] }
 0x378   : > { %10990 = vst [vmem:[#allocation33_spill] sm:$0xff] %v9544_v49 }
 0x37a   : > { %v9552_v45 = vpop.f32.mrf.mxu1  ;;  %7223 = vmatmul.msk.f32.gmra.mxu2 %vm3619_vm5, %v9235_v10  ;;  %v4758_v57 = vpop.f32.mrf.mxu0 }
 0x37b   : > { %10992 = vst [vmem:[#allocation46_spill] sm:$0xff] %v9552_v45  ;;  %v4445_v39 = vpop.f32.mrf.mxu3 }
 0x37c   : > { %v4533_v46 = vadd.f32 %v4445_v39, %v4223_v14  ;;  %v3946_v14 = vadd.f32 %v9445_v26, %v9213_v21  ;;  %v5186_v39 = vmul.f32 %v10996_v62, %v9248_v34  ;;  %v10998_v21 = vld [vmem:[#allocation66_spill] sm:$0xff]  ;;  %v11003_v62 = vld [vmem:[#allocation28_spill] sm:$0xff] }
 0x37d   : > { %7187 = vmatmul.msk.f32.gmra.mxu1 %vm3619_vm5, %v9560_v56  ;;  %v9569_v10 = vpop.f32.mrf.mxu2  ;;  %7168 = vmatmul.msk.f32.gmra.mxu0 %vm3619_vm5, %v9265_v16 }
 0x37e   : > { %10993 = vst [vmem:[#allocation37_spill] sm:$0xff] %v9569_v10  ;;  %v9575_v45 = vadd.f32 %v4755_v60, %v4533_v46  ;;  %v4224_v51 = vadd.f32 %v9230_v33, %v3946_v14  ;;  %v9597_v33 = vld [vmem:[#allocation2 + $0xc1] sm:$0xff]  ;;  %v11001_v14 = vld [vmem:[#allocation73_spill] sm:$0xff] }
 0x37f   : > { %7132 = vmatmul.msk.f32.gmra.mxu3 %vm3619_vm5, %v4304_v37  ;;  %v4615_v37 = vmul.f32 %v10998_v21, %v9282_v19 }
 0x380   : > { %10995 = vst [vmem:[#allocation47_spill] sm:$0xff] %v9575_v45  ;;  %v9631_v45 = vld [vmem:[#allocation2 + $0x58] sm:$0xff] }
 0x382   : > { %v9582_v49 = vpop.f32.mrf.mxu1  ;;  %7224 = vmatmul.msk.f32.gmra.mxu2 %vm3619_vm5, %v5186_v39  ;;  %v4761_v10 = vpop.f32.mrf.mxu0  ;;  %v3947_v39 = vadd.f32 %v9445_v26, %v11001_v14 }
 0x383   : > { %10997 = vst [vmem:[#allocation38_spill] sm:$0xff] %v9582_v49  ;;  %v4448_v16 = vpop.f32.mrf.mxu3 }
 0x384   : > { %v4534_v60 = vadd.f32 %v4448_v16, %v4224_v51  ;;  %v4225_v16 = vadd.f32 %v9251_v53, %v3947_v39  ;;  %v11005_v53 = vld [vmem:[#allocation71_spill] sm:$0xff] }
 0x385   : > { %7188 = vmatmul.msk.f32.gmra.mxu1 %vm3619_vm5, %v9586_v2  ;;  %v9592_v46 = vpop.f32.mrf.mxu2  ;;  %7169 = vmatmul.msk.f32.gmra.mxu0 %vm3619_vm5, %v4615_v37  ;;  %v9608_v37 = vld [vmem:[#allocation2 + $0x50] sm:$0xff] }
 0x386   : > { %10999 = vst [vmem:[#allocation40_spill] sm:$0xff] %v9592_v46  ;;  %v9595_v34 = vadd.f32 %v4758_v57, %v4534_v60  ;;  %v9610_v57 = vld [vmem:[#allocation2 + $0xc9] sm:$0xff] }
 0x387   : > { %7133 = vmatmul.msk.f32.gmra.mxu3 %vm3619_vm5, %v9597_v33  ;;  %v4306_v39 = vmul.f32 %v11005_v53, %v9610_v57 }
 0x388   : > { %11000 = vst [vmem:[#allocation55_spill] sm:$0xff] %v9595_v34 }
 0x38a   : > { %v9603_v51 = vpop.f32.mrf.mxu1  ;;  %7225 = vmatmul.msk.f32.gmra.mxu2 %vm3619_vm5, %v11003_v62  ;;  %v4764_v21 = vpop.f32.mrf.mxu0  ;;  %v11006_v62 = vld [vmem:[#allocation26_spill] sm:$0xff] }
 0x38b   : > { %11002 = vst [vmem:[#allocation62_spill] sm:$0xff] %v9603_v51  ;;  %v4451_v19 = vpop.f32.mrf.mxu3  ;;  %v3948_v34 = vadd.f32 %v9445_v26, %v11006_v62 }
 0x38c   : > { %v4535_v60 = vadd.f32 %v4451_v19, %v4225_v16  ;;  %v11007_v16 = vld [vmem:[#allocation14_spill] sm:$0xff] }
 0x38d   : > { %7189 = vmatmul.msk.f32.gmra.mxu1 %vm3619_vm5, %v9608_v37  ;;  %v9614_v14 = vpop.f32.mrf.mxu2  ;;  %7170 = vmatmul.msk.f32.gmra.mxu0 %vm3619_vm5, %v9306_v24  ;;  %v5188_v19 = vmul.f32 %v11007_v16, %v9289_v25 }
 0x38e   : > { %11004 = vst [vmem:[#allocation43_spill] sm:$0xff] %v9614_v14  ;;  %v9620_v51 = vadd.f32 %v4761_v10, %v4535_v60  ;;  %v4226_v14 = vadd.f32 %v11009_v22, %v3948_v34  ;;  %v11010_v60 = vld [vmem:[#allocation4_spill] sm:$0xff]  ;;  %v9642_v22 = vld [vmem:[#allocation2 + $0xd1] sm:$0xff] }
 0x38f   : > { %7134 = vmatmul.msk.f32.gmra.mxu3 %vm3619_vm5, %v4306_v39  ;;  %v4617_v39 = vmul.f32 %v11010_v60, %v9323_v32  ;;  %v11013_v34 = vld [vmem:[#allocation21_spill] sm:$0xff] }
 0x392   : > { %v9627_v46 = vpop.f32.mrf.mxu1  ;;  %7226 = vmatmul.msk.f32.gmra.mxu2 %vm3619_vm5, %v5188_v19  ;;  %v4767_v49 = vpop.f32.mrf.mxu0  ;;  %v3949_v19 = vadd.f32 %v9445_v26, %v11013_v34 }
 0x393   : > { %11008 = vst [vmem:[#allocation57_spill] sm:$0xff] %v9627_v46  ;;  %v4454_v24 = vpop.f32.mrf.mxu3  ;;  %v9676_v46 = vld [vmem:[#allocation2 + $0x68] sm:$0xff] }
 0x394   : > { %v4536_v10 = vadd.f32 %v4454_v24, %v4226_v14  ;;  %v4227_v24 = vadd.f32 %v9292_v43, %v3949_v19  ;;  %v11016_v43 = vld [vmem:[#allocation41_spill] sm:$0xff] }
 0x395   : > { %7190 = vmatmul.msk.f32.gmra.mxu1 %vm3619_vm5, %v9631_v45  ;;  %v9637_v62 = vpop.f32.mrf.mxu2  ;;  %7171 = vmatmul.msk.f32.gmra.mxu0 %vm3619_vm5, %v4617_v39  ;;  %v9653_v39 = vld [vmem:[#allocation2 + $0x60] sm:$0xff] }
 0x396   : > { %11011 = vst [vmem:[#allocation53_spill] sm:$0xff] %v9637_v62  ;;  %v9640_v25 = vadd.f32 %v4764_v21, %v4536_v10  ;;  %v9655_v21 = vld [vmem:[#allocation2 + $0xd9] sm:$0xff] }
 0x397   : > { %7135 = vmatmul.msk.f32.gmra.mxu3 %vm3619_vm5, %v9642_v22  ;;  %v4308_v19 = vmul.f32 %v11016_v43, %v9655_v21  ;;  %v11020_v62 = vld [vmem:[#allocation34_spill] sm:$0xff] }
 0x398   : > { %11012 = vst [vmem:[#allocation48_spill] sm:$0xff] %v9640_v25 }
 0x39a   : > { %v9648_v14 = vpop.f32.mrf.mxu1  ;;  %7227 = vmatmul.msk.f32.gmra.mxu2 %vm3619_vm5, %v9317_v3  ;;  %v4770_v60 = vpop.f32.mrf.mxu0  ;;  %v11018_v3 = vld [vmem:[#allocation22_spill] sm:$0xff] }
 0x39b   : > { %11014 = vst [vmem:[#allocation65_spill] sm:$0xff] %v9648_v14  ;;  %v4457_v32 = vpop.f32.mrf.mxu3  ;;  %v3950_v14 = vadd.f32 %v9445_v26, %v11018_v3 }
 0x39c   : > { %v4537_v10 = vadd.f32 %v4457_v32, %v4227_v24  ;;  %v11019_v24 = vld [vmem:[#allocation16_spill] sm:$0xff] }
 0x39d   : > { %7191 = vmatmul.msk.f32.gmra.mxu1 %vm3619_vm5, %v9653_v39  ;;  %v9659_v34 = vpop.f32.mrf.mxu2  ;;  %7172 = vmatmul.msk.f32.gmra.mxu0 %vm3619_vm5, %v9350_v31  ;;  %v5190_v32 = vmul.f32 %v11019_v24, %v9330_v11 }
 0x39e   : > { %11015 = vst [vmem:[#allocation58_spill] sm:$0xff] %v9659_v34  ;;  %v9665_v16 = vadd.f32 %v4767_v49, %v4537_v10  ;;  %v4228_v34 = vadd.f32 %v11020_v62, %v3950_v14  ;;  %v11021_v10 = vld [vmem:[#allocation7_spill] sm:$0xff]  ;;  %v11023_v14 = vld [vmem:[#allocation24_spill] sm:$0xff] }
 0x39f   : > { %7136 = vmatmul.msk.f32.gmra.mxu3 %vm3619_vm5, %v4308_v19  ;;  %v4619_v19 = vmul.f32 %v11021_v10, %v9370_v41  ;;  %v9687_v62 = vld [vmem:[#allocation2 + $0xe1] sm:$0xff]  ;;  %v11026_v10 = vld [vmem:[#allocation25_spill] sm:$0xff] }
 0x3a0   : > { %11017 = vst [vmem:[#allocation49_spill] sm:$0xff] %v9665_v16 }
 0x3a2   : > { %v9672_v25 = vpop.f32.mrf.mxu1  ;;  %7228 = vmatmul.msk.f32.gmra.mxu2 %vm3619_vm5, %v5190_v32  ;;  %v4773_v53 = vpop.f32.mrf.mxu0  ;;  %v3951_v32 = vadd.f32 %v9445_v26, %v11023_v14 }
 0x3a3   : > { %v4460_v31 = vpop.f32.mrf.mxu3 }
 0x3a4   : > { %v4538_v49 = vadd.f32 %v4460_v31, %v4228_v34  ;;  %v4229_v31 = vadd.f32 %v9333_v7, %v3951_v32  ;;  %v11024_v7 = vld [vmem:[#allocation52_spill] sm:$0xff] }
 0x3a5   : > { %7192 = vmatmul.msk.f32.gmra.mxu1 %vm3619_vm5, %v9676_v46  ;;  %v9682_v3 = vpop.f32.mrf.mxu2  ;;  %7173 = vmatmul.msk.f32.gmra.mxu0 %vm3619_vm5, %v4619_v19  ;;  %v9698_v19 = vld [vmem:[#allocation2 + $0x70] sm:$0xff] }
 0x3a6   : > { %v9685_v11 = vadd.f32 %v4770_v60, %v4538_v49  ;;  %v9700_v60 = vld [vmem:[#allocation2 + $0xe9] sm:$0xff] }
 0x3a7   : > { %7137 = vmatmul.msk.f32.gmra.mxu3 %vm3619_vm5, %v9687_v62  ;;  %v4310_v32 = vmul.f32 %v11024_v7, %v9700_v60 }
 0x3a8   : > { %11022 = vst [vmem:[#allocation69_spill] sm:$0xff] %v9685_v11 }
 0x3aa   : > { %v9693_v34 = vpop.f32.mrf.mxu1  ;;  %7229 = vmatmul.msk.f32.gmra.mxu2 %vm3619_vm5, %v9361_v0  ;;  %v4776_v16 = vpop.f32.mrf.mxu0  ;;  %v3952_v0 = vadd.f32 %v9445_v26, %v9342_v36  ;;  %v7288_v36 = vld [vmem:[%s10586_s3 + $0xe8] sm:$0xff] }
 0x3ab   : > { %v4463_v41 = vpop.f32.mrf.mxu3  ;;  %5916 = vmatpush.msra.mxu0 %v7288_v36 }
 0x3ac   : > { %v4539_v49 = vadd.f32 %v4463_v41, %v4229_v31  ;;  %v5192_v31 = vmul.f32 %v10970_v47, %v9383_v40  ;;  %v4230_v24 = vadd.f32 %v11026_v10, %v3952_v0  ;;  %v11027_v10 = vld [vmem:[#allocation10_spill] sm:$0xff] }
 0x3ad   : > { %7193 = vmatmul.msk.f32.gmra.mxu1 %vm3619_vm5, %v9698_v19  ;;  %v9704_v14 = vpop.f32.mrf.mxu2  ;;  %7174 = vmatmul.msk.f32.gmra.mxu0 %vm3619_vm5, %v9403_v48  ;;  %v7252_v48 = vld [vmem:[%s10586_s3 + $0xc8] sm:$0xff] }
 0x3ae   : > { %v9710_v11 = vadd.f32 %v4773_v53, %v4539_v49  ;;  %5638 = vmatpush.msra.mxu3 %v7252_v48  ;;  %v7251_v48 = vld [vmem:[%s10586_s3 + $0xc0] sm:$0xff] }
 0x3af   : > { %7138 = vmatmul.msk.f32.gmra.mxu3 %vm3619_vm5, %v4310_v32  ;;  %v4621_v32 = vmul.f32 %v11027_v10, %v9420_v23  ;;  %v11030_v23 = vld [vmem:[#allocation36_spill] sm:$0xff] }
 0x3b0   : > { %11025 = vst [vmem:[#allocation51_spill] sm:$0xff] %v9710_v11  ;;  %v9724_v11 = vld [vmem:[#allocation2 + $0x78] sm:$0xff]  ;;  %5639 = vmatpush.msra.mxu3 %v7251_v48  ;;  %v3953_v36 = vadd.f32 %v9445_v26, %v11030_v23  ;;  %v7324_v48 = vld [vmem:[%s10586_s3 + $0x108] sm:$0xff] }
 0x3b1   : > { %6226 = vmatpush.msra.mxu1 %v7324_v48  ;;  %v5194_v48 = vmul.f32 %v10976_v44, %v9427_v38 }
 0x3b2   : > { %v9717_v41 = vpop.f32.mrf.mxu1  ;;  %7230 = vmatmul.msk.f32.gmra.mxu2 %vm3619_vm5, %v5192_v31  ;;  %v4779_v49 = vpop.f32.mrf.mxu0  ;;  %v7287_v31 = vld [vmem:[%s10586_s3 + $0xe0] sm:$0xff] }
 0x3b3   : > { %v4466_v53 = vpop.f32.mrf.mxu3  ;;  %5917 = vmatpush.msra.mxu0 %v7287_v31 }
 0x3b4   : > { %v4540_v40 = vadd.f32 %v4466_v53, %v4230_v24  ;;  %v9744_v53 = vld [vmem:[#allocation2 + $0xf1] sm:$0xff] }
 0x3b5   : > { %7194 = vmatmul.msk.f32.gmra.mxu1 %vm3619_vm5, %v9724_v11  ;;  %v9733_v0 = vpop.f32.mrf.mxu2  ;;  %7175 = vmatmul.msk.f32.gmra.mxu0 %vm3619_vm5, %v4621_v32  ;;  %v4231_v32 = vadd.f32 %v9389_v55, %v3953_v36  ;;  %v11033_v55 = vld [vmem:[#allocation63_spill] sm:$0xff] }
 0x3b6   : > { %11028 = vst [vmem:[#allocation70_spill] sm:$0xff] %v9733_v0  ;;  %v9742_v24 = vadd.f32 %v4776_v16, %v4540_v40  ;;  %v9755_v40 = vld [vmem:[#allocation2 + $0x80] sm:$0xff] }
 0x3b7   : > { %7139 = vmatmul.msk.f32.gmra.mxu3 %vm3619_vm5, %v9744_v53 }
 0x3b8   : > { %11029 = vst [vmem:[#allocation42_spill] sm:$0xff] %v9742_v24  ;;  %v9757_v24 = vld [vmem:[#allocation2 + $0xf9] sm:$0xff] }
 0x3ba   : > { %v9750_v10 = vpop.f32.mrf.mxu1  ;;  %7231 = vmatmul.msk.f32.gmra.mxu2 %vm3619_vm5, %v9414_v30  ;;  %v4782_v16 = vpop.f32.mrf.mxu0  ;;  %v4312_v30 = vmul.f32 %v11033_v55, %v9757_v24  ;;  %v11036_v55 = vld [vmem:[#allocation29_spill] sm:$0xff] }
 0x3bb   : > { %11031 = vst [vmem:[#allocation54_spill] sm:$0xff] %v9750_v10  ;;  %v4469_v47 = vpop.f32.mrf.mxu3 }
 0x3bc   : > { %v4541_v31 = vadd.f32 %v4469_v47, %v4231_v32  ;;  %v6392_v47 = vld [vmem:[%s10588_s5 + $0x18] sm:$0xff]  ;;  %v3954_v32 = vadd.f32 %v9445_v26, %v9398_v27  ;;  %v11037_v27 = vld [vmem:[#allocation13_spill] sm:$0xff] }
 0x3bd   : > { %7195 = vmatmul.msk.f32.gmra.mxu1 %vm3619_vm5, %v9755_v40  ;;  %v9764_v23 = vpop.f32.mrf.mxu2  ;;  %7176 = vmatmul.msk.f32.gmra.mxu0 %vm3619_vm5, %v9449_v58  ;;  %v9782_v58 = vld [vmem:[#allocation2 + $0x10f] sm:$0xff] }
 0x3be   : > { %11032 = vst [vmem:[#allocation67_spill] sm:$0xff] %v9764_v23  ;;  %v9773_v36 = vadd.f32 %v4779_v49, %v4541_v31  ;;  %6505 = vmatpush.msra.mxu2 %v6392_v47  ;;  %v4232_v10 = vadd.f32 %v11036_v55, %v3954_v32  ;;  %v9786_v31 = vld [vmem:[#allocation2 + $0x88] sm:$0xff]  ;;  %v11040_v32 = vld [vmem:[#allocation30_spill] sm:$0xff] }
 0x3bf   : > { %7140 = vmatmul.msk.f32.gmra.mxu3 %vm3619_vm5, %v4312_v30  ;;  %11035 = vst [vmem:[#allocation60_spill] sm:$0xff] %v9782_v58  ;;  %v4623_v30 = vmul.f32 %v11037_v27, %v9782_v58  ;;  %v9797_v55 = vld [vmem:[#allocation2 + $0x101] sm:$0xff]  ;;  %v3956_v58 = vadd.f32 %v9445_v26, %v9439_v59 }
 0x3c0   : > { %11034 = vst [vmem:[#allocation59_spill] sm:$0xff] %v9773_v36 }
 0x3c2   : > { %v9780_v23 = vpop.f32.mrf.mxu1  ;;  %7232 = vmatmul.msk.f32.gmra.mxu2 %vm3619_vm5, %v5194_v48  ;;  %v4785_v49 = vpop.f32.mrf.mxu0  ;;  %v3955_v48 = vadd.f32 %v9445_v26, %v11040_v32 }
 0x3c3   : > { %v4472_v0 = vpop.f32.mrf.mxu3 }
 0x3c4   : > { %v4542_v47 = vadd.f32 %v4472_v0, %v4232_v10  ;;  %v4233_v0 = vadd.f32 %v9430_v35, %v3955_v48  ;;  %v11044_v35 = vld [vmem:[#allocation72_spill] sm:$0xff] }
 0x3c5   : > { %7196 = vmatmul.msk.f32.gmra.mxu1 %vm3619_vm5, %v9786_v31  ;;  %v9792_v38 = vpop.f32.mrf.mxu2  ;;  %7177 = vmatmul.msk.f32.gmra.mxu0 %vm3619_vm5, %v4623_v30  ;;  %v9808_v30 = vld [vmem:[#allocation2 + $0x90] sm:$0xff] }
 0x3c6   : > { %11038 = vst [vmem:[#allocation39_spill] sm:$0xff] %v9792_v38  ;;  %v9795_v36 = vadd.f32 %v4782_v16, %v4542_v47  ;;  %v9810_v16 = vld [vmem:[#allocation2 + $0x109] sm:$0xff]  ;;  %v9833_v38 = vld [vmem:[#allocation2 + $0x98] sm:$0xff] }
 0x3c7   : > { %7141 = vmatmul.msk.f32.gmra.mxu3 %vm3619_vm5, %v9797_v55 }
 0x3c8   : > { %11039 = vst [vmem:[#allocation64_spill] sm:$0xff] %v9795_v36  ;;  %v9816_v36 = vld [vmem:[#allocation2 + $0x117] sm:$0xff] }
 0x3c9   : > { %11043 = vst [vmem:[#allocation28_spill] sm:$0xff] %v9816_v36 }
 0x3ca   : > { %v9803_v10 = vpop.f32.mrf.mxu1  ;;  %7233 = vmatmul.msk.f32.gmra.mxu2 %vm3619_vm5, %v9460_v54  ;;  %v4788_v44 = vpop.f32.mrf.mxu0  ;;  %v4314_v54 = vmul.f32 %v11044_v35, %v9810_v16 }
 0x3cb   : > { %11041 = vst [vmem:[#allocation68_spill] sm:$0xff] %v9803_v10  ;;  %v4475_v27 = vpop.f32.mrf.mxu3 }
 0x3cc   : > { %v4543_v47 = vadd.f32 %v4475_v27, %v4233_v0  ;;  %v5196_v27 = vmul.f32 %v10982_v52, %v9470_v8  ;;  %v11046_v8 = vld [vmem:[#allocation3_spill] sm:$0xff] }
 0x3cd   : > { %7197 = vmatmul.msk.f32.gmra.mxu1 %vm3619_vm5, %v9808_v30  ;;  %v9814_v32 = vpop.f32.mrf.mxu2  ;;  %7178 = vmatmul.msk.f32.gmra.mxu0 %vm3619_vm5, %v9816_v36  ;;  %v9850_v52 = vld [vmem:[#allocation2 + $0xa0] sm:$0xff] }
 0x3ce   : > { %11042 = vst [vmem:[#allocation73_spill] sm:$0xff] %v9814_v32  ;;  %v9822_v48 = vadd.f32 %v4785_v49, %v4543_v47  ;;  %v4234_v32 = vadd.f32 %v9455_v50, %v3956_v58  ;;  %v5459_v49 = vld [vmem:[#allocation2 + $0x2f] sm:$0xff]  ;;  %v3957_v50 = vadd.f32 %v9445_v26, %v9464_v15 }
 0x3cf   : > { %7142 = vmatmul.msk.f32.gmra.mxu3 %vm3619_vm5, %v4314_v54  ;;  %v5491_v54 = vmul.f32 %v11046_v8, %v5459_v49 }
 0x3d0   : > { %11045 = vst [vmem:[#allocation26_spill] sm:$0xff] %v9822_v48 }
 0x3d2   : > { %v9829_v0 = vpop.f32.mrf.mxu1  ;;  %7234 = vmatmul.msk.f32.gmra.mxu2 %vm3619_vm5, %v5196_v27  ;;  %v4791_v10 = vpop.f32.mrf.mxu0 }
 0x3d3   : > { %v4478_v36 = vpop.f32.mrf.mxu3 }
 0x3d4   : > { %v4544_v47 = vadd.f32 %v4478_v36, %v4234_v32  ;;  %v4235_v36 = vadd.f32 %v9473_v29, %v3957_v50 }
 0x3d5   : > { %7198 = vmatmul.msk.f32.gmra.mxu1 %vm3619_vm5, %v9833_v38  ;;  %v9837_v59 = vpop.f32.mrf.mxu2  ;;  %7291 = vmatmul.msk.f32.vlgmr.msra.gmra.mxu0 %vm3619_vm5, %v9509_v42 }
 0x3d6   : > { %v9842_v48 = vadd.f32 %v4788_v44, %v4544_v47  ;;  %v5460_v47 = vld [vmem:[#allocation2 + $0x37] sm:$0xff] }
 0x3d7   : > { %7255 = vmatmul.msk.f32.vlgmr.msra.gmra.mxu3 %vm3619_vm5, %v5491_v54 }
 0x3da   : > { %v5021_v58 = vpop.f32.mrf.mxu1  ;;  %7235 = vmatmul.msk.f32.gmra.mxu2 %vm3619_vm5, %v9498_v13  ;;  %v4794_v27 = vpop.f32.mrf.mxu0  ;;  %v3958_v13 = vadd.f32 %v9445_v26, %v9486_v61 }
 0x3db   : > { %v4481_v32 = vpop.f32.mrf.mxu3  ;;  %v5117_v42 = vadd.f32 %v5021_v58, %v9481_v63  ;;  %v5198_v63 = vmul.f32 %v10983_v12, %v9511_v17 }
 0x3dc   : > { %v4545_v49 = vadd.f32 %v4481_v32, %v4235_v36  ;;  %v4236_v54 = vadd.f32 %v9493_v6, %v3958_v13  ;;  %v9868_v36 = vld [vmem:[#allocation2 + $0xa8] sm:$0xff]  ;;  %v11047_v6 = vld [vmem:[#allocation6_spill] sm:$0xff] }
 0x3dd   : > { %7199 = vmatmul.msk.f32.gmra.mxu1 %vm3619_vm5, %v9850_v52  ;;  %v5331_v44 = vpop.f32.mrf.mxu2  ;;  %7292 = vmatmul.msk.f32.gmra.mxu0 %vm3619_vm5, %v9535_v1  ;;  %v5461_v1 = vld [vmem:[#allocation2 + $0x3f] sm:$0xff] }
 0x3de   : > { %v9855_v15 = vadd.f32 %v5331_v44, %v5117_v42  ;;  %v9859_v29 = vadd.f32 %v4791_v10, %v4545_v49  ;;  %v5493_v17 = vmul.f32 %v11047_v6, %v5461_v1  ;;  %v3959_v44 = vadd.f32 %v9445_v26, %v9504_v4 }
 0x3df   : > { %7256 = vmatmul.msk.f32.gmra.mxu3 %vm3619_vm5, %v5460_v47 }
 0x3e0   : > { %v4237_v47 = vadd.f32 %v9515_v20, %v3959_v44 }
 0x3e2   : > { %v5024_v8 = vpop.f32.mrf.mxu1  ;;  %7236 = vmatmul.msk.f32.gmra.mxu2 %vm3619_vm5, %v5198_v63  ;;  %v4797_v58 = vpop.f32.mrf.mxu0 }
 0x3e3   : > { %v4484_v50 = vpop.f32.mrf.mxu3  ;;  %v5118_v10 = vadd.f32 %v5024_v8, %v9496_v9  ;;  %v9886_v8 = vld [vmem:[#allocation2 + $0xb0] sm:$0xff] }
 0x3e4   : > { %v4546_v32 = vadd.f32 %v4484_v50, %v4236_v54  ;;  %v5462_v50 = vld [vmem:[#allocation2 + $0x47] sm:$0xff] }
 0x3e5   : > { %7200 = vmatmul.msk.f32.gmra.mxu1 %vm3619_vm5, %v9868_v36  ;;  %v5334_v61 = vpop.f32.mrf.mxu2  ;;  %7293 = vmatmul.msk.f32.gmra.mxu0 %vm3619_vm5, %v9560_v56 }
 0x3e6   : > { %v9873_v42 = vadd.f32 %v5334_v61, %v5118_v10  ;;  %v9878_v49 = vadd.f32 %v4794_v27, %v4546_v32  ;;  %v11050_v61 = vld [vmem:[#allocation32_spill] sm:$0xff] }
 0x3e7   : > { %7257 = vmatmul.msk.f32.gmra.mxu3 %vm3619_vm5, %v5493_v17 }
 0x3ea   : > { %v5027_v9 = vpop.f32.mrf.mxu1  ;;  %7237 = vmatmul.msk.f32.gmra.mxu2 %vm3619_vm5, %v9546_v28  ;;  %v4800_v63 = vpop.f32.mrf.mxu0  ;;  %v11048_v28 = vld [vmem:[#allocation44_spill] sm:$0xff] }
 0x3eb   : > { %v4487_v13 = vpop.f32.mrf.mxu3  ;;  %v5119_v56 = vadd.f32 %v5027_v9, %v9521_v18  ;;  %v3960_v1 = vadd.f32 %v9445_v26, %v11048_v28  ;;  %v11049_v18 = vld [vmem:[#allocation50_spill] sm:$0xff] }
 0x3ec   : > { %v4547_v54 = vadd.f32 %v4487_v13, %v4237_v47  ;;  %v5200_v10 = vmul.f32 %v11049_v18, %v9562_v5  ;;  %v9904_v9 = vld [vmem:[#allocation2 + $0xb8] sm:$0xff]  ;;  %v11052_v5 = vld [vmem:[#allocation9_spill] sm:$0xff] }
 0x3ed   : > { %7201 = vmatmul.msk.f32.gmra.mxu1 %vm3619_vm5, %v9886_v8  ;;  %v5337_v27 = vpop.f32.mrf.mxu2  ;;  %7294 = vmatmul.msk.f32.gmra.mxu0 %vm3619_vm5, %v9586_v2  ;;  %v4238_v6 = vadd.f32 %v11050_v61, %v3960_v1  ;;  %v5463_v2 = vld [vmem:[#allocation2 + $0x4f] sm:$0xff]  ;;  %v11053_v28 = vld [vmem:[#allocation46_spill] sm:$0xff] }
 0x3ee   : > { %v9891_v4 = vadd.f32 %v5337_v27, %v5119_v56  ;;  %v9895_v20 = vadd.f32 %v4797_v58, %v4547_v54  ;;  %v11051_v58 = vld [vmem:[#allocation33_spill] sm:$0xff]  ;;  %v5495_v27 = vmul.f32 %v11052_v5, %v5463_v2  ;;  %v3961_v1 = vadd.f32 %v9445_v26, %v11053_v28  ;;  %v11057_v28 = vld [vmem:[#allocation38_spill] sm:$0xff] }
 0x3ef   : > { %7258 = vmatmul.msk.f32.gmra.mxu3 %vm3619_vm5, %v5462_v50 }
 0x3f2   : > { %v5030_v32 = vpop.f32.mrf.mxu1  ;;  %7238 = vmatmul.msk.f32.gmra.mxu2 %vm3619_vm5, %v5200_v10  ;;  %v4803_v44 = vpop.f32.mrf.mxu0 }
 0x3f3   : > { %v4490_v17 = vpop.f32.mrf.mxu3  ;;  %v5120_v47 = vadd.f32 %v5030_v32, %v11051_v58  ;;  %v11054_v32 = vld [vmem:[#allocation37_spill] sm:$0xff]  ;;  %v9922_v58 = vld [vmem:[#allocation2 + $0xc0] sm:$0xff] }
 0x3f4   : > { %v4548_v13 = vadd.f32 %v4490_v17, %v4238_v6  ;;  %v4239_v61 = vadd.f32 %v11054_v32, %v3961_v1  ;;  %v3962_v1 = vadd.f32 %v9445_v26, %v11057_v28 }
 0x3f5   : > { %7202 = vmatmul.msk.f32.gmra.mxu1 %vm3619_vm5, %v9904_v9  ;;  %v5340_v56 = vpop.f32.mrf.mxu2  ;;  %7295 = vmatmul.msk.f32.gmra.mxu0 %vm3619_vm5, %v9608_v37  ;;  %v11055_v37 = vld [vmem:[#allocation47_spill] sm:$0xff] }
 0x3f6   : > { %v9909_v54 = vadd.f32 %v5340_v56, %v5120_v47  ;;  %v9914_v50 = vadd.f32 %v4800_v63, %v4548_v13  ;;  %v7323_v63 = vld [vmem:[%s10586_s3 + $0x100] sm:$0xff] }
 0x3f7   : > { %7259 = vmatmul.msk.f32.gmra.mxu3 %vm3619_vm5, %v5495_v27  ;;  %6227 = vmatpush.msra.mxu1 %v7323_v63  ;;  %v5464_v27 = vld [vmem:[#allocation2 + $0x57] sm:$0xff]  ;;  %v9946_v63 = vld [vmem:[#allocation2 + $0xc8] sm:$0xff] }
 0x3fa   : > { %v5033_v10 = vpop.f32.mrf.mxu1  ;;  %7239 = vmatmul.msk.f32.gmra.mxu2 %vm3619_vm5, %v9597_v33  ;;  %v4806_v17 = vpop.f32.mrf.mxu0  ;;  %v6391_v33 = vld [vmem:[%s10588_s5 + $0x10] sm:$0xff] }
 0x3fb   : > { %v4493_v6 = vpop.f32.mrf.mxu3  ;;  %v5121_v47 = vadd.f32 %v5033_v10, %v11055_v37  ;;  %6506 = vmatpush.msra.mxu2 %v6391_v33  ;;  %v11058_v10 = vld [vmem:[#allocation61_spill] sm:$0xff] }
 0x3fc   : > { %v4549_v2 = vadd.f32 %v4493_v6, %v4239_v61  ;;  %v5202_v32 = vmul.f32 %v11058_v10, %v9610_v57  ;;  %v11059_v6 = vld [vmem:[#allocation40_spill] sm:$0xff] }
 0x3fd   : > { %7203 = vmatmul.msk.f32.gmra.mxu1 %vm3619_vm5, %v9922_v58  ;;  %v5343_v13 = vpop.f32.mrf.mxu2  ;;  %7296 = vmatmul.msk.f32.gmra.mxu0 %vm3619_vm5, %v9631_v45  ;;  %v4240_v37 = vadd.f32 %v11059_v6, %v3962_v1  ;;  %v11061_v57 = vld [vmem:[#allocation12_spill] sm:$0xff]  ;;  %v11063_v6 = vld [vmem:[#allocation62_spill] sm:$0xff] }
 0x3fe   : > { %v9930_v56 = vadd.f32 %v5343_v13, %v5121_v47  ;;  %v9937_v5 = vadd.f32 %v4803_v44, %v4549_v2  ;;  %v5465_v44 = vld [vmem:[#allocation2 + $0x5f] sm:$0xff] }
 0x3ff   : > { %7260 = vmatmul.msk.f32.gmra.mxu3 %vm3619_vm5, %v5464_v27  ;;  %v11060_v2 = vld [vmem:[#allocation55_spill] sm:$0xff]  ;;  %v5497_v1 = vmul.f32 %v11061_v57, %v5465_v44 }
 0x400   : > { %11056 = vst [vmem:[#allocation19_spill] sm:$0xff] %v9937_v5  ;;  %v3963_v5 = vadd.f32 %v9445_v26, %v11063_v6  ;;  %v5466_v57 = vld [vmem:[#allocation2 + $0x67] sm:$0xff] }
 0x402   : > { %v5036_v61 = vpop.f32.mrf.mxu1  ;;  %7240 = vmatmul.msk.f32.gmra.mxu2 %vm3619_vm5, %v5202_v32  ;;  %v4809_v47 = vpop.f32.mrf.mxu0 }
 0x403   : > { %v4496_v45 = vpop.f32.mrf.mxu3  ;;  %v5122_v13 = vadd.f32 %v5036_v61, %v11060_v2 }
 0x404   : > { %v4550_v33 = vadd.f32 %v4496_v45, %v4240_v37  ;;  %v11064_v37 = vld [vmem:[#allocation43_spill] sm:$0xff] }
 0x405   : > { %7204 = vmatmul.msk.f32.gmra.mxu1 %vm3619_vm5, %v9946_v63  ;;  %v5346_v27 = vpop.f32.mrf.mxu2  ;;  %7297 = vmatmul.msk.f32.gmra.mxu0 %vm3619_vm5, %v9653_v39  ;;  %v4241_v45 = vadd.f32 %v11064_v37, %v3963_v5  ;;  %v11068_v37 = vld [vmem:[#allocation53_spill] sm:$0xff] }
 0x406   : > { %v9951_v28 = vadd.f32 %v5346_v27, %v5122_v13  ;;  %v9956_v32 = vadd.f32 %v4806_v17, %v4550_v33  ;;  %v9964_v27 = vld [vmem:[#allocation2 + $0xd0] sm:$0xff] }
 0x407   : > { %7261 = vmatmul.msk.f32.gmra.mxu3 %vm3619_vm5, %v5497_v1 }
 0x408   : > { %11062 = vst [vmem:[#allocation21_spill] sm:$0xff] %v9956_v32 }
 0x40a   : > { %v5039_v61 = vpop.f32.mrf.mxu1  ;;  %7241 = vmatmul.msk.f32.gmra.mxu2 %vm3619_vm5, %v9642_v22  ;;  %v4812_v13 = vpop.f32.mrf.mxu0  ;;  %v11066_v22 = vld [vmem:[#allocation57_spill] sm:$0xff] }
 0x40b   : > { %v4499_v2 = vpop.f32.mrf.mxu3  ;;  %v5123_v39 = vadd.f32 %v5039_v61, %v9620_v51  ;;  %v3964_v1 = vadd.f32 %v9445_v26, %v11066_v22  ;;  %v11067_v51 = vld [vmem:[#allocation71_spill] sm:$0xff] }
 0x40c   : > { %v4551_v44 = vadd.f32 %v4499_v2, %v4241_v45  ;;  %v5204_v6 = vmul.f32 %v11067_v51, %v9655_v21  ;;  %v11070_v21 = vld [vmem:[#allocation15_spill] sm:$0xff] }
 0x40d   : > { %7205 = vmatmul.msk.f32.gmra.mxu1 %vm3619_vm5, %v9964_v27  ;;  %v5349_v17 = vpop.f32.mrf.mxu2  ;;  %7298 = vmatmul.msk.f32.gmra.mxu0 %vm3619_vm5, %v9676_v46  ;;  %v4242_v45 = vadd.f32 %v11068_v37, %v3964_v1  ;;  %v5467_v46 = vld [vmem:[#allocation2 + $0x6f] sm:$0xff] }
 0x40e   : > { %v9969_v33 = vadd.f32 %v5349_v17, %v5123_v39  ;;  %v9973_v5 = vadd.f32 %v4809_v47, %v4551_v44  ;;  %v9982_v17 = vld [vmem:[#allocation2 + $0xd8] sm:$0xff]  ;;  %v11069_v47 = vld [vmem:[#allocation48_spill] sm:$0xff]  ;;  %v5499_v1 = vmul.f32 %v11070_v21, %v5467_v46  ;;  %v11072_v37 = vld [vmem:[#allocation65_spill] sm:$0xff] }
 0x40f   : > { %7262 = vmatmul.msk.f32.gmra.mxu3 %vm3619_vm5, %v5466_v57  ;;  %v3965_v32 = vadd.f32 %v9445_v26, %v11072_v37 }
 0x410   : > { %11065 = vst [vmem:[#allocation41_spill] sm:$0xff] %v9973_v5 }
 0x412   : > { %v5042_v61 = vpop.f32.mrf.mxu1  ;;  %7242 = vmatmul.msk.f32.gmra.mxu2 %vm3619_vm5, %v5204_v6  ;;  %v4815_v39 = vpop.f32.mrf.mxu0 }
 0x413   : > { %v4502_v2 = vpop.f32.mrf.mxu3  ;;  %v5124_v44 = vadd.f32 %v5042_v61, %v11069_v47 }
 0x414   : > { %v4552_v5 = vadd.f32 %v4502_v2, %v4242_v45  ;;  %v11073_v45 = vld [vmem:[#allocation58_spill] sm:$0xff] }
 0x415   : > { %7206 = vmatmul.msk.f32.gmra.mxu1 %vm3619_vm5, %v9982_v17  ;;  %v5352_v57 = vpop.f32.mrf.mxu2  ;;  %7299 = vmatmul.msk.f32.gmra.mxu0 %vm3619_vm5, %v9698_v19  ;;  %v4243_v2 = vadd.f32 %v11073_v45, %v3965_v32  ;;  %v3966_v32 = vadd.f32 %v9445_v26, %v9672_v25  ;;  %v11075_v25 = vld [vmem:[#allocation17_spill] sm:$0xff] }
 0x416   : > { %v9987_v22 = vadd.f32 %v5352_v57, %v5124_v44  ;;  %v9992_v6 = vadd.f32 %v4812_v13, %v4552_v5  ;;  %v10002_v57 = vld [vmem:[#allocation2 + $0xe0] sm:$0xff]  ;;  %v5468_v5 = vld [vmem:[#allocation2 + $0x77] sm:$0xff] }
 0x417   : > { %7263 = vmatmul.msk.f32.gmra.mxu3 %vm3619_vm5, %v5499_v1  ;;  %v4244_v21 = vadd.f32 %v9682_v3, %v3966_v32  ;;  %v3967_v3 = vadd.f32 %v9445_v26, %v9693_v34 }
 0x418   : > { %11071 = vst [vmem:[#allocation22_spill] sm:$0xff] %v9992_v6  ;;  %v6069_v6 = vld [vmem:[#allocation2 + $0xe1] sm:$0xff] }
 0x41a   : > { %v9997_v61 = vpop.f32.mrf.mxu1  ;;  %7243 = vmatmul.msk.f32.gmra.mxu2 %vm3619_vm5, %v9687_v62  ;;  %v4818_v44 = vpop.f32.mrf.mxu0  ;;  %v5206_v62 = vmul.f32 %v11016_v43, %v9700_v60 }
 0x41b   : > { %v4505_v47 = vpop.f32.mrf.mxu3 }
 0x41c   : > { %v4553_v19 = vadd.f32 %v4505_v47, %v4243_v2 }
 0x41d   : > { %7207 = vmatmul.msk.f32.gmra.mxu1 %vm3619_vm5, %v10002_v57  ;;  %7300 = vmatmul.msk.f32.gmra.mxu0 %vm3619_vm5, %v9724_v11  ;;  %v10019_v11 = vld [vmem:[#allocation2 + $0xe8] sm:$0xff] }
 0x41e   : > { %v10008_v13 = vadd.f32 %v4815_v39, %v4553_v19  ;;  %v5469_v39 = vld [vmem:[#allocation2 + $0x7f] sm:$0xff]  ;;  %v4245_v19 = vadd.f32 %v9704_v14, %v3967_v3  ;;  %v3968_v14 = vadd.f32 %v9445_v26, %v9717_v41  ;;  %v11079_v41 = vld [vmem:[#allocation20_spill] sm:$0xff] }
 0x41f   : > { %7264 = vmatmul.msk.f32.gmra.mxu3 %vm3619_vm5, %v5468_v5  ;;  %v5501_v60 = vmul.f32 %v11075_v25, %v5469_v39 }
 0x420   : > { %11074 = vst [vmem:[#allocation34_spill] sm:$0xff] %v10008_v13 }
 0x422   : > { %v10015_v46 = vpop.f32.mrf.mxu1  ;;  %7244 = vmatmul.msk.f32.gmra.mxu2 %vm3619_vm5, %v5206_v62  ;;  %v4821_v37 = vpop.f32.mrf.mxu0  ;;  %v10036_v62 = vld [vmem:[#allocation2 + $0xf0] sm:$0xff] }
 0x423   : > { %v4508_v1 = vpop.f32.mrf.mxu3 }
 0x424   : > { %v4554_v45 = vadd.f32 %v4508_v1, %v4244_v21  ;;  %v11078_v1 = vld [vmem:[#allocation70_spill] sm:$0xff] }
 0x425   : > { %7208 = vmatmul.msk.f32.gmra.mxu1 %vm3619_vm5, %v10019_v11  ;;  %7301 = vmatmul.msk.f32.gmra.mxu0 %vm3619_vm5, %v9755_v40  ;;  %v4246_v39 = vadd.f32 %v11078_v1, %v3968_v14 }
 0x426   : > { %v10026_v2 = vadd.f32 %v4818_v44, %v4554_v45  ;;  %v5470_v44 = vld [vmem:[#allocation2 + $0x87] sm:$0xff] }
 0x427   : > { %7265 = vmatmul.msk.f32.gmra.mxu3 %vm3619_vm5, %v5501_v60 }
 0x428   : > { %11076 = vst [vmem:[#allocation24_spill] sm:$0xff] %v10026_v2 }
 0x42a   : > { %v10031_v47 = vpop.f32.mrf.mxu1  ;;  %7245 = vmatmul.msk.f32.gmra.mxu2 %vm3619_vm5, %v9744_v53  ;;  %v4824_v32 = vpop.f32.mrf.mxu0  ;;  %v5208_v53 = vmul.f32 %v11024_v7, %v9757_v24 }
 0x42b   : > { %v4511_v5 = vpop.f32.mrf.mxu3 }
 0x42c   : > { %v4555_v40 = vadd.f32 %v4511_v5, %v4245_v19  ;;  %v11081_v19 = vld [vmem:[#allocation54_spill] sm:$0xff] }
 0x42d   : > { %7209 = vmatmul.msk.f32.gmra.mxu1 %vm3619_vm5, %v10036_v62  ;;  %7302 = vmatmul.msk.f32.gmra.mxu0 %vm3619_vm5, %v9786_v31  ;;  %v10053_v31 = vld [vmem:[#allocation2 + $0xf8] sm:$0xff]  ;;  %v3969_v5 = vadd.f32 %v9445_v26, %v11081_v19  ;;  %v11085_v19 = vld [vmem:[#allocation39_spill] sm:$0xff] }
 0x42e   : > { %v10042_v34 = vadd.f32 %v4821_v37, %v4555_v40  ;;  %v5471_v37 = vld [vmem:[#allocation2 + $0x8f] sm:$0xff] }
 0x42f   : > { %7266 = vmatmul.msk.f32.gmra.mxu3 %vm3619_vm5, %v5470_v44  ;;  %v5503_v24 = vmul.f32 %v11079_v41, %v5471_v37  ;;  %v11082_v44 = vld [vmem:[#allocation67_spill] sm:$0xff]  ;;  %v5472_v37 = vld [vmem:[#allocation2 + $0x97] sm:$0xff] }
 0x430   : > { %11077 = vst [vmem:[#allocation52_spill] sm:$0xff] %v10042_v34  ;;  %v4247_v14 = vadd.f32 %v11082_v44, %v3969_v5  ;;  %v5483_v34 = vld [vmem:[#allocation2 + $0xef] sm:$0xff] }
 0x432   : > { %v10049_v21 = vpop.f32.mrf.mxu1  ;;  %7246 = vmatmul.msk.f32.gmra.mxu2 %vm3619_vm5, %v5208_v53  ;;  %v4827_v25 = vpop.f32.mrf.mxu0 }
 0x433   : > { %v4514_v45 = vpop.f32.mrf.mxu3 }
 0x434   : > { %v4556_v60 = vadd.f32 %v4514_v45, %v4246_v39  ;;  %v10070_v39 = vld [vmem:[#allocation2 + $0x100] sm:$0xff] }
 0x435   : > { %7210 = vmatmul.msk.f32.gmra.mxu1 %vm3619_vm5, %v10053_v31  ;;  %7303 = vmatmul.msk.f32.gmra.mxu0 %vm3619_vm5, %v9808_v30 }
 0x436   : > { %v10060_v3 = vadd.f32 %v4824_v32, %v4556_v60  ;;  %v6390_v32 = vld [vmem:[%s10588_s5 + $0x8] sm:$0xff]  ;;  %v11084_v60 = vld [vmem:[#allocation63_spill] sm:$0xff] }
 0x437   : > { %7267 = vmatmul.msk.f32.gmra.mxu3 %vm3619_vm5, %v5503_v24  ;;  %6507 = vmatpush.msra.mxu2 %v6390_v32  ;;  %v5210_v41 = vmul.f32 %v11084_v60, %v9810_v16  ;;  %v11088_v32 = vld [vmem:[#allocation68_spill] sm:$0xff] }
 0x438   : > { %11080 = vst [vmem:[#allocation25_spill] sm:$0xff] %v10060_v3  ;;  %v6053_v3 = vld [vmem:[#allocation2 + $0x61] sm:$0xff] }
 0x43a   : > { %v10065_v40 = vpop.f32.mrf.mxu1  ;;  %7247 = vmatmul.msk.f32.gmra.mxu2 %vm3619_vm5, %v9797_v55  ;;  %v4830_v1 = vpop.f32.mrf.mxu0  ;;  %v3970_v55 = vadd.f32 %v9445_v26, %v9780_v23  ;;  %v11086_v23 = vld [vmem:[#allocation27_spill] sm:$0xff] }
 0x43b   : > { %v4517_v53 = vpop.f32.mrf.mxu3 }
 0x43c   : > { %v4557_v30 = vadd.f32 %v4517_v53, %v4247_v14  ;;  %v5473_v14 = vld [vmem:[#allocation2 + $0x9f] sm:$0xff] }
 0x43d   : > { %7211 = vmatmul.msk.f32.gmra.mxu1 %vm3619_vm5, %v10070_v39  ;;  %7304 = vmatmul.msk.f32.gmra.mxu0 %vm3619_vm5, %v9833_v38  ;;  %v4248_v38 = vadd.f32 %v11085_v19, %v3970_v55  ;;  %v5505_v16 = vmul.f32 %v11086_v23, %v5473_v14  ;;  %v11089_v19 = vld [vmem:[#allocation73_spill] sm:$0xff]  ;;  %v7410_v23 = vld [vmem:[%s10587_s4] ss:$0 sm:$0xff] }
 0x43e   : > { %v10079_v45 = vadd.f32 %v4827_v25, %v4557_v30  ;;  %v10090_v25 = vld [vmem:[#allocation2 + $0x108] sm:$0xff] }
 0x43f   : > { %7268 = vmatmul.msk.f32.gmra.mxu3 %vm3619_vm5, %v5472_v37  ;;  %v3971_v37 = vadd.f32 %v9445_v26, %v11088_v32  ;;  %v10113_v26 = vld [vmem:[#allocation2 + $0x119] sm:$0xff] }
 0x440   : > { %11083 = vst [vmem:[#allocation36_spill] sm:$0xff] %v10079_v45  ;;  %v10109_v45 = vld [vmem:[#allocation2 + $0x110] sm:$0xff]  ;;  %v5212_v32 = vmul.f32 %v11044_v35, %v10113_v26 }
 0x442   : > { %v10086_v24 = vpop.f32.mrf.mxu1  ;;  %7248 = vmatmul.msk.f32.gmra.mxu2 %vm3619_vm5, %v5210_v41  ;;  %v4833_v44 = vpop.f32.mrf.mxu0  ;;  %v10104_v41 = vld [vmem:[#allocation2 + $0x111] sm:$0xff] }
 0x443   : > { %v4520_v5 = vpop.f32.mrf.mxu3 }
 0x444   : > { %v4558_v53 = vadd.f32 %v4520_v5, %v4248_v38  ;;  %v4249_v38 = vadd.f32 %v11089_v19, %v3971_v37 }
 0x445   : > { %7212 = vmatmul.msk.f32.gmra.mxu1 %vm3619_vm5, %v10090_v25  ;;  %7305 = vmatmul.msk.f32.gmra.mxu0 %vm3619_vm5, %v9850_v52 }
 0x446   : > { %v10097_v30 = vadd.f32 %v4830_v1, %v4558_v53  ;;  %v5474_v53 = vld [vmem:[#allocation2 + $0xa7] sm:$0xff] }
 0x447   : > { %7269 = vmatmul.msk.f32.gmra.mxu3 %vm3619_vm5, %v5505_v16  ;;  %v3972_v16 = vadd.f32 %v7410_v23, %v9829_v0  ;;  %v11091_v0 = vld [vmem:[#allocation35_spill] sm:$0xff] }
 0x448   : > { %11087 = vst [vmem:[#allocation29_spill] sm:$0xff] %v10097_v30 }
 0x449   : > { %v4250_v19 = vadd.f32 %v9837_v59, %v3972_v16 }
 0x44a   : > { %v10102_v55 = vpop.f32.mrf.mxu1  ;;  %7249 = vmatmul.msk.f32.gmra.mxu2 %vm3619_vm5, %v10104_v41  ;;  %v4836_v52 = vpop.f32.mrf.mxu0 }
 0x44b   : > { %v4523_v5 = vpop.f32.mrf.mxu3 }
 0x44c   : > { %v4559_v1 = vadd.f32 %v4523_v5, %v4249_v38  ;;  %v10130_v38 = vld [vmem:[#allocation2 + $0x118] sm:$0xff]  ;;  %v5475_v5 = vld [vmem:[#allocation2 + $0xaf] sm:$0xff] }
 0x44d   : > { %7213 = vmatmul.msk.f32.gmra.mxu1 %vm3619_vm5, %v10109_v45  ;;  %7306 = vmatmul.msk.f32.gmra.mxu0 %vm3619_vm5, %v9868_v36 }
 0x44e   : > { %v10117_v14 = vadd.f32 %v4833_v44, %v4559_v1 }
 0x44f   : > { %7270 = vmatmul.msk.f32.gmra.mxu3 %vm3619_vm5, %v5474_v53  ;;  %v5507_v53 = vmul.f32 %v11091_v0, %v5475_v5  ;;  %v11093_v5 = vld [vmem:[#allocation5_spill] sm:$0xff] }
 0x450   : > { %11090 = vst [vmem:[#allocation30_spill] sm:$0xff] %v10117_v14  ;;  %v6047_v14 = vld [vmem:[#allocation2 + $0x31] sm:$0xff] }
 0x452   : > { %v10126_v37 = vpop.f32.mrf.mxu1  ;;  %7250 = vmatmul.msk.f32.gmra.mxu2 %vm3619_vm5, %v5212_v32  ;;  %v5919_v44 = vpop.f32.mrf.mxu0 }
 0x453   : > { %v4526_v36 = vpop.f32.mrf.mxu3 }
 0x454   : > { %v4560_v1 = vadd.f32 %v4526_v36, %v4250_v19  ;;  %v6048_v36 = vld [vmem:[#allocation2 + $0x39] sm:$0xff] }
 0x455   : > { %7214 = vmatmul.msk.f32.gmra.mxu1 %vm3619_vm5, %v10130_v38  ;;  %7307 = vmatmul.msk.f32.gmra.mxu0 %vm3619_vm5, %v9886_v8  ;;  %v5476_v8 = vld [vmem:[#allocation2 + $0xb7] sm:$0xff] }
 0x456   : > { %v10137_v23 = vadd.f32 %v4836_v52, %v4560_v1  ;;  %v6080_v1 = vmul.f32 %v11093_v5, %v6048_v36 }
 0x457   : > { %7271 = vmatmul.msk.f32.gmra.mxu3 %vm3619_vm5, %v5507_v53 }
 0x458   : > { %11092 = vst [vmem:[#allocation72_spill] sm:$0xff] %v10137_v23  ;;  %v5477_v23 = vld [vmem:[#allocation2 + $0xbf] sm:$0xff] }
 0x45a   : > { %v10140_v59 = vpop.f32.mrf.mxu1  ;;  %v5922_v32 = vpop.f32.mrf.mxu0 }
 0x45b   : > { %v5641_v16 = vpop.f32.mrf.mxu3 }
 0x45c   : > { %v5737_v30 = vadd.f32 %v5641_v16, %v9855_v15 }
 0x45d   : > { %7327 = vmatmul.msk.f32.vlgmr.msra.gmra.mxu1 %vm3619_vm5, %v6047_v14  ;;  %7308 = vmatmul.msk.f32.gmra.mxu0 %vm3619_vm5, %v9904_v9  ;;  %v11094_v9 = vld [vmem:[#allocation45_spill] sm:$0xff] }
 0x45e   : > { %v10146_v19 = vadd.f32 %v5919_v44, %v5737_v30  ;;  %v5509_v30 = vmul.f32 %v11094_v9, %v5477_v23  ;;  %v6050_v23 = vld [vmem:[#allocation2 + $0x49] sm:$0xff] }
 0x45f   : > { %7272 = vmatmul.msk.f32.gmra.mxu3 %vm3619_vm5, %v5476_v8  ;;  %v6049_v8 = vld [vmem:[#allocation2 + $0x41] sm:$0xff] }
 0x462   : > { %v10149_v52 = vpop.f32.mrf.mxu1  ;;  %v5925_v53 = vpop.f32.mrf.mxu0 }
 0x463   : > { %v5644_v0 = vpop.f32.mrf.mxu3 }
 0x464   : > { %v5738_v15 = vadd.f32 %v5644_v0, %v9873_v42 }
 0x465   : > { %7328 = vmatmul.msk.f32.gmra.mxu1 %vm3619_vm5, %v6080_v1  ;;  %7309 = vmatmul.msk.f32.gmra.mxu0 %vm3619_vm5, %v9922_v58  ;;  %v5478_v58 = vld [vmem:[#allocation2 + $0xc7] sm:$0xff] }
 0x466   : > { %v10157_v14 = vadd.f32 %v5922_v32, %v5738_v15  ;;  %v11095_v1 = vld [vmem:[#allocation8_spill] sm:$0xff]  ;;  %v10172_v15 = vpop.f32.mrf.mxu2 }
 0x467   : > { %7273 = vmatmul.msk.f32.gmra.mxu3 %vm3619_vm5, %v5509_v30  ;;  %v6082_v0 = vmul.f32 %v11095_v1, %v6050_v23  ;;  %v6051_v23 = vld [vmem:[#allocation2 + $0x51] sm:$0xff] }
 0x46a   : > { %v10160_v44 = vpop.f32.mrf.mxu1  ;;  %v5928_v42 = vpop.f32.mrf.mxu0 }
 0x46b   : > { %v5647_v16 = vpop.f32.mrf.mxu3 }
 0x46c   : > { %v5739_v36 = vadd.f32 %v5647_v16, %v9891_v4  ;;  %v5479_v4 = vld [vmem:[#allocation2 + $0xcf] sm:$0xff] }
 0x46d   : > { %7329 = vmatmul.msk.f32.gmra.mxu1 %vm3619_vm5, %v6049_v8  ;;  %7310 = vmatmul.msk.f32.gmra.mxu0 %vm3619_vm5, %v9946_v63  ;;  %v11096_v63 = vld [vmem:[#allocation56_spill] sm:$0xff] }
 0x46e   : > { %v10166_v5 = vadd.f32 %v5925_v53, %v5739_v36  ;;  %v5511_v53 = vmul.f32 %v11096_v63, %v5479_v4 }
 0x46f   : > { %7274 = vmatmul.msk.f32.gmra.mxu3 %vm3619_vm5, %v5478_v58 }
 0x472   : > { %v10169_v32 = vpop.f32.mrf.mxu1  ;;  %v5931_v8 = vpop.f32.mrf.mxu0 }
 0x473   : > { %v5650_v9 = vpop.f32.mrf.mxu3 }
 0x474   : > { %v5740_v30 = vadd.f32 %v5650_v9, %v9909_v54  ;;  %v10186_v54 = vpop.f32.mrf.mxu2  ;;  %v6052_v9 = vld [vmem:[#allocation2 + $0x59] sm:$0xff] }
 0x475   : > { %7330 = vmatmul.msk.f32.gmra.mxu1 %vm3619_vm5, %v6082_v0  ;;  %7311 = vmatmul.msk.f32.gmra.mxu0 %vm3619_vm5, %v9964_v27  ;;  %v6389_v27 = vld [vmem:[%s10588_s5] sm:$0xff]  ;;  %v5480_v0 = vld [vmem:[#allocation2 + $0xd7] sm:$0xff] }
 0x476   : > { %v10179_v16 = vadd.f32 %v5928_v42, %v5740_v30  ;;  %6508 = vmatpush.msra.mxu2 %v6389_v27  ;;  %v11097_v30 = vld [vmem:[#allocation11_spill] sm:$0xff] }
 0x477   : > { %7275 = vmatmul.msk.f32.gmra.mxu3 %vm3619_vm5, %v5511_v53  ;;  %v6084_v63 = vmul.f32 %v11097_v30, %v6052_v9 }
 0x47a   : > { %v10182_v36 = vpop.f32.mrf.mxu1  ;;  %v5934_v4 = vpop.f32.mrf.mxu0 }
 0x47b   : > { %v5653_v58 = vpop.f32.mrf.mxu3 }
 0x47c   : > { %v5741_v1 = vadd.f32 %v5653_v58, %v9930_v56  ;;  %v5481_v58 = vld [vmem:[#allocation2 + $0xdf] sm:$0xff]  ;;  %v10206_v27 = vpop.f32.mrf.mxu2 }
 0x47d   : > { %7331 = vmatmul.msk.f32.gmra.mxu1 %vm3619_vm5, %v6051_v23  ;;  %7312 = vmatmul.msk.f32.gmra.mxu0 %vm3619_vm5, %v9982_v17 }
 0x47e   : > { %v10193_v42 = vadd.f32 %v5931_v8, %v5741_v1  ;;  %v11098_v8 = vld [vmem:[#allocation66_spill] sm:$0xff] }
 0x47f   : > { %7276 = vmatmul.msk.f32.gmra.mxu3 %vm3619_vm5, %v5480_v0  ;;  %v5513_v23 = vmul.f32 %v11098_v8, %v5481_v58 }
 0x482   : > { %v10196_v56 = vpop.f32.mrf.mxu1  ;;  %v5937_v9 = vpop.f32.mrf.mxu0 }
 0x483   : > { %v5656_v53 = vpop.f32.mrf.mxu3 }
 0x484   : > { %v5742_v17 = vadd.f32 %v5656_v53, %v9951_v28  ;;  %v10218_v53 = vpop.f32.mrf.mxu2 }
 0x485   : > { %7332 = vmatmul.msk.f32.gmra.mxu1 %vm3619_vm5, %v6084_v63  ;;  %7313 = vmatmul.msk.f32.gmra.mxu0 %vm3619_vm5, %v10002_v57  ;;  %v6054_v63 = vld [vmem:[#allocation2 + $0x69] sm:$0xff] }
 0x486   : > { %v10204_v1 = vadd.f32 %v5934_v4, %v5742_v17  ;;  %v5482_v4 = vld [vmem:[#allocation2 + $0xe7] sm:$0xff]  ;;  %v11101_v17 = vld [vmem:[#allocation14_spill] sm:$0xff] }
 0x487   : > { %7277 = vmatmul.msk.f32.gmra.mxu3 %vm3619_vm5, %v5513_v23  ;;  %v6086_v8 = vmul.f32 %v11101_v17, %v6054_v63  ;;  %v6055_v63 = vld [vmem:[#allocation2 + $0x71] sm:$0xff]  ;;  %v6056_v17 = vld [vmem:[#allocation2 + $0x79] sm:$0xff] }
 0x48a   : > { %v10209_v0 = vpop.f32.mrf.mxu1 }
 0x48b   : > { %11099 = vst [vmem:[#allocation3_spill] sm:$0xff] %v10209_v0  ;;  %v5659_v30 = vpop.f32.mrf.mxu3 }
 0x48c   : > { %v5743_v28 = vadd.f32 %v5659_v30, %v9969_v33 }
 0x48d   : > { %7333 = vmatmul.msk.f32.gmra.mxu1 %vm3619_vm5, %v6053_v3  ;;  %7314 = vmatmul.msk.f32.gmra.mxu0 %vm3619_vm5, %v10019_v11  ;;  %v5940_v3 = vpop.f32.mrf.mxu0  ;;  %v11102_v11 = vld [vmem:[#allocation4_spill] sm:$0xff] }
 0x48e   : > { %v10215_v57 = vadd.f32 %v5937_v9, %v5743_v28  ;;  %v5515_v9 = vmul.f32 %v11102_v11, %v5483_v34  ;;  %v11105_v34 = vld [vmem:[#allocation16_spill] sm:$0xff] }
 0x48f   : > { %7278 = vmatmul.msk.f32.gmra.mxu3 %vm3619_vm5, %v5482_v4  ;;  %v10233_v4 = vpop.f32.mrf.mxu2 }
 0x492   : > { %v10220_v58 = vpop.f32.mrf.mxu1 }
 0x493   : > { %11100 = vst [vmem:[#allocation6_spill] sm:$0xff] %v10220_v58  ;;  %v5662_v23 = vpop.f32.mrf.mxu3 }
 0x494   : > { %v5744_v33 = vadd.f32 %v5662_v23, %v9987_v22  ;;  %v5484_v22 = vld [vmem:[#allocation2 + $0xf7] sm:$0xff]  ;;  %v5485_v23 = vld [vmem:[#allocation2 + $0xff] sm:$0xff] }
 0x495   : > { %7334 = vmatmul.msk.f32.gmra.mxu1 %vm3619_vm5, %v6086_v8  ;;  %7315 = vmatmul.msk.f32.gmra.mxu0 %vm3619_vm5, %v10036_v62  ;;  %v6088_v8 = vmul.f32 %v11105_v34, %v6056_v17  ;;  %v6058_v17 = vld [vmem:[#allocation2 + $0x89] sm:$0xff] }
 0x496   : > { %v10228_v30 = vadd.f32 %v5940_v3, %v5744_v33  ;;  %v11106_v3 = vld [vmem:[#allocation7_spill] sm:$0xff] }
 0x497   : > { %7279 = vmatmul.msk.f32.gmra.mxu3 %vm3619_vm5, %v5515_v9  ;;  %v10243_v33 = vpop.f32.mrf.mxu2  ;;  %v5517_v11 = vmul.f32 %v11106_v3, %v5485_v23  ;;  %v6057_v9 = vld [vmem:[#allocation2 + $0x81] sm:$0xff]  ;;  %v11111_v3 = vld [vmem:[#allocation10_spill] sm:$0xff] }
 0x498   : > { %v11110_v23 = vld [vmem:[#allocation60_spill] sm:$0xff] }
 0x49a   : > { %v10231_v28 = vpop.f32.mrf.mxu1 }
 0x49b   : > { %11103 = vst [vmem:[#allocation44_spill] sm:$0xff] %v10231_v28 }
 0x49d   : > { %7335 = vmatmul.msk.f32.gmra.mxu1 %vm3619_vm5, %v6055_v63  ;;  %7316 = vmatmul.msk.f32.gmra.mxu0 %vm3619_vm5, %v10053_v31 }
 0x49f   : > { %7280 = vmatmul.msk.f32.gmra.mxu3 %vm3619_vm5, %v5484_v22  ;;  %v10254_v63 = vpop.f32.mrf.mxu2  ;;  %v5486_v22 = vld [vmem:[#allocation2 + $0x107] sm:$0xff] }
 0x4a2   : > { %v10239_v62 = vpop.f32.mrf.mxu1 }
 0x4a3   : > { %11104 = vst [vmem:[#allocation50_spill] sm:$0xff] %v10239_v62 }
 0x4a5   : > { %7336 = vmatmul.msk.f32.gmra.mxu1 %vm3619_vm5, %v6088_v8  ;;  %7317 = vmatmul.msk.f32.gmra.mxu0 %vm3619_vm5, %v10070_v39  ;;  %v11109_v39 = vld [vmem:[#allocation18_spill] sm:$0xff] }
 0x4a6   : > { %v6090_v8 = vmul.f32 %v11109_v39, %v6058_v17  ;;  %v11113_v17 = vld [vmem:[#allocation28_spill] sm:$0xff]  ;;  %v11115_v39 = vld [vmem:[#allocation23_spill] sm:$0xff] }
 0x4a7   : > { %7281 = vmatmul.msk.f32.gmra.mxu3 %vm3619_vm5, %v5517_v11  ;;  %v5519_v11 = vmul.f32 %v11111_v3, %v11110_v23  ;;  %v5489_v3 = vld [vmem:[#allocation2 + $0x11f] sm:$0xff] }
 0x4aa   : > { %v10249_v31 = vpop.f32.mrf.mxu1 }
 0x4ab   : > { %11107 = vst [vmem:[#allocation32_spill] sm:$0xff] %v10249_v31  ;;  %v6059_v31 = vld [vmem:[#allocation2 + $0x91] sm:$0xff] }
 0x4ad   : > { %7337 = vmatmul.msk.f32.gmra.mxu1 %vm3619_vm5, %v6057_v9  ;;  %7318 = vmatmul.msk.f32.gmra.mxu0 %vm3619_vm5, %v10090_v25  ;;  %v10266_v25 = vpop.f32.mrf.mxu2 }
 0x4af   : > { %7282 = vmatmul.msk.f32.gmra.mxu3 %vm3619_vm5, %v5486_v22  ;;  %v6060_v22 = vld [vmem:[#allocation2 + $0x99] sm:$0xff] }
 0x4b2   : > { %v10257_v34 = vpop.f32.mrf.mxu1 }
 0x4b3   : > { %11108 = vst [vmem:[#allocation33_spill] sm:$0xff] %v10257_v34 }
 0x4b5   : > { %7338 = vmatmul.msk.f32.gmra.mxu1 %vm3619_vm5, %v6090_v8  ;;  %7319 = vmatmul.msk.f32.gmra.mxu0 %vm3619_vm5, %v10109_v45  ;;  %v6092_v8 = vmul.f32 %v11115_v39, %v6060_v22  ;;  %v10278_v23 = vpop.f32.mrf.mxu2  ;;  %v5490_v22 = vld [vmem:[#allocation2 + $0x127] sm:$0xff] }
 0x4b6   : > { %v6062_v39 = vld [vmem:[#allocation2 + $0xa9] sm:$0xff] }
 0x4b7   : > { %7283 = vmatmul.msk.f32.gmra.mxu3 %vm3619_vm5, %v5519_v11  ;;  %v5799_v11 = vld [vmem:[#allocation2 + $0x120] sm:$0xff] }
 0x4ba   : > { %v10268_v9 = vpop.f32.mrf.mxu1 }
 0x4bb   : > { %11112 = vst [vmem:[#allocation9_spill] sm:$0xff] %v10268_v9  ;;  %v11116_v9 = vld [vmem:[#allocation13_spill] sm:$0xff] }
 0x4bc   : > { %v5521_v34 = vmul.f32 %v11116_v9, %v5489_v3  ;;  %v11119_v9 = vld [vmem:[#allocation31_spill] sm:$0xff] }
 0x4bd   : > { %7339 = vmatmul.msk.f32.gmra.mxu1 %vm3619_vm5, %v6059_v31  ;;  %7320 = vmatmul.msk.f32.gmra.mxu0 %vm3619_vm5, %v10130_v38  ;;  %v6061_v31 = vld [vmem:[#allocation2 + $0xa1] sm:$0xff]  ;;  %v6094_v3 = vmul.f32 %v11119_v9, %v6062_v39 }
 0x4bf   : > { %7284 = vmatmul.msk.f32.gmra.mxu3 %vm3619_vm5, %v11113_v17  ;;  %v5800_v17 = vld [vmem:[#allocation2 + $0x128] sm:$0xff] }
 0x4c2   : > { %v10275_v45 = vpop.f32.mrf.mxu1 }
 0x4c3   : > { %11114 = vst [vmem:[#allocation46_spill] sm:$0xff] %v10275_v45  ;;  %v10287_v45 = vpop.f32.mrf.mxu2 }
 0x4c5   : > { %7340 = vmatmul.msk.f32.gmra.mxu1 %vm3619_vm5, %v6092_v8  ;;  %7321 = vmatmul.msk.f32.gmra.mxu0 %vm3619_vm5, %v5799_v11 }
 0x4c7   : > { %7285 = vmatmul.msk.f32.gmra.mxu3 %vm3619_vm5, %v5521_v34 }
 0x4ca   : > { %v10284_v38 = vpop.f32.mrf.mxu1 }
 0x4cb   : > { %11117 = vst [vmem:[#allocation37_spill] sm:$0xff] %v10284_v38  ;;  %v10295_v34 = vpop.f32.mrf.mxu2 }
 0x4cd   : > { %7341 = vmatmul.msk.f32.gmra.mxu1 %vm3619_vm5, %v6061_v31  ;;  %7322 = vmatmul.msk.f32.gmra.mxu0 %vm3619_vm5, %v5800_v17  ;;  %v6063_v31 = vld [vmem:[#allocation2 + $0xb1] sm:$0xff]  ;;  %v6064_v17 = vld [vmem:[#allocation2 + $0xb9] sm:$0xff] }
 0x4ce   : > { %v6096_v9 = vmul.f32 %v10983_v12, %v6064_v17 }
 0x4cf   : > { %7286 = vmatmul.msk.f32.gmra.mxu3 %vm3619_vm5, %v5490_v22 }
 0x4d2   : > { %v10291_v8 = vpop.f32.mrf.mxu1 }
 0x4d3   : > { %11118 = vst [vmem:[#allocation47_spill] sm:$0xff] %v10291_v8  ;;  %v10300_v2 = vpop.f32.mrf.mxu2  ;;  %v5665_v8 = vpop.f32.mrf.mxu3 }
 0x4d5   : > { %7342 = vmatmul.msk.f32.gmra.mxu1 %vm3619_vm5, %v6094_v3 }
 0x4da   : > { %v6229_v11 = vpop.f32.mrf.mxu1 }
 0x4db   : > { %v6325_v38 = vadd.f32 %v6229_v11, %v10146_v19  ;;  %v5943_v19 = vpop.f32.mrf.mxu0  ;;  %v5668_v28 = vpop.f32.mrf.mxu3 }
 0x4dd   : > { %v6357_v62 = vmax.f32 %v6325_v38, 0.0  ;;  %7343 = vmatmul.msk.f32.gmra.mxu1 %vm3619_vm5, %v6063_v31  ;;  %v10307_v31 = vpop.f32.mrf.mxu2 }
 0x4df   : > { %7359 = vmatmul.msk.f32.vlgmr.msra.gmra.mxu2 %vm3619_vm5, %v6357_v62  ;;  %v6065_v62 = vld [vmem:[#allocation2 + $0xc1] sm:$0xff] }
 0x4e2   : > { %v6232_v22 = vpop.f32.mrf.mxu1 }
 0x4e3   : > { %v6326_v39 = vadd.f32 %v6232_v22, %v10157_v14  ;;  %v6066_v14 = vld [vmem:[#allocation2 + $0xc9] sm:$0xff]  ;;  %v5946_v17 = vpop.f32.mrf.mxu0 }
 0x4e5   : > { %v6358_v3 = vmax.f32 %v6326_v39, 0.0  ;;  %7344 = vmatmul.msk.f32.gmra.mxu1 %vm3619_vm5, %v6096_v9  ;;  %v6098_v39 = vmul.f32 %v11049_v18, %v6066_v14 }
 0x4e7   : > { %7360 = vmatmul.msk.f32.gmra.mxu2 %vm3619_vm5, %v6358_v3  ;;  %v5671_v3 = vpop.f32.mrf.mxu3 }
 0x4ea   : > { %v6235_v38 = vpop.f32.mrf.mxu1 }
 0x4eb   : > { %v6327_v11 = vadd.f32 %v6235_v38, %v10166_v5  ;;  %v10314_v5 = vpop.f32.mrf.mxu2 }
 0x4ed   : > { %v6359_v13 = vmax.f32 %v6327_v11, 0.0  ;;  %7345 = vmatmul.msk.f32.gmra.mxu1 %vm3619_vm5, %v6065_v62  ;;  %v6067_v62 = vld [vmem:[#allocation2 + $0xd1] sm:$0xff] }
 0x4ef   : > { %7361 = vmatmul.msk.f32.gmra.mxu2 %vm3619_vm5, %v6359_v13  ;;  %v10318_v13 = vpop.f32.mrf.mxu0  ;;  %v5674_v14 = vpop.f32.mrf.mxu3 }
 0x4f2   : > { %v6238_v12 = vpop.f32.mrf.mxu1 }
 0x4f3   : > { %v6328_v22 = vadd.f32 %v6238_v12, %v10179_v16  ;;  %v10322_v18 = vpop.f32.mrf.mxu2  ;;  %v6068_v16 = vld [vmem:[#allocation2 + $0xd9] sm:$0xff] }
 0x4f4   : > { %11120 = vst [vmem:[#allocation38_spill] sm:$0xff] %v10322_v18 }
 0x4f5   : > { %v6360_v9 = vmax.f32 %v6328_v22, 0.0  ;;  %7346 = vmatmul.msk.f32.gmra.mxu1 %vm3619_vm5, %v6098_v39  ;;  %v6100_v39 = vmul.f32 %v11058_v10, %v6068_v16  ;;  %v6070_v10 = vld [vmem:[#allocation2 + $0xe9] sm:$0xff] }
 0x4f7   : > { %7362 = vmatmul.msk.f32.gmra.mxu2 %vm3619_vm5, %v6360_v9 }
 0x4fa   : > { %v6241_v38 = vpop.f32.mrf.mxu1 }
 0x4fb   : > { %v6329_v11 = vadd.f32 %v6241_v38, %v10193_v42  ;;  %v10327_v42 = vpop.f32.mrf.mxu0  ;;  %v10330_v38 = vpop.f32.mrf.mxu2 }
 0x4fc   : > { %11121 = vst [vmem:[#allocation61_spill] sm:$0xff] %v10330_v38  ;;  %v6102_v38 = vmul.f32 %v11067_v51, %v6070_v10 }
 0x4fd   : > { %v6361_v58 = vmax.f32 %v6329_v11, 0.0  ;;  %7347 = vmatmul.msk.f32.gmra.mxu1 %vm3619_vm5, %v6067_v62 }
 0x4ff   : > { %7363 = vmatmul.msk.f32.gmra.mxu2 %vm3619_vm5, %v6361_v58  ;;  %v10332_v58 = vpop.f32.mrf.mxu3 }
 0x502   : > { %v6244_v12 = vpop.f32.mrf.mxu1 }
 0x503   : > { %v6330_v22 = vadd.f32 %v6244_v12, %v10204_v1  ;;  %v11122_v1 = vld [vmem:[#allocation49_spill] sm:$0xff]  ;;  %v10339_v12 = vpop.f32.mrf.mxu0 }
 0x504   : > { %v5125_v16 = vadd.f32 %v9997_v61, %v11122_v1 }
 0x505   : > { %v6362_v9 = vmax.f32 %v6330_v22, 0.0  ;;  %7348 = vmatmul.msk.f32.gmra.mxu1 %vm3619_vm5, %v6100_v39 }
 0x506   : > { %v5435_v39 = vadd.f32 %v10172_v15, %v5125_v16 }
 0x507   : > { %7364 = vmatmul.msk.f32.gmra.mxu2 %vm3619_vm5, %v6362_v9 }
 0x50a   : > { %v6247_v11 = vpop.f32.mrf.mxu1 }
 0x50b   : > { %v6331_v62 = vadd.f32 %v6247_v11, %v10215_v57  ;;  %v10344_v57 = vpop.f32.mrf.mxu2  ;;  %v5745_v11 = vadd.f32 %v5665_v8, %v5435_v39  ;;  %v5958_v16 = vpop.f32.mrf.mxu0 }
 0x50d   : > { %v6363_v18 = vmax.f32 %v6331_v62, 0.0  ;;  %7349 = vmatmul.msk.f32.gmra.mxu1 %vm3619_vm5, %v6069_v6  ;;  %v5680_v62 = vpop.f32.mrf.mxu3  ;;  %v6023_v1 = vadd.f32 %v5943_v19, %v5745_v11 }
 0x50f   : > { %7365 = vmatmul.msk.f32.gmra.mxu2 %vm3619_vm5, %v6363_v18  ;;  %v11123_v18 = vld [vmem:[#allocation69_spill] sm:$0xff] }
 0x510   : > { %v5126_v61 = vadd.f32 %v10015_v46, %v11123_v18 }
 0x512   : > { %v6250_v22 = vpop.f32.mrf.mxu1  ;;  %v5436_v15 = vadd.f32 %v10186_v54, %v5126_v61 }
 0x513   : > { %v6332_v9 = vadd.f32 %v6250_v22, %v10228_v30  ;;  %v6071_v22 = vld [vmem:[#allocation2 + $0xf1] sm:$0xff]  ;;  %v10352_v8 = vpop.f32.mrf.mxu2  ;;  %v5961_v18 = vpop.f32.mrf.mxu0 }
 0x514   : > { %v5746_v51 = vadd.f32 %v5668_v28, %v5436_v15  ;;  %v11125_v15 = vld [vmem:[#allocation42_spill] sm:$0xff] }
 0x515   : > { %v6364_v6 = vmax.f32 %v6332_v9, 0.0  ;;  %7350 = vmatmul.msk.f32.gmra.mxu1 %vm3619_vm5, %v6102_v38  ;;  %v5683_v39 = vpop.f32.mrf.mxu3  ;;  %v6072_v38 = vld [vmem:[#allocation2 + $0xf9] sm:$0xff] }
 0x516   : > { %v11124_v9 = vld [vmem:[#allocation51_spill] sm:$0xff]  ;;  %v6024_v19 = vadd.f32 %v5946_v17, %v5746_v51 }
 0x517   : > { %7366 = vmatmul.msk.f32.gmra.mxu2 %vm3619_vm5, %v6364_v6  ;;  %v5127_v46 = vadd.f32 %v10031_v47, %v11124_v9  ;;  %v6074_v9 = vld [vmem:[#allocation2 + $0x109] sm:$0xff] }
 0x519   : > { %v5437_v54 = vadd.f32 %v10206_v27, %v5127_v46  ;;  %v11126_v46 = vld [vmem:[#allocation59_spill] sm:$0xff] }
 0x51a   : > { %v6253_v0 = vpop.f32.mrf.mxu1 }
 0x51b   : > { %v6333_v30 = vadd.f32 %v6253_v0, %v6023_v1  ;;  %v6104_v0 = vmul.f32 %v11016_v43, %v6072_v38  ;;  %v5747_v28 = vadd.f32 %v5671_v3, %v5437_v54  ;;  %v10361_v1 = vpop.f32.mrf.mxu2  ;;  %v6073_v43 = vld [vmem:[#allocation2 + $0x101] sm:$0xff]  ;;  %v5964_v38 = vpop.f32.mrf.mxu0 }
 0x51d   : > { %v6365_v10 = vmax.f32 %v6333_v30, 0.0  ;;  %7351 = vmatmul.msk.f32.gmra.mxu1 %vm3619_vm5, %v6071_v22  ;;  %v5128_v30 = vadd.f32 %v10049_v21, %v11125_v15  ;;  %v5686_v47 = vpop.f32.mrf.mxu3  ;;  %v6025_v17 = vadd.f32 %v10318_v13, %v5747_v28 }
 0x51f   : > { %7367 = vmatmul.msk.f32.gmra.mxu2 %vm3619_vm5, %v6365_v10  ;;  %v5438_v27 = vadd.f32 %v10218_v53, %v5128_v30 }
 0x521   : > { %v5748_v3 = vadd.f32 %v5674_v14, %v5438_v27  ;;  %v6106_v14 = vmul.f32 %v11024_v7, %v6074_v9  ;;  %v6108_v9 = vmul.f32 %v11084_v60, %v10113_v26 }
 0x522   : > { %v6256_v11 = vpop.f32.mrf.mxu1 }
 0x523   : > { %v6334_v6 = vadd.f32 %v6256_v11, %v6024_v19  ;;  %v5129_v19 = vadd.f32 %v10065_v40, %v11126_v46  ;;  %v6026_v21 = vadd.f32 %v10327_v42, %v5748_v3  ;;  %v10372_v11 = vpop.f32.mrf.mxu2  ;;  %v5967_v42 = vpop.f32.mrf.mxu0 }
 0x525   : > { %v6366_v61 = vmax.f32 %v6334_v6, 0.0  ;;  %7352 = vmatmul.msk.f32.gmra.mxu1 %vm3619_vm5, %v6104_v0  ;;  %v5439_v53 = vadd.f32 %v10233_v4, %v5129_v19  ;;  %v5689_v54 = vpop.f32.mrf.mxu3 }
 0x527   : > { %7368 = vmatmul.msk.f32.gmra.mxu2 %vm3619_vm5, %v6366_v61  ;;  %v5749_v0 = vadd.f32 %v10332_v58, %v5439_v53  ;;  %v11127_v61 = vld [vmem:[#allocation64_spill] sm:$0xff] }
 0x528   : > { %v5130_v40 = vadd.f32 %v10086_v24, %v11127_v61 }
 0x529   : > { %v6027_v15 = vadd.f32 %v10339_v12, %v5749_v0  ;;  %v5133_v0 = vadd.f32 %v10140_v59, %v9859_v29 }
 0x52a   : > { %v6259_v22 = vpop.f32.mrf.mxu1  ;;  %v5440_v4 = vadd.f32 %v10243_v33, %v5130_v40 }
 0x52b   : > { %v6335_v51 = vadd.f32 %v6259_v22, %v6025_v17  ;;  %v10383_v22 = vpop.f32.mrf.mxu2 }
 0x52c   : > { %v5750_v7 = vadd.f32 %v5680_v62, %v5440_v4 }
 0x52d   : > { %v6367_v10 = vmax.f32 %v6335_v51, 0.0  ;;  %7353 = vmatmul.msk.f32.gmra.mxu1 %vm3619_vm5, %v6073_v43  ;;  %v5692_v27 = vpop.f32.mrf.mxu3  ;;  %v11128_v51 = vld [vmem:[#allocation26_spill] sm:$0xff] }
 0x52e   : > { %v5131_v24 = vadd.f32 %v10102_v55, %v11128_v51  ;;  %v6028_v43 = vadd.f32 %v5958_v16, %v5750_v7  ;;  %v5132_v55 = vadd.f32 %v10126_v37, %v9842_v48 }
 0x52f   : > { %7369 = vmatmul.msk.f32.gmra.mxu2 %vm3619_vm5, %v6367_v10  ;;  %v5970_v10 = vpop.f32.mrf.mxu0 }
 0x530   : > { %v5441_v12 = vadd.f32 %v10254_v63, %v5131_v24  ;;  %v6077_v63 = vld [vmem:[#allocation2 + $0x121] sm:$0xff] }
 0x532   : > { %v6262_v13 = vpop.f32.mrf.mxu1  ;;  %v5751_v62 = vadd.f32 %v5683_v39, %v5441_v12  ;;  %v6078_v39 = vld [vmem:[#allocation2 + $0x129] sm:$0xff] }
 0x533   : > { %v6336_v6 = vadd.f32 %v6262_v13, %v6026_v21  ;;  %v10394_v19 = vpop.f32.mrf.mxu2  ;;  %v5442_v13 = vadd.f32 %v10266_v25, %v5132_v55  ;;  %v5443_v25 = vadd.f32 %v10278_v23, %v5133_v0  ;;  %v11130_v0 = vld [vmem:[#allocation21_spill] sm:$0xff] }
 0x534   : > { %v6029_v16 = vadd.f32 %v5961_v18, %v5751_v62  ;;  %v6110_v18 = vmul.f32 %v11044_v35, %v6078_v39 }
 0x535   : > { %v6368_v28 = vmax.f32 %v6336_v6, 0.0  ;;  %7354 = vmatmul.msk.f32.gmra.mxu1 %vm3619_vm5, %v6106_v14  ;;  %v5752_v6 = vadd.f32 %v5686_v47, %v5442_v13  ;;  %v5753_v61 = vadd.f32 %v5689_v54, %v5443_v25  ;;  %v10420_v54 = vld [vmem:[%s10589_s6] ss:$0 sm:$0xff] }
 0x537   : > { %7370 = vmatmul.msk.f32.gmra.mxu2 %vm3619_vm5, %v6368_v28  ;;  %v5973_v60 = vpop.f32.mrf.mxu0  ;;  %v6030_v37 = vadd.f32 %v5964_v38, %v5752_v6  ;;  %v6031_v29 = vadd.f32 %v5967_v42, %v5753_v61 }
 0x53a   : > { %v6265_v30 = vpop.f32.mrf.mxu1 }
 0x53b   : > { %v6337_v17 = vadd.f32 %v6265_v30, %v6027_v15  ;;  %v10402_v14 = vpop.f32.mrf.mxu2  ;;  %v5134_v30 = vadd.f32 %v10149_v52, %v9878_v49  ;;  %v5135_v49 = vadd.f32 %v10160_v44, %v9895_v20  ;;  %v5136_v44 = vadd.f32 %v10169_v32, %v9914_v50 }
 0x53d   : > { %v6369_v58 = vmax.f32 %v6337_v17, 0.0  ;;  %7355 = vmatmul.msk.f32.gmra.mxu1 %vm3619_vm5, %v10104_v41  ;;  %v5695_v41 = vpop.f32.mrf.mxu3  ;;  %v5444_v35 = vadd.f32 %v10287_v45, %v5134_v30  ;;  %v11131_v30 = vld [vmem:[#allocation41_spill] sm:$0xff] }
 0x53f   : > { %7371 = vmatmul.msk.f32.gmra.mxu2 %vm3619_vm5, %v6369_v58  ;;  %v5976_v15 = vpop.f32.mrf.mxu0  ;;  %v5754_v17 = vadd.f32 %v5692_v27, %v5444_v35  ;;  %v5445_v27 = vadd.f32 %v10295_v34, %v5135_v49 }
 0x541   : > { %v6032_v42 = vadd.f32 %v5970_v10, %v5754_v17 }
 0x542   : > { %v6268_v3 = vpop.f32.mrf.mxu1 }
 0x543   : > { %v6338_v33 = vadd.f32 %v6268_v3, %v6028_v43  ;;  %v10412_v59 = vpop.f32.mrf.mxu2  ;;  %v5755_v43 = vadd.f32 %v5695_v41, %v5445_v27 }
 0x545   : > { %v6370_v46 = vmax.f32 %v6338_v33, 0.0  ;;  %7356 = vmatmul.msk.f32.gmra.mxu1 %vm3619_vm5, %v6108_v9  ;;  %v5698_v48 = vpop.f32.mrf.mxu3  ;;  %v6033_v12 = vadd.f32 %v5973_v60, %v5755_v43  ;;  %v5446_v9 = vadd.f32 %v10300_v2, %v5136_v44 }
 0x547   : > { %7372 = vmatmul.msk.f32.gmra.mxu2 %vm3619_vm5, %v6370_v46  ;;  %v5979_v52 = vpop.f32.mrf.mxu0  ;;  %v5756_v41 = vadd.f32 %v5698_v48, %v5446_v9  ;;  %v5138_v48 = vadd.f32 %v10196_v56, %v11130_v0 }
 0x549   : > { %v6034_v32 = vadd.f32 %v5976_v15, %v5756_v41 }
 0x54a   : > { %v6271_v21 = vpop.f32.mrf.mxu1 }
 0x54b   : > { %v6339_v53 = vadd.f32 %v6271_v21, %v6029_v16  ;;  %v11129_v21 = vld [vmem:[#allocation19_spill] sm:$0xff] }
 0x54c   : > { %v5137_v50 = vadd.f32 %v10182_v36, %v11129_v21 }
 0x54d   : > { %v6371_v26 = vmax.f32 %v6339_v53, 0.0  ;;  %7357 = vmatmul.msk.f32.gmra.mxu1 %vm3619_vm5, %v6077_v63  ;;  %v5701_v4 = vpop.f32.mrf.mxu3 }
 0x54e   : > { %v5447_v2 = vadd.f32 %v10307_v31, %v5137_v50  ;;  %v5448_v31 = vadd.f32 %v10314_v5, %v5138_v48 }
 0x54f   : > { %7373 = vmatmul.msk.f32.gmra.mxu2 %vm3619_vm5, %v6371_v26  ;;  %v5982_v34 = vpop.f32.mrf.mxu0 }
 0x550   : > { %v5757_v60 = vadd.f32 %v5701_v4, %v5447_v2 }
 0x552   : > { %v6274_v28 = vpop.f32.mrf.mxu1 }
 0x553   : > { %v6340_v47 = vadd.f32 %v6274_v28, %v6030_v37  ;;  %v6035_v37 = vadd.f32 %v5979_v52, %v5757_v60  ;;  %v11139_v60 = vld [vmem:[#allocation24_spill] sm:$0xff] }
 0x555   : > { %v6372_v40 = vmax.f32 %v6340_v47, 0.0  ;;  %7358 = vmatmul.msk.f32.gmra.mxu1 %vm3619_vm5, %v6110_v18  ;;  %v5704_v3 = vpop.f32.mrf.mxu3 }
 0x556   : > { %v5758_v61 = vadd.f32 %v5704_v3, %v5448_v31 }
 0x557   : > { %7374 = vmatmul.msk.f32.gmra.mxu2 %vm3619_vm5, %v6372_v40  ;;  %v5985_v26 = vpop.f32.mrf.mxu0 }
 0x55a   : > { %v6277_v38 = vpop.f32.mrf.mxu1 }
 0x55b   : > { %v6341_v23 = vadd.f32 %v6277_v38, %v6031_v29  ;;  %v11132_v29 = vld [vmem:[#allocation3_spill] sm:$0xff]  ;;  %v6036_v38 = vadd.f32 %v5982_v34, %v5758_v61  ;;  %v11142_v61 = vld [vmem:[#allocation32_spill] sm:$0xff] }
 0x55c   : > { %v5139_v56 = vadd.f32 %v11132_v29, %v11131_v30 }
 0x55d   : > { %v6373_v7 = vmax.f32 %v6341_v23, 0.0  ;;  %v5707_v16 = vpop.f32.mrf.mxu3  ;;  %v11133_v23 = vld [vmem:[#allocation38_spill] sm:$0xff] }
 0x55e   : > { %v5449_v17 = vadd.f32 %v11133_v23, %v5139_v56 }
 0x55f   : > { %7375 = vmatmul.msk.f32.gmra.mxu2 %vm3619_vm5, %v6373_v7  ;;  %v5988_v15 = vpop.f32.mrf.mxu0 }
 0x560   : > { %v5759_v52 = vadd.f32 %v5707_v16, %v5449_v17 }
 0x562   : > { %v6280_v58 = vpop.f32.mrf.mxu1  ;;  %v6510_v45 = vpop.f32.mrf.mxu2 }
 0x563   : > { %v6342_v51 = vadd.f32 %v6280_v58, %v6032_v42  ;;  %v6511_v24 = vadd.f32 %v10420_v54, %v6510_v45  ;;  %v11134_v58 = vld [vmem:[#allocation22_spill] sm:$0xff] }
 0x564   : > { %v11135_v45 = vld [vmem:[#allocation6_spill] sm:$0xff] }
 0x565   : > { %v6374_v20 = vmax.f32 %v6342_v51, 0.0  ;;  %6607 = vst.msk [vmem:[%s10427_s12] sm:$0xff] %vm6606_vm2, %v6511_v24  ;;  %v5710_v36 = vpop.f32.mrf.mxu3  ;;  %v5140_v27 = vadd.f32 %v11135_v45, %v11134_v58  ;;  %v6037_v24 = vadd.f32 %v5985_v26, %v5759_v52  ;;  %v11140_v26 = vld [vmem:[#allocation50_spill] sm:$0xff] }
 0x567   : > { %7376 = vmatmul.msk.f32.gmra.mxu2 %vm3619_vm5, %v6374_v20  ;;  %v5991_v51 = vpop.f32.mrf.mxu0  ;;  %v11136_v20 = vld [vmem:[#allocation61_spill] sm:$0xff] }
 0x568   : > { %v5450_v44 = vadd.f32 %v11136_v20, %v5140_v27  ;;  %v11146_v20 = vld [vmem:[#allocation9_spill] sm:$0xff] }
 0x56a   : > { %v6283_v10 = vpop.f32.mrf.mxu1  ;;  %v6513_v33 = vpop.f32.mrf.mxu2 }
 0x56b   : > { %v6343_v62 = vadd.f32 %v6283_v10, %v6033_v12  ;;  %v6514_v46 = vadd.f32 %v10420_v54, %v6513_v33  ;;  %v5760_v33 = vadd.f32 %v5710_v36, %v5450_v44 }
 0x56d   : > { %v6375_v55 = vmax.f32 %v6343_v62, 0.0  ;;  %6608 = vst.msk [vmem:[%s10427_s12 + $0x8] sm:$0xff] %vm6606_vm2, %v6514_v46  ;;  %v5713_v5 = vpop.f32.mrf.mxu3  ;;  %v11137_v62 = vld [vmem:[#allocation34_spill] sm:$0xff]  ;;  %v11138_v46 = vld [vmem:[#allocation44_spill] sm:$0xff] }
 0x56e   : > { %v5141_v41 = vadd.f32 %v11138_v46, %v11137_v62 }
 0x56f   : > { %7377 = vmatmul.msk.f32.gmra.mxu2 %vm3619_vm5, %v6375_v55  ;;  %v6038_v55 = vadd.f32 %v5988_v15, %v5760_v33 }
 0x570   : > { %v5451_v50 = vadd.f32 %v10344_v57, %v5141_v41 }
 0x572   : > { %v6286_v63 = vpop.f32.mrf.mxu1  ;;  %v6516_v13 = vpop.f32.mrf.mxu2  ;;  %v5761_v2 = vadd.f32 %v5713_v5, %v5451_v50  ;;  %v11143_v5 = vld [vmem:[#allocation25_spill] sm:$0xff] }
 0x573   : > { %v6344_v53 = vadd.f32 %v6286_v63, %v6034_v32  ;;  %v6517_v6 = vadd.f32 %v10420_v54, %v6516_v13  ;;  %v5994_v32 = vpop.f32.mrf.mxu0 }
 0x574   : > { %v6039_v0 = vadd.f32 %v5991_v51, %v5761_v2 }
 0x575   : > { %v6376_v39 = vmax.f32 %v6344_v53, 0.0  ;;  %6609 = vst.msk [vmem:[%s10427_s12 + $0x10] sm:$0xff] %vm6606_vm2, %v6517_v6  ;;  %v5716_v9 = vpop.f32.mrf.mxu3 }
 0x577   : > { %7378 = vmatmul.msk.f32.gmra.mxu2 %vm3619_vm5, %v6376_v39  ;;  %v5142_v39 = vadd.f32 %v11140_v26, %v11139_v60 }
 0x579   : > { %v5452_v57 = vadd.f32 %v10352_v8, %v5142_v39 }
 0x57a   : > { %v6289_v18 = vpop.f32.mrf.mxu1  ;;  %v6519_v28 = vpop.f32.mrf.mxu2 }
 0x57b   : > { %v6345_v25 = vadd.f32 %v6289_v18, %v6035_v37  ;;  %v6520_v47 = vadd.f32 %v10420_v54, %v6519_v28  ;;  %v5762_v28 = vadd.f32 %v5716_v9, %v5452_v57  ;;  %v5997_v31 = vpop.f32.mrf.mxu0 }
 0x57d   : > { %v6377_v40 = vmax.f32 %v6345_v25, 0.0  ;;  %6610 = vst.msk [vmem:[%s10427_s12 + $0x18] sm:$0xff] %vm6606_vm2, %v6520_v47  ;;  %v5719_v6 = vpop.f32.mrf.mxu3  ;;  %v11141_v47 = vld [vmem:[#allocation52_spill] sm:$0xff]  ;;  %v6040_v30 = vadd.f32 %v5994_v32, %v5762_v28 }
 0x57f   : > { %7379 = vmatmul.msk.f32.gmra.mxu2 %vm3619_vm5, %v6377_v40  ;;  %v5143_v40 = vadd.f32 %v11142_v61, %v11141_v47 }
 0x581   : > { %v5453_v8 = vadd.f32 %v10361_v1, %v5143_v40  ;;  %v11151_v40 = vld [vmem:[#allocation72_spill] sm:$0xff] }
 0x582   : > { %v6292_v35 = vpop.f32.mrf.mxu1  ;;  %v6522_v4 = vpop.f32.mrf.mxu2 }
 0x583   : > { %v6346_v7 = vadd.f32 %v6292_v35, %v6036_v38  ;;  %v6523_v49 = vadd.f32 %v10420_v54, %v6522_v4  ;;  %v5763_v4 = vadd.f32 %v5719_v6, %v5453_v8  ;;  %v6000_v17 = vpop.f32.mrf.mxu0 }
 0x585   : > { %v6378_v42 = vmax.f32 %v6346_v7, 0.0  ;;  %6611 = vst.msk [vmem:[%s10427_s12 + $0x20] sm:$0xff] %vm6606_vm2, %v6523_v49  ;;  %v5722_v15 = vpop.f32.mrf.mxu3  ;;  %v11144_v7 = vld [vmem:[#allocation33_spill] sm:$0xff]  ;;  %v6041_v52 = vadd.f32 %v5997_v31, %v5763_v4 }
 0x586   : > { %v5144_v49 = vadd.f32 %v11144_v7, %v11143_v5 }
 0x587   : > { %7380 = vmatmul.msk.f32.gmra.mxu2 %vm3619_vm5, %v6378_v42 }
 0x588   : > { %v5454_v45 = vadd.f32 %v10372_v11, %v5144_v49 }
 0x58a   : > { %v6295_v43 = vpop.f32.mrf.mxu1  ;;  %v6525_v3 = vpop.f32.mrf.mxu2 }
 0x58b   : > { %v6347_v12 = vadd.f32 %v6295_v43, %v6037_v24  ;;  %v6526_v10 = vadd.f32 %v10420_v54, %v6525_v3  ;;  %v5764_v24 = vadd.f32 %v5722_v15, %v5454_v45  ;;  %v11145_v3 = vld [vmem:[#allocation36_spill] sm:$0xff]  ;;  %v11152_v15 = vld [vmem:[#allocation47_spill] sm:$0xff] }
 0x58c   : > { %v5145_v44 = vadd.f32 %v11146_v20, %v11145_v3 }
 0x58d   : > { %v6379_v34 = vmax.f32 %v6347_v12, 0.0  ;;  %6612 = vst.msk [vmem:[%s10427_s12 + $0x28] sm:$0xff] %vm6606_vm2, %v6526_v10  ;;  %v5725_v1 = vpop.f32.mrf.mxu3  ;;  %v6003_v12 = vpop.f32.mrf.mxu0  ;;  %v6042_v10 = vadd.f32 %v6000_v17, %v5764_v24 }
 0x58e   : > { %v5455_v11 = vadd.f32 %v10383_v22, %v5145_v44 }
 0x58f   : > { %7381 = vmatmul.msk.f32.gmra.mxu2 %vm3619_vm5, %v6379_v34 }
 0x590   : > { %v5765_v46 = vadd.f32 %v5725_v1, %v5455_v11 }
 0x592   : > { %v6298_v16 = vpop.f32.mrf.mxu1  ;;  %v6528_v21 = vpop.f32.mrf.mxu2  ;;  %v6043_v32 = vadd.f32 %v6003_v12, %v5765_v46 }
 0x593   : > { %v6348_v63 = vadd.f32 %v6298_v16, %v6038_v55  ;;  %v6529_v13 = vadd.f32 %v10420_v54, %v6528_v21  ;;  %v11147_v16 = vld [vmem:[#allocation29_spill] sm:$0xff]  ;;  %v11148_v21 = vld [vmem:[#allocation46_spill] sm:$0xff] }
 0x594   : > { %v5146_v50 = vadd.f32 %v11148_v21, %v11147_v16 }
 0x595   : > { %v6380_v53 = vmax.f32 %v6348_v63, 0.0  ;;  %6613 = vst.msk [vmem:[%s10427_s12 + $0x30] sm:$0xff] %vm6606_vm2, %v6529_v13  ;;  %v5728_v41 = vpop.f32.mrf.mxu3  ;;  %v6006_v6 = vpop.f32.mrf.mxu0 }
 0x596   : > { %v5456_v2 = vadd.f32 %v10394_v19, %v5146_v50 }
 0x597   : > { %7382 = vmatmul.msk.f32.gmra.mxu2 %vm3619_vm5, %v6380_v53 }
 0x598   : > { %v5766_v60 = vadd.f32 %v5728_v41, %v5456_v2 }
 0x59a   : > { %v6301_v48 = vpop.f32.mrf.mxu1  ;;  %v6531_v36 = vpop.f32.mrf.mxu2  ;;  %v6044_v57 = vadd.f32 %v6006_v6, %v5766_v60 }
 0x59b   : > { %v6349_v37 = vadd.f32 %v6301_v48, %v6039_v0  ;;  %v6532_v18 = vadd.f32 %v10420_v54, %v6531_v36  ;;  %v11149_v0 = vld [vmem:[#allocation30_spill] sm:$0xff]  ;;  %v11150_v48 = vld [vmem:[#allocation37_spill] sm:$0xff] }
 0x59c   : > { %v5147_v36 = vadd.f32 %v11150_v48, %v11149_v0 }
 0x59d   : > { %v6381_v25 = vmax.f32 %v6349_v37, 0.0  ;;  %6614 = vst.msk [vmem:[%s10427_s12 + $0x38] sm:$0xff] %vm6606_vm2, %v6532_v18  ;;  %v5731_v39 = vpop.f32.mrf.mxu3 }
 0x59e   : > { %v5457_v19 = vadd.f32 %v10402_v14, %v5147_v36 }
 0x59f   : > { %7383 = vmatmul.msk.f32.gmra.mxu2 %vm3619_vm5, %v6381_v25  ;;  %v6009_v25 = vpop.f32.mrf.mxu0 }
 0x5a0   : > { %v5767_v47 = vadd.f32 %v5731_v39, %v5457_v19 }
 0x5a2   : > { %v6304_v29 = vpop.f32.mrf.mxu1  ;;  %v6534_v56 = vpop.f32.mrf.mxu2 }
 0x5a3   : > { %v6350_v38 = vadd.f32 %v6304_v29, %v6040_v30  ;;  %v6535_v35 = vadd.f32 %v10420_v54, %v6534_v56  ;;  %v5148_v30 = vadd.f32 %v11152_v15, %v11151_v40  ;;  %v6045_v29 = vadd.f32 %v6009_v25, %v5767_v47 }
 0x5a5   : > { %v6382_v23 = vmax.f32 %v6350_v38, 0.0  ;;  %6615 = vst.msk [vmem:[%s10427_s12 + $0x40] sm:$0xff] %vm6606_vm2, %v6535_v35  ;;  %v5734_v56 = vpop.f32.mrf.mxu3  ;;  %v5458_v14 = vadd.f32 %v10412_v59, %v5148_v30 }
 0x5a7   : > { %7384 = vmatmul.msk.f32.gmra.mxu2 %vm3619_vm5, %v6382_v23  ;;  %v5768_v23 = vadd.f32 %v5734_v56, %v5458_v14  ;;  %v6012_v5 = vpop.f32.mrf.mxu0 }
 0x5a9   : > { %v6046_v7 = vadd.f32 %v6012_v5, %v5768_v23 }
 0x5aa   : > { %v6307_v42 = vpop.f32.mrf.mxu1  ;;  %v6537_v58 = vpop.f32.mrf.mxu2 }
 0x5ab   : > { %v6351_v27 = vadd.f32 %v6307_v42, %v6041_v52  ;;  %v6538_v51 = vadd.f32 %v10420_v54, %v6537_v58 }
 0x5ad   : > { %v6383_v43 = vmax.f32 %v6351_v27, 0.0  ;;  %6616 = vst.msk [vmem:[%s10427_s12 + $0x48] sm:$0xff] %vm6606_vm2, %v6538_v51 }
 0x5af   : > { %7385 = vmatmul.msk.f32.gmra.mxu2 %vm3619_vm5, %v6383_v43 }
 0x5b2   : > { %v6310_v33 = vpop.f32.mrf.mxu1  ;;  %v6540_v9 = vpop.f32.mrf.mxu2 }
 0x5b3   : > { %v6352_v34 = vadd.f32 %v6310_v33, %v6042_v10  ;;  %v6541_v62 = vadd.f32 %v10420_v54, %v6540_v9 }
 0x5b5   : > { %v6384_v55 = vmax.f32 %v6352_v34, 0.0  ;;  %6617 = vst.msk [vmem:[%s10427_s12 + $0x50] sm:$0xff] %vm6606_vm2, %v6541_v62 }
 0x5b7   : > { %7386 = vmatmul.msk.f32.gmra.mxu2 %vm3619_vm5, %v6384_v55 }
 0x5ba   : > { %v6313_v63 = vpop.f32.mrf.mxu1  ;;  %v6543_v13 = vpop.f32.mrf.mxu2 }
 0x5bb   : > { %v6353_v22 = vadd.f32 %v6313_v63, %v6043_v32  ;;  %v6544_v53 = vadd.f32 %v10420_v54, %v6543_v13 }
 0x5bd   : > { %v6385_v26 = vmax.f32 %v6353_v22, 0.0  ;;  %6618 = vst.msk [vmem:[%s10427_s12 + $0x58] sm:$0xff] %vm6606_vm2, %v6544_v53 }
 0x5bf   : > { %7387 = vmatmul.msk.f32.gmra.mxu2 %vm3619_vm5, %v6385_v26 }
 0x5c2   : > { %v6316_v37 = vpop.f32.mrf.mxu1  ;;  %v6546_v18 = vpop.f32.mrf.mxu2 }
 0x5c3   : > { %v6354_v28 = vadd.f32 %v6316_v37, %v6044_v57  ;;  %v6547_v31 = vadd.f32 %v10420_v54, %v6546_v18 }
 0x5c5   : > { %v6386_v61 = vmax.f32 %v6354_v28, 0.0  ;;  %6619 = vst.msk [vmem:[%s10427_s12 + $0x60] sm:$0xff] %vm6606_vm2, %v6547_v31 }
 0x5c7   : > { %7388 = vmatmul.msk.f32.gmra.mxu2 %vm3619_vm5, %v6386_v61 }
 0x5ca   : > { %v6319_v8 = vpop.f32.mrf.mxu1  ;;  %v6549_v38 = vpop.f32.mrf.mxu2 }
 0x5cb   : > { %v6355_v35 = vadd.f32 %v6319_v8, %v6045_v29  ;;  %v6550_v4 = vadd.f32 %v10420_v54, %v6549_v38 }
 0x5cd   : > { %v6387_v17 = vmax.f32 %v6355_v35, 0.0  ;;  %6620 = vst.msk [vmem:[%s10427_s12 + $0x68] sm:$0xff] %vm6606_vm2, %v6550_v4 }
 0x5cf   : > { %7389 = vmatmul.msk.f32.gmra.mxu2 %vm3619_vm5, %v6387_v17 }
 0x5d2   : > { %v6322_v49 = vpop.f32.mrf.mxu1  ;;  %v6552_v52 = vpop.f32.mrf.mxu2 }
 0x5d3   : > { %v6356_v42 = vadd.f32 %v6322_v49, %v6046_v7  ;;  %v6553_v59 = vadd.f32 %v10420_v54, %v6552_v52 }
 0x5d5   : > { %v6388_v58 = vmax.f32 %v6356_v42, 0.0  ;;  %6621 = vst.msk [vmem:[%s10427_s12 + $0x70] sm:$0xff] %vm6606_vm2, %v6553_v59 }
 0x5d7   : > { %7390 = vmatmul.msk.f32.gmra.mxu2 %vm3619_vm5, %v6388_v58 }
 0x5da   : > { %v6555_v45 = vpop.f32.mrf.mxu2 }
 0x5db   : > { %v6556_v1 = vadd.f32 %v10420_v54, %v6555_v45 }
 0x5dd   : > { %6622 = vst.msk [vmem:[%s10427_s12 + $0x78] sm:$0xff] %vm6606_vm2, %v6556_v1 }
 0x5e2   : > { %v6558_v27 = vpop.f32.mrf.mxu2 }
 0x5e3   : > { %v6559_v51 = vadd.f32 %v10420_v54, %v6558_v27 }
 0x5e5   : > { %6623 = vst.msk [vmem:[%s10427_s12 + $0x80] sm:$0xff] %vm6606_vm2, %v6559_v51 }
 0x5ea   : > { %v6561_v24 = vpop.f32.mrf.mxu2 }
 0x5eb   : > { %v6562_v43 = vadd.f32 %v10420_v54, %v6561_v24 }
 0x5ed   : > { %6624 = vst.msk [vmem:[%s10427_s12 + $0x88] sm:$0xff] %vm6606_vm2, %v6562_v43 }
 0x5f2   : > { %v6564_v3 = vpop.f32.mrf.mxu2 }
 0x5f3   : > { %v6565_v20 = vadd.f32 %v10420_v54, %v6564_v3 }
 0x5f5   : > { %6625 = vst.msk [vmem:[%s10427_s12 + $0x90] sm:$0xff] %vm6606_vm2, %v6565_v20 }
 0x5fa   : > { %v6567_v44 = vpop.f32.mrf.mxu2 }
 0x5fb   : > { %v6568_v12 = vadd.f32 %v10420_v54, %v6567_v44 }
 0x5fd   : > { %6626 = vst.msk [vmem:[%s10427_s12 + $0x98] sm:$0xff] %vm6606_vm2, %v6568_v12 }
 0x602   : > { %v6570_v10 = vpop.f32.mrf.mxu2 }
 0x603   : > { %v6571_v33 = vadd.f32 %v10420_v54, %v6570_v10 }
 0x605   : > { %6627 = vst.msk [vmem:[%s10427_s12 + $0xa0] sm:$0xff] %vm6606_vm2, %v6571_v33 }
 0x60a   : > { %v6573_v9 = vpop.f32.mrf.mxu2 }
 0x60b   : > { %v6574_v11 = vadd.f32 %v10420_v54, %v6573_v9 }
 0x60d   : > { %6628 = vst.msk [vmem:[%s10427_s12 + $0xa8] sm:$0xff] %vm6606_vm2, %v6574_v11 }
 0x612   : > { %v6576_v34 = vpop.f32.mrf.mxu2 }
 0x613   : > { %v6577_v62 = vadd.f32 %v10420_v54, %v6576_v34 }
 0x615   : > { %6629 = vst.msk [vmem:[%s10427_s12 + $0xb0] sm:$0xff] %vm6606_vm2, %v6577_v62 }
 0x61a   : > { %v6579_v46 = vpop.f32.mrf.mxu2 }
 0x61b   : > { %v6580_v41 = vadd.f32 %v10420_v54, %v6579_v46 }
 0x61d   : > { %6630 = vst.msk [vmem:[%s10427_s12 + $0xb8] sm:$0xff] %vm6606_vm2, %v6580_v41 }
 0x622   : > { %v6582_v55 = vpop.f32.mrf.mxu2 }
 0x623   : > { %v6583_v16 = vadd.f32 %v10420_v54, %v6582_v55 }
 0x625   : > { %6631 = vst.msk [vmem:[%s10427_s12 + $0xc0] sm:$0xff] %vm6606_vm2, %v6583_v16 }
 0x62a   : > { %v6585_v21 = vpop.f32.mrf.mxu2 }
 0x62b   : > { %v6586_v50 = vadd.f32 %v10420_v54, %v6585_v21 }
 0x62d   : > { %6632 = vst.msk [vmem:[%s10427_s12 + $0xc8] sm:$0xff] %vm6606_vm2, %v6586_v50 }
 0x632   : > { %v6588_v32 = vpop.f32.mrf.mxu2 }
 0x633   : > { %v6589_v63 = vadd.f32 %v10420_v54, %v6588_v32 }
 0x635   : > { %6633 = vst.msk [vmem:[%s10427_s12 + $0xd0] sm:$0xff] %vm6606_vm2, %v6589_v63 }
 0x63a   : > { %v6591_v13 = vpop.f32.mrf.mxu2 }
 0x63b   : > { %v6592_v2 = vadd.f32 %v10420_v54, %v6591_v13 }
 0x63d   : > { %6634 = vst.msk [vmem:[%s10427_s12 + $0xd8] sm:$0xff] %vm6606_vm2, %v6592_v2 }
 0x642   : > { %v6594_v22 = vpop.f32.mrf.mxu2 }
 0x643   : > { %v6595_v53 = vadd.f32 %v10420_v54, %v6594_v22 }
 0x645   : > { %6635 = vst.msk [vmem:[%s10427_s12 + $0xe0] sm:$0xff] %vm6606_vm2, %v6595_v53 }
 0x64a   : > { %v6597_v6 = vpop.f32.mrf.mxu2 }
 0x64b   : > { %v6598_v60 = vadd.f32 %v10420_v54, %v6597_v6 }
 0x64d   : > { %6636 = vst.msk [vmem:[%s10427_s12 + $0xe8] sm:$0xff] %vm6606_vm2, %v6598_v60 }
 0x652   : > { %v6600_v26 = vpop.f32.mrf.mxu2 }
 0x653   : > { %v6601_v39 = vadd.f32 %v10420_v54, %v6600_v26 }
 0x655   : > { %6637 = vst.msk [vmem:[%s10427_s12 + $0xf0] sm:$0xff] %vm6606_vm2, %v6601_v39 }
 0x65a   : > { %v6603_v0 = vpop.f32.mrf.mxu2 }
 0x65b   : > { %v6604_v48 = vadd.f32 %v10420_v54, %v6603_v0 }
 0x65d   : > { %6638 = vst.msk [vmem:[%s10427_s12 + $0xf8] sm:$0xff] %vm6606_vm2, %v6604_v48 }
 0x65e PF: > { %s17_s24 = sadd.s32 1, %s7417_s24  }
 0x65f   : > { %p14_p4 = scmp.ge.s32.totalorder %s17_s24, 4  }
 0x661   :  { %16 = sbr.rel (!%p14_p4) target bundleno = 1 (0x1), region = 94 }

</bundles_post_ra>
